<compile_context>
chip_gen: v6e
topology: v6e:2x2x1
jax: 0.10.0
libtpu: 0.0.40
codegen_flags: <defaults>
</compile_context>

<pallas_src>
import functools

import jax
import jax.numpy as jnp
from jax import lax
from jax.experimental import pallas as pl
from jax.experimental.pallas import tpu as pltpu


_NEG = -1e30      # large finite negative used to mask padded rows/cols (never -inf)
_TINY = 1e-30     # denominator clamp for the linear-domain scaling updates
_LANE = 128
_SUBLANE = 8


def _round_up(x, k):
    return (x + k - 1) // k * k


def _barycentric_kernel(xp_ref, xq_ref, p_col_ref, p_row_ref, q_row_ref,
                        rmask_ref, cmask_ref, t_ref, pi_ref,
                        *, reg, num_iter, absorb_every):
    xp = xp_ref[...]                       # (n_pad, d_pad) f32
    xq = xq_ref[...]                       # (m_pad, d_pad) f32
    p_col = p_col_ref[...]                 # (n_pad, 1)
    p_row = p_row_ref[...]                 # (1, n_pad)
    q_row = q_row_ref[...]                 # (1, m_pad)
    rmask = rmask_ref[...]                 # (n_pad, 1)  0.0 real row / _NEG padded
    cmask = cmask_ref[...]                 # (1, m_pad)  0.0 real col / _NEG padded

    n_pad = xp.shape[0]
    m_pad = xq.shape[0]

    # ---- cost: ||x||^2 + ||y||^2 - 2 x.y^T  (MXU, A.B^T flavour, f32) ---------
    xp2 = jnp.sum(xp * xp, axis=1, keepdims=True)                    # (n_pad, 1)
    xq2 = jnp.sum(xq * xq, axis=1, keepdims=True)                    # (m_pad, 1)
    xy = lax.dot_general(xp, xq, (((1,), (1,)), ((), ())),
                         preferred_element_type=jnp.float32)         # (n_pad, m_pad)
    cost = jnp.maximum(xp2 + xq2.T - 2.0 * xy, 0.0)

    # Additive masking: no (n, m) boolean mask / select is ever materialised.
    mr = cost * (-1.0 / reg) + rmask + cmask

    log_p = jnp.log(jnp.maximum(p_col, _TINY)) + rmask               # (n_pad, 1)
    log_q = jnp.log(jnp.maximum(q_row, _TINY)) + cmask               # (1, m_pad)

    ones_n = jnp.ones((1, n_pad), jnp.float32)
    ones_m = jnp.ones((m_pad, 1), jnp.float32)

    # ---- iteration 1 in the log domain (warm start) ----------------------------
    # exp(-C/reg) underflows for small reg, so the first (v, u) update uses
    # log-sum-exp (partition sums on the MXU).  Afterwards K~ = exp(mr + f + g)
    # has row sums == p and entries in [0, p_i]: the remaining iterations can run
    # safely in the linear domain.
    mx_c = jnp.max(mr, axis=0, keepdims=True)                        # (1, m_pad)
    s_c = jnp.dot(ones_n, jnp.exp(mr - mx_c),
                  preferred_element_type=jnp.float32)                # (1, m_pad)
    g = log_q - (mx_c + jnp.log(s_c))                                # (1, m_pad)

    mrg = mr + g
    mx_r = jnp.max(mrg, axis=1, keepdims=True)                       # (n_pad, 1)
    e_r = jnp.exp(mrg - mx_r)                                        # (n_pad, m_pad)
    s_r = jnp.dot(e_r, ones_m, preferred_element_type=jnp.float32)   # (n_pad, 1)
    f = log_p - (mx_r + jnp.log(s_r))                                # (n_pad, 1)

    # K~ = exp(mr + f + g), rebuilt from the LSE exponentials (saves a third
    # full-matrix exp).  f + mx_r = log p - log s_r <= 0, so no overflow; padded
    # rows/cols come out exactly 0.
    kt = e_r * jnp.exp(f + mx_r)                                     # (n_pad, m_pad)

    # ---- iterations 2..num_iter: stabilised linear-domain Sinkhorn -------------
    # Per iteration: two MXU matvecs + small vector divides (no full-matrix exp,
    # no XLU reductions).  Every `absorb_every` iterations the scalings fold back
    # into K~ multiplicatively; rows of K~ then sum to p again, so u/v stay O(1).
    cT = (((1,), (1,)), ((), ()))        # contract-last-with-last dot_general dims
    n_lin = num_iter - 1
    done = 0
    while done < n_lin:
        chunk = min(absorb_every, n_lin - done)
        done += chunk
        u = ones_n                                                   # (1, n_pad)
        for _ in range(chunk - 1):
            v = q_row / jnp.maximum(
                jnp.dot(u, kt, preferred_element_type=jnp.float32), _TINY)
            u = p_row / jnp.maximum(
                lax.dot_general(v, kt, cT, preferred_element_type=jnp.float32),
                _TINY)
        # Last iteration of the chunk: produce the u-update directly in column
        # layout so the refold needs no transposes.
        v = q_row / jnp.maximum(
            jnp.dot(u, kt, preferred_element_type=jnp.float32), _TINY)
        u_col = p_col / jnp.maximum(
            lax.dot_general(kt, v, cT, preferred_element_type=jnp.float32), _TINY)
        kt = (kt * v) * u_col                                        # refold (VALU only)

    pi = kt                                                          # padded rows/cols are 0
    pi_ref[...] = pi

    # ---- epilogue: (pi / p[:, None]) @ XQ, exact 1/p, f32 on the MXU -----------
    inv_p = 1.0 / jnp.maximum(p_col, _TINY)
    t_ref[...] = jnp.dot(pi * inv_p, xq, preferred_element_type=jnp.float32)


def _vmem_capacity_bytes():
    try:
        info = pltpu.get_tpu_info()
        cap = getattr(info, "vmem_capacity_bytes", None)
        if cap:
            return int(cap)
    except Exception:
        pass
    try:
        kind = jax.devices()[0].device_kind.lower()
        if "v7" in kind:
            return 64 << 20          # v7x: 64 MiB per TensorCore
    except Exception:
        pass
    return 128 << 20                 # v5e / v6e


def barycentric_mapping(xp, xq, p=None, q=None, *, reg=0.05, num_iter_sinkhorn=50,
                        absorb_every=5):
    """Pallas TPU implementation of BarycentricMapping.forward (entropic OT path).

    Returns (T, pi) with pi the entropic OT plan after `num_iter_sinkhorn`
    Sinkhorn iterations (matches ot.sinkhorn method='sinkhorn_log' to f32
    tolerance) and T = (pi / p[:, None]) @ XQ.
    """
    if reg <= 0.0:
        # TODO(synk): exact-EMD (ot.emd network simplex) branch has no TPU equivalent.
        raise NotImplementedError("reg == 0 (exact EMD) path is not implemented")
    if num_iter_sinkhorn < 1:
        raise ValueError("num_iter_sinkhorn must be >= 1")

    n, d = xp.shape
    m, _ = xq.shape
    if p is None:
        p = jnp.full((n,), 1.0 / n, dtype=jnp.float32)
    if q is None:
        q = jnp.full((m,), 1.0 / m, dtype=jnp.float32)
    p32 = p.astype(jnp.float32)
    q32 = q.astype(jnp.float32)

    # Lane/sublane-dense padding: m, d -> x128 lanes; n -> x8 sublanes.
    n_pad = _round_up(n, _SUBLANE)
    m_pad = _round_up(m, _LANE)
    d_pad = _round_up(d, _LANE)

    xp_p = jnp.zeros((n_pad, d_pad), jnp.float32).at[:n, :d].set(xp.astype(jnp.float32))
    xq_p = jnp.zeros((m_pad, d_pad), jnp.float32).at[:m, :d].set(xq.astype(jnp.float32))
    p_col = jnp.zeros((n_pad, 1), jnp.float32).at[:n, 0].set(p32)
    p_row = jnp.zeros((1, n_pad), jnp.float32).at[0, :n].set(p32)
    q_row = jnp.zeros((1, m_pad), jnp.float32).at[0, :m].set(q32)
    rmask = jnp.where(jnp.arange(n_pad)[:, None] < n, 0.0, _NEG).astype(jnp.float32)
    cmask = jnp.where(jnp.arange(m_pad)[None, :] < m, 0.0, _NEG).astype(jnp.float32)

    # VMEM budget: (n, m)-sized buffers dominate (K~, warm-start temps, pi out).
    nm, nd, md = n_pad * m_pad, n_pad * d_pad, m_pad * d_pad
    est_bytes = 4 * (7 * nm + 3 * nd + 3 * md) + (4 << 20)
    budget = int(_vmem_capacity_bytes() * 0.9)
    if est_bytes > budget:
        # TODO(synk): tiled "flash-Sinkhorn" for plans that exceed VMEM.
        raise NotImplementedError(
            f"monolithic kernel needs ~{est_bytes >> 20} MiB VMEM, budget is "
            f"{budget >> 20} MiB; tiled flash-Sinkhorn not implemented")
    vmem_limit = min(budget, max(est_bytes, 32 << 20))

    n_chunks = -(-(num_iter_sinkhorn - 1) // absorb_every)
    cost_est = pl.CostEstimate(
        flops=int(4 * nm * d_pad + 4 * nm * num_iter_sinkhorn + 2 * nm * (n_chunks + 4)),
        transcendentals=int(2 * nm + 4 * (n_pad + m_pad)),
        bytes_accessed=int(4 * (2 * nd + md + 2 * nm + 4 * n_pad + 3 * m_pad)),
    )

    kernel = functools.partial(
        _barycentric_kernel, reg=float(reg), num_iter=int(num_iter_sinkhorn),
        absorb_every=int(absorb_every))

    vmem = pl.BlockSpec(memory_space=pltpu.MemorySpace.VMEM)
    t_pad, pi_pad = pl.pallas_call(
        kernel,
        out_shape=(
            jax.ShapeDtypeStruct((n_pad, d_pad), jnp.float32),   # mapped XP (padded)
            jax.ShapeDtypeStruct((n_pad, m_pad), jnp.float32),   # transport plan (padded)
        ),
        in_specs=[vmem] * 7,
        out_specs=(vmem, vmem),
        compiler_params=pltpu.CompilerParams(vmem_limit_bytes=vmem_limit),
        cost_estimate=cost_est,
    )(xp_p, xq_p, p_col, p_row, q_row, rmask, cmask)

    return t_pad[:n, :d], pi_pad[:n, :m]


if __name__ == "__main__":
    key = jax.random.PRNGKey(0)
    k1, k2 = jax.random.split(key)
    n, m, d = 8, 16, 32
    reg, num_iter = 0.05, 50
    XP = jax.random.normal(k1, (n, d), dtype=jnp.float32)
    XQ = jax.random.normal(k2, (m, d), dtype=jnp.float32) + 0.5

    T, PI = barycentric_mapping(XP, XQ, reg=reg, num_iter_sinkhorn=num_iter)
    jax.block_until_ready((T, PI))

    # shapes, finiteness, exact row marginals (last Sinkhorn update is the f/u step)
    assert T.shape == (n, d) and PI.shape == (n, m)
    assert bool(jnp.all(jnp.isfinite(T))) and bool(jnp.all(jnp.isfinite(PI)))
    assert jnp.allclose(jnp.sum(PI, axis=1), jnp.full((n,), 1.0 / n), atol=1e-3)

    # validate the stabilised linear-domain rewrite against a pure-JAX
    # log-domain Sinkhorn reference (ot.sinkhorn method='sinkhorn_log')
    p_vec = jnp.full((n,), 1.0 / n, dtype=jnp.float32)
    q_vec = jnp.full((m,), 1.0 / m, dtype=jnp.float32)
    C = jnp.sum((XP[:, None, :] - XQ[None, :, :]) ** 2, axis=-1)
    mr = -C / reg
    log_p_ref = jnp.log(p_vec)
    log_q_ref = jnp.log(q_vec)
    f = jnp.zeros((n,), jnp.float32)
    g = jnp.zeros((m,), jnp.float32)
    for _ in range(num_iter):
        g = log_q_ref - jax.scipy.special.logsumexp(mr + f[:, None], axis=0)
        f = log_p_ref - jax.scipy.special.logsumexp(mr + g[None, :], axis=1)
    PI_ref = jnp.exp(mr + f[:, None] + g[None, :])
    T_ref = jnp.dot(PI_ref / p_vec[:, None], XQ, precision=lax.Precision.HIGHEST)

    assert jnp.allclose(PI, PI_ref, atol=2e-3), float(jnp.max(jnp.abs(PI - PI_ref)))
    assert jnp.allclose(T, T_ref, atol=5e-2), float(jnp.max(jnp.abs(T - T_ref)))

    print("KERNEL_OK")
</pallas_src>

<mosaic_0001>
module attributes {stable_mosaic.version = 11 : i64} {
  func.func @_barycentric_kernel(%arg0: memref<8x128xf32, #tpu.memory_space<vmem>>, %arg1: memref<128x128xf32, #tpu.memory_space<vmem>>, %arg2: memref<8x1xf32, #tpu.memory_space<vmem>>, %arg3: memref<1x8xf32, #tpu.memory_space<vmem>>, %arg4: memref<1x128xf32, #tpu.memory_space<vmem>>, %arg5: memref<8x1xf32, #tpu.memory_space<vmem>>, %arg6: memref<1x128xf32, #tpu.memory_space<vmem>>, %arg7: memref<8x128xf32, #tpu.memory_space<vmem>>, %arg8: memref<8x128xf32, #tpu.memory_space<vmem>>) attributes {dimension_semantics = [], scalar_prefetch = 0 : i64, scratch_operands = 0 : i64, tpu.core_type = #tpu.core_type<tc>} {
    %c0 = arith.constant 0 : index
    %c0_0 = arith.constant 0 : index
    %0 = vector.load %arg0[%c0, %c0_0] : memref<8x128xf32, #tpu.memory_space<vmem>>, vector<8x128xf32>
    %c0_1 = arith.constant 0 : index
    %c0_2 = arith.constant 0 : index
    %1 = vector.load %arg1[%c0_1, %c0_2] : memref<128x128xf32, #tpu.memory_space<vmem>>, vector<128x128xf32>
    %c0_3 = arith.constant 0 : index
    %c0_4 = arith.constant 0 : index
    %2 = vector.load %arg2[%c0_3, %c0_4] : memref<8x1xf32, #tpu.memory_space<vmem>>, vector<8x1xf32>
    %c0_5 = arith.constant 0 : index
    %c0_6 = arith.constant 0 : index
    %3 = vector.load %arg3[%c0_5, %c0_6] : memref<1x8xf32, #tpu.memory_space<vmem>>, vector<1x8xf32>
    %c0_7 = arith.constant 0 : index
    %c0_8 = arith.constant 0 : index
    %4 = vector.load %arg4[%c0_7, %c0_8] : memref<1x128xf32, #tpu.memory_space<vmem>>, vector<1x128xf32>
    %c0_9 = arith.constant 0 : index
    %c0_10 = arith.constant 0 : index
    %5 = vector.load %arg5[%c0_9, %c0_10] : memref<8x1xf32, #tpu.memory_space<vmem>>, vector<8x1xf32>
    %c0_11 = arith.constant 0 : index
    %c0_12 = arith.constant 0 : index
    %6 = vector.load %arg6[%c0_11, %c0_12] : memref<1x128xf32, #tpu.memory_space<vmem>>, vector<1x128xf32>
    %7 = arith.mulf %0, %0 : vector<8x128xf32>
    %cst = arith.constant dense<0.000000e+00> : vector<8xf32>
    %8 = vector.multi_reduction <add>, %7, %cst [1] : vector<8x128xf32> to vector<8xf32>
    %9 = vector.shape_cast %8 : vector<8xf32> to vector<8x1xf32>
    %10 = arith.mulf %1, %1 : vector<128x128xf32>
    %cst_13 = arith.constant dense<0.000000e+00> : vector<128xf32>
    %11 = vector.multi_reduction <add>, %10, %cst_13 [1] : vector<128x128xf32> to vector<128xf32>
    %12 = vector.shape_cast %11 : vector<128xf32> to vector<128x1xf32>
    %cst_14 = arith.constant dense<0.000000e+00> : vector<8x128xf32>
    %13 = tpu.matmul %0, %1, %cst_14 {dimension_numbers = #tpu.dot_dimension_numbers<[1], [1], [0], [0], [0, 0, 1, 0], [], []>} : vector<8x128xf32>, vector<128x128xf32>, vector<8x128xf32> -> vector<8x128xf32>
    %14 = tpu.transpose %12, [1, 0] : vector<128x1xf32> -> vector<1x128xf32>
    %15 = vector.broadcast %9 : vector<8x1xf32> to vector<8x128xf32>
    %16 = vector.broadcast %14 : vector<1x128xf32> to vector<8x128xf32>
    %17 = arith.addf %15, %16 : vector<8x128xf32>
    %cst_15 = arith.constant 2.000000e+00 : f32
    %18 = vector.broadcast %cst_15 : f32 to vector<8x128xf32>
    %19 = arith.mulf %18, %13 : vector<8x128xf32>
    %20 = arith.subf %17, %19 : vector<8x128xf32>
    %cst_16 = arith.constant 0.000000e+00 : f32
    %21 = vector.broadcast %cst_16 : f32 to vector<8x128xf32>
    %22 = arith.maximumf %20, %21 : vector<8x128xf32>
    %cst_17 = arith.constant -2.000000e+01 : f32
    %23 = vector.broadcast %cst_17 : f32 to vector<8x128xf32>
    %24 = arith.mulf %22, %23 : vector<8x128xf32>
    %25 = vector.broadcast %5 : vector<8x1xf32> to vector<8x128xf32>
    %26 = arith.addf %24, %25 : vector<8x128xf32>
    %27 = vector.broadcast %6 : vector<1x128xf32> to vector<8x128xf32>
    %28 = arith.addf %26, %27 : vector<8x128xf32>
    %cst_18 = arith.constant 1.000000e-30 : f32
    %29 = vector.broadcast %cst_18 : f32 to vector<8x1xf32>
    %30 = arith.maximumf %2, %29 : vector<8x1xf32>
    %31 = math.log %30 : vector<8x1xf32>
    %32 = arith.addf %31, %5 : vector<8x1xf32>
    %cst_19 = arith.constant 1.000000e-30 : f32
    %33 = vector.broadcast %cst_19 : f32 to vector<1x128xf32>
    %34 = arith.maximumf %4, %33 : vector<1x128xf32>
    %35 = math.log %34 : vector<1x128xf32>
    %36 = arith.addf %35, %6 : vector<1x128xf32>
    %cst_20 = arith.constant 1.000000e+00 : f32
    %37 = vector.broadcast %cst_20 : f32 to vector<1x8xf32>
    %cst_21 = arith.constant 1.000000e+00 : f32
    %38 = vector.broadcast %cst_21 : f32 to vector<128x1xf32>
    %cst_22 = arith.constant dense<0xFF800000> : vector<128xf32>
    %39 = vector.multi_reduction <maximumf>, %28, %cst_22 [0] : vector<8x128xf32> to vector<128xf32>
    %40 = vector.shape_cast %39 : vector<128xf32> to vector<1x128xf32>
    %41 = vector.broadcast %40 : vector<1x128xf32> to vector<8x128xf32>
    %42 = arith.subf %28, %41 : vector<8x128xf32>
    %43 = math.exp %42 : vector<8x128xf32>
    %cst_23 = arith.constant dense<0.000000e+00> : vector<1x128xf32>
    %44 = tpu.matmul %37, %43, %cst_23 {dimension_numbers = #tpu.dot_dimension_numbers<[1], [0], [0], [1], [0, 0, 1, 1], [], []>} : vector<1x8xf32>, vector<8x128xf32>, vector<1x128xf32> -> vector<1x128xf32>
    %45 = math.log %44 : vector<1x128xf32>
    %46 = arith.addf %40, %45 : vector<1x128xf32>
    %47 = arith.subf %36, %46 : vector<1x128xf32>
    %48 = vector.broadcast %47 : vector<1x128xf32> to vector<8x128xf32>
    %49 = arith.addf %28, %48 : vector<8x128xf32>
    %cst_24 = arith.constant dense<0xFF800000> : vector<8xf32>
    %50 = vector.multi_reduction <maximumf>, %49, %cst_24 [1] : vector<8x128xf32> to vector<8xf32>
    %51 = vector.shape_cast %50 : vector<8xf32> to vector<8x1xf32>
    %52 = vector.broadcast %51 : vector<8x1xf32> to vector<8x128xf32>
    %53 = arith.subf %49, %52 : vector<8x128xf32>
    %54 = math.exp %53 : vector<8x128xf32>
    %cst_25 = arith.constant dense<0.000000e+00> : vector<8x1xf32>
    %55 = tpu.matmul %54, %38, %cst_25 {dimension_numbers = #tpu.dot_dimension_numbers<[1], [0], [0], [1], [0, 0, 1, 1], [], []>} : vector<8x128xf32>, vector<128x1xf32>, vector<8x1xf32> -> vector<8x1xf32>
    %56 = math.log %55 : vector<8x1xf32>
    %57 = arith.addf %51, %56 : vector<8x1xf32>
    %58 = arith.subf %32, %57 : vector<8x1xf32>
    %59 = arith.addf %58, %51 : vector<8x1xf32>
    %60 = math.exp %59 : vector<8x1xf32>
    %61 = vector.broadcast %60 : vector<8x1xf32> to vector<8x128xf32>
    %62 = arith.mulf %54, %61 : vector<8x128xf32>
    %cst_26 = arith.constant dense<0.000000e+00> : vector<1x128xf32>
    %63 = tpu.matmul %37, %62, %cst_26 {dimension_numbers = #tpu.dot_dimension_numbers<[1], [0], [0], [1], [0, 0, 1, 1], [], []>} : vector<1x8xf32>, vector<8x128xf32>, vector<1x128xf32> -> vector<1x128xf32>
    %cst_27 = arith.constant 1.000000e-30 : f32
    %64 = vector.broadcast %cst_27 : f32 to vector<1x128xf32>
    %65 = arith.maximumf %63, %64 : vector<1x128xf32>
    %66 = arith.divf %4, %65 : vector<1x128xf32>
    %cst_28 = arith.constant dense<0.000000e+00> : vector<1x8xf32>
    %67 = tpu.matmul %66, %62, %cst_28 {dimension_numbers = #tpu.dot_dimension_numbers<[1], [1], [0], [0], [0, 0, 1, 0], [], []>} : vector<1x128xf32>, vector<8x128xf32>, vector<1x8xf32> -> vector<1x8xf32>
    %cst_29 = arith.constant 1.000000e-30 : f32
    %68 = vector.broadcast %cst_29 : f32 to vector<1x8xf32>
    %69 = arith.maximumf %67, %68 : vector<1x8xf32>
    %70 = arith.divf %3, %69 : vector<1x8xf32>
    %cst_30 = arith.constant dense<0.000000e+00> : vector<1x128xf32>
    %71 = tpu.matmul %70, %62, %cst_30 {dimension_numbers = #tpu.dot_dimension_numbers<[1], [0], [0], [1], [0, 0, 1, 1], [], []>} : vector<1x8xf32>, vector<8x128xf32>, vector<1x128xf32> -> vector<1x128xf32>
    %cst_31 = arith.constant 1.000000e-30 : f32
    %72 = vector.broadcast %cst_31 : f32 to vector<1x128xf32>
    %73 = arith.maximumf %71, %72 : vector<1x128xf32>
    %74 = arith.divf %4, %73 : vector<1x128xf32>
    %cst_32 = arith.constant dense<0.000000e+00> : vector<1x8xf32>
    %75 = tpu.matmul %74, %62, %cst_32 {dimension_numbers = #tpu.dot_dimension_numbers<[1], [1], [0], [0], [0, 0, 1, 0], [], []>} : vector<1x128xf32>, vector<8x128xf32>, vector<1x8xf32> -> vector<1x8xf32>
    %cst_33 = arith.constant 1.000000e-30 : f32
    %76 = vector.broadcast %cst_33 : f32 to vector<1x8xf32>
    %77 = arith.maximumf %75, %76 : vector<1x8xf32>
    %78 = arith.divf %3, %77 : vector<1x8xf32>
    %cst_34 = arith.constant dense<0.000000e+00> : vector<1x128xf32>
    %79 = tpu.matmul %78, %62, %cst_34 {dimension_numbers = #tpu.dot_dimension_numbers<[1], [0], [0], [1], [0, 0, 1, 1], [], []>} : vector<1x8xf32>, vector<8x128xf32>, vector<1x128xf32> -> vector<1x128xf32>
    %cst_35 = arith.constant 1.000000e-30 : f32
    %80 = vector.broadcast %cst_35 : f32 to vector<1x128xf32>
    %81 = arith.maximumf %79, %80 : vector<1x128xf32>
    %82 = arith.divf %4, %81 : vector<1x128xf32>
    %cst_36 = arith.constant dense<0.000000e+00> : vector<1x8xf32>
    %83 = tpu.matmul %82, %62, %cst_36 {dimension_numbers = #tpu.dot_dimension_numbers<[1], [1], [0], [0], [0, 0, 1, 0], [], []>} : vector<1x128xf32>, vector<8x128xf32>, vector<1x8xf32> -> vector<1x8xf32>
    %cst_37 = arith.constant 1.000000e-30 : f32
    %84 = vector.broadcast %cst_37 : f32 to vector<1x8xf32>
    %85 = arith.maximumf %83, %84 : vector<1x8xf32>
    %86 = arith.divf %3, %85 : vector<1x8xf32>
    %cst_38 = arith.constant dense<0.000000e+00> : vector<1x128xf32>
    %87 = tpu.matmul %86, %62, %cst_38 {dimension_numbers = #tpu.dot_dimension_numbers<[1], [0], [0], [1], [0, 0, 1, 1], [], []>} : vector<1x8xf32>, vector<8x128xf32>, vector<1x128xf32> -> vector<1x128xf32>
    %cst_39 = arith.constant 1.000000e-30 : f32
    %88 = vector.broadcast %cst_39 : f32 to vector<1x128xf32>
    %89 = arith.maximumf %87, %88 : vector<1x128xf32>
    %90 = arith.divf %4, %89 : vector<1x128xf32>
    %cst_40 = arith.constant dense<0.000000e+00> : vector<1x8xf32>
    %91 = tpu.matmul %90, %62, %cst_40 {dimension_numbers = #tpu.dot_dimension_numbers<[1], [1], [0], [0], [0, 0, 1, 0], [], []>} : vector<1x128xf32>, vector<8x128xf32>, vector<1x8xf32> -> vector<1x8xf32>
    %cst_41 = arith.constant 1.000000e-30 : f32
    %92 = vector.broadcast %cst_41 : f32 to vector<1x8xf32>
    %93 = arith.maximumf %91, %92 : vector<1x8xf32>
    %94 = arith.divf %3, %93 : vector<1x8xf32>
    %cst_42 = arith.constant dense<0.000000e+00> : vector<1x128xf32>
    %95 = tpu.matmul %94, %62, %cst_42 {dimension_numbers = #tpu.dot_dimension_numbers<[1], [0], [0], [1], [0, 0, 1, 1], [], []>} : vector<1x8xf32>, vector<8x128xf32>, vector<1x128xf32> -> vector<1x128xf32>
    %cst_43 = arith.constant 1.000000e-30 : f32
    %96 = vector.broadcast %cst_43 : f32 to vector<1x128xf32>
    %97 = arith.maximumf %95, %96 : vector<1x128xf32>
    %98 = arith.divf %4, %97 : vector<1x128xf32>
    %cst_44 = arith.constant dense<0.000000e+00> : vector<8x1xf32>
    %99 = tpu.matmul %62, %98, %cst_44 {dimension_numbers = #tpu.dot_dimension_numbers<[1], [1], [0], [0], [0, 0, 1, 0], [], []>} : vector<8x128xf32>, vector<1x128xf32>, vector<8x1xf32> -> vector<8x1xf32>
    %cst_45 = arith.constant 1.000000e-30 : f32
    %100 = vector.broadcast %cst_45 : f32 to vector<8x1xf32>
    %101 = arith.maximumf %99, %100 : vector<8x1xf32>
    %102 = arith.divf %2, %101 : vector<8x1xf32>
    %103 = vector.broadcast %98 : vector<1x128xf32> to vector<8x128xf32>
    %104 = arith.mulf %62, %103 : vector<8x128xf32>
    %105 = vector.broadcast %102 : vector<8x1xf32> to vector<8x128xf32>
    %106 = arith.mulf %104, %105 : vector<8x128xf32>
    %cst_46 = arith.constant dense<0.000000e+00> : vector<1x128xf32>
    %107 = tpu.matmul %37, %106, %cst_46 {dimension_numbers = #tpu.dot_dimension_numbers<[1], [0], [0], [1], [0, 0, 1, 1], [], []>} : vector<1x8xf32>, vector<8x128xf32>, vector<1x128xf32> -> vector<1x128xf32>
    %cst_47 = arith.constant 1.000000e-30 : f32
    %108 = vector.broadcast %cst_47 : f32 to vector<1x128xf32>
    %109 = arith.maximumf %107, %108 : vector<1x128xf32>
    %110 = arith.divf %4, %109 : vector<1x128xf32>
    %cst_48 = arith.constant dense<0.000000e+00> : vector<1x8xf32>
    %111 = tpu.matmul %110, %106, %cst_48 {dimension_numbers = #tpu.dot_dimension_numbers<[1], [1], [0], [0], [0, 0, 1, 0], [], []>} : vector<1x128xf32>, vector<8x128xf32>, vector<1x8xf32> -> vector<1x8xf32>
    %cst_49 = arith.constant 1.000000e-30 : f32
    %112 = vector.broadcast %cst_49 : f32 to vector<1x8xf32>
    %113 = arith.maximumf %111, %112 : vector<1x8xf32>
    %114 = arith.divf %3, %113 : vector<1x8xf32>
    %cst_50 = arith.constant dense<0.000000e+00> : vector<1x128xf32>
    %115 = tpu.matmul %114, %106, %cst_50 {dimension_numbers = #tpu.dot_dimension_numbers<[1], [0], [0], [1], [0, 0, 1, 1], [], []>} : vector<1x8xf32>, vector<8x128xf32>, vector<1x128xf32> -> vector<1x128xf32>
    %cst_51 = arith.constant 1.000000e-30 : f32
    %116 = vector.broadcast %cst_51 : f32 to vector<1x128xf32>
    %117 = arith.maximumf %115, %116 : vector<1x128xf32>
    %118 = arith.divf %4, %117 : vector<1x128xf32>
    %cst_52 = arith.constant dense<0.000000e+00> : vector<1x8xf32>
    %119 = tpu.matmul %118, %106, %cst_52 {dimension_numbers = #tpu.dot_dimension_numbers<[1], [1], [0], [0], [0, 0, 1, 0], [], []>} : vector<1x128xf32>, vector<8x128xf32>, vector<1x8xf32> -> vector<1x8xf32>
    %cst_53 = arith.constant 1.000000e-30 : f32
    %120 = vector.broadcast %cst_53 : f32 to vector<1x8xf32>
    %121 = arith.maximumf %119, %120 : vector<1x8xf32>
    %122 = arith.divf %3, %121 : vector<1x8xf32>
    %cst_54 = arith.constant dense<0.000000e+00> : vector<1x128xf32>
    %123 = tpu.matmul %122, %106, %cst_54 {dimension_numbers = #tpu.dot_dimension_numbers<[1], [0], [0], [1], [0, 0, 1, 1], [], []>} : vector<1x8xf32>, vector<8x128xf32>, vector<1x128xf32> -> vector<1x128xf32>
    %cst_55 = arith.constant 1.000000e-30 : f32
    %124 = vector.broadcast %cst_55 : f32 to vector<1x128xf32>
    %125 = arith.maximumf %123, %124 : vector<1x128xf32>
    %126 = arith.divf %4, %125 : vector<1x128xf32>
    %cst_56 = arith.constant dense<0.000000e+00> : vector<1x8xf32>
    %127 = tpu.matmul %126, %106, %cst_56 {dimension_numbers = #tpu.dot_dimension_numbers<[1], [1], [0], [0], [0, 0, 1, 0], [], []>} : vector<1x128xf32>, vector<8x128xf32>, vector<1x8xf32> -> vector<1x8xf32>
    %cst_57 = arith.constant 1.000000e-30 : f32
    %128 = vector.broadcast %cst_57 : f32 to vector<1x8xf32>
    %129 = arith.maximumf %127, %128 : vector<1x8xf32>
    %130 = arith.divf %3, %129 : vector<1x8xf32>
    %cst_58 = arith.constant dense<0.000000e+00> : vector<1x128xf32>
    %131 = tpu.matmul %130, %106, %cst_58 {dimension_numbers = #tpu.dot_dimension_numbers<[1], [0], [0], [1], [0, 0, 1, 1], [], []>} : vector<1x8xf32>, vector<8x128xf32>, vector<1x128xf32> -> vector<1x128xf32>
    %cst_59 = arith.constant 1.000000e-30 : f32
    %132 = vector.broadcast %cst_59 : f32 to vector<1x128xf32>
    %133 = arith.maximumf %131, %132 : vector<1x128xf32>
    %134 = arith.divf %4, %133 : vector<1x128xf32>
    %cst_60 = arith.constant dense<0.000000e+00> : vector<1x8xf32>
    %135 = tpu.matmul %134, %106, %cst_60 {dimension_numbers = #tpu.dot_dimension_numbers<[1], [1], [0], [0], [0, 0, 1, 0], [], []>} : vector<1x128xf32>, vector<8x128xf32>, vector<1x8xf32> -> vector<1x8xf32>
    %cst_61 = arith.constant 1.000000e-30 : f32
    %136 = vector.broadcast %cst_61 : f32 to vector<1x8xf32>
    %137 = arith.maximumf %135, %136 : vector<1x8xf32>
    %138 = arith.divf %3, %137 : vector<1x8xf32>
    %cst_62 = arith.constant dense<0.000000e+00> : vector<1x128xf32>
    %139 = tpu.matmul %138, %106, %cst_62 {dimension_numbers = #tpu.dot_dimension_numbers<[1], [0], [0], [1], [0, 0, 1, 1], [], []>} : vector<1x8xf32>, vector<8x128xf32>, vector<1x128xf32> -> vector<1x128xf32>
    %cst_63 = arith.constant 1.000000e-30 : f32
    %140 = vector.broadcast %cst_63 : f32 to vector<1x128xf32>
    %141 = arith.maximumf %139, %140 : vector<1x128xf32>
    %142 = arith.divf %4, %141 : vector<1x128xf32>
    %cst_64 = arith.constant dense<0.000000e+00> : vector<8x1xf32>
    %143 = tpu.matmul %106, %142, %cst_64 {dimension_numbers = #tpu.dot_dimension_numbers<[1], [1], [0], [0], [0, 0, 1, 0], [], []>} : vector<8x128xf32>, vector<1x128xf32>, vector<8x1xf32> -> vector<8x1xf32>
    %cst_65 = arith.constant 1.000000e-30 : f32
    %144 = vector.broadcast %cst_65 : f32 to vector<8x1xf32>
    %145 = arith.maximumf %143, %144 : vector<8x1xf32>
    %146 = arith.divf %2, %145 : vector<8x1xf32>
    %147 = vector.broadcast %142 : vector<1x128xf32> to vector<8x128xf32>
    %148 = arith.mulf %106, %147 : vector<8x128xf32>
    %149 = vector.broadcast %146 : vector<8x1xf32> to vector<8x128xf32>
    %150 = arith.mulf %148, %149 : vector<8x128xf32>
    %cst_66 = arith.constant dense<0.000000e+00> : vector<1x128xf32>
    %151 = tpu.matmul %37, %150, %cst_66 {dimension_numbers = #tpu.dot_dimension_numbers<[1], [0], [0], [1], [0, 0, 1, 1], [], []>} : vector<1x8xf32>, vector<8x128xf32>, vector<1x128xf32> -> vector<1x128xf32>
    %cst_67 = arith.constant 1.000000e-30 : f32
    %152 = vector.broadcast %cst_67 : f32 to vector<1x128xf32>
    %153 = arith.maximumf %151, %152 : vector<1x128xf32>
    %154 = arith.divf %4, %153 : vector<1x128xf32>
    %cst_68 = arith.constant dense<0.000000e+00> : vector<1x8xf32>
    %155 = tpu.matmul %154, %150, %cst_68 {dimension_numbers = #tpu.dot_dimension_numbers<[1], [1], [0], [0], [0, 0, 1, 0], [], []>} : vector<1x128xf32>, vector<8x128xf32>, vector<1x8xf32> -> vector<1x8xf32>
    %cst_69 = arith.constant 1.000000e-30 : f32
    %156 = vector.broadcast %cst_69 : f32 to vector<1x8xf32>
    %157 = arith.maximumf %155, %156 : vector<1x8xf32>
    %158 = arith.divf %3, %157 : vector<1x8xf32>
    %cst_70 = arith.constant dense<0.000000e+00> : vector<1x128xf32>
    %159 = tpu.matmul %158, %150, %cst_70 {dimension_numbers = #tpu.dot_dimension_numbers<[1], [0], [0], [1], [0, 0, 1, 1], [], []>} : vector<1x8xf32>, vector<8x128xf32>, vector<1x128xf32> -> vector<1x128xf32>
    %cst_71 = arith.constant 1.000000e-30 : f32
    %160 = vector.broadcast %cst_71 : f32 to vector<1x128xf32>
    %161 = arith.maximumf %159, %160 : vector<1x128xf32>
    %162 = arith.divf %4, %161 : vector<1x128xf32>
    %cst_72 = arith.constant dense<0.000000e+00> : vector<1x8xf32>
    %163 = tpu.matmul %162, %150, %cst_72 {dimension_numbers = #tpu.dot_dimension_numbers<[1], [1], [0], [0], [0, 0, 1, 0], [], []>} : vector<1x128xf32>, vector<8x128xf32>, vector<1x8xf32> -> vector<1x8xf32>
    %cst_73 = arith.constant 1.000000e-30 : f32
    %164 = vector.broadcast %cst_73 : f32 to vector<1x8xf32>
    %165 = arith.maximumf %163, %164 : vector<1x8xf32>
    %166 = arith.divf %3, %165 : vector<1x8xf32>
    %cst_74 = arith.constant dense<0.000000e+00> : vector<1x128xf32>
    %167 = tpu.matmul %166, %150, %cst_74 {dimension_numbers = #tpu.dot_dimension_numbers<[1], [0], [0], [1], [0, 0, 1, 1], [], []>} : vector<1x8xf32>, vector<8x128xf32>, vector<1x128xf32> -> vector<1x128xf32>
    %cst_75 = arith.constant 1.000000e-30 : f32
    %168 = vector.broadcast %cst_75 : f32 to vector<1x128xf32>
    %169 = arith.maximumf %167, %168 : vector<1x128xf32>
    %170 = arith.divf %4, %169 : vector<1x128xf32>
    %cst_76 = arith.constant dense<0.000000e+00> : vector<1x8xf32>
    %171 = tpu.matmul %170, %150, %cst_76 {dimension_numbers = #tpu.dot_dimension_numbers<[1], [1], [0], [0], [0, 0, 1, 0], [], []>} : vector<1x128xf32>, vector<8x128xf32>, vector<1x8xf32> -> vector<1x8xf32>
    %cst_77 = arith.constant 1.000000e-30 : f32
    %172 = vector.broadcast %cst_77 : f32 to vector<1x8xf32>
    %173 = arith.maximumf %171, %172 : vector<1x8xf32>
    %174 = arith.divf %3, %173 : vector<1x8xf32>
    %cst_78 = arith.constant dense<0.000000e+00> : vector<1x128xf32>
    %175 = tpu.matmul %174, %150, %cst_78 {dimension_numbers = #tpu.dot_dimension_numbers<[1], [0], [0], [1], [0, 0, 1, 1], [], []>} : vector<1x8xf32>, vector<8x128xf32>, vector<1x128xf32> -> vector<1x128xf32>
    %cst_79 = arith.constant 1.000000e-30 : f32
    %176 = vector.broadcast %cst_79 : f32 to vector<1x128xf32>
    %177 = arith.maximumf %175, %176 : vector<1x128xf32>
    %178 = arith.divf %4, %177 : vector<1x128xf32>
    %cst_80 = arith.constant dense<0.000000e+00> : vector<1x8xf32>
    %179 = tpu.matmul %178, %150, %cst_80 {dimension_numbers = #tpu.dot_dimension_numbers<[1], [1], [0], [0], [0, 0, 1, 0], [], []>} : vector<1x128xf32>, vector<8x128xf32>, vector<1x8xf32> -> vector<1x8xf32>
    %cst_81 = arith.constant 1.000000e-30 : f32
    %180 = vector.broadcast %cst_81 : f32 to vector<1x8xf32>
    %181 = arith.maximumf %179, %180 : vector<1x8xf32>
    %182 = arith.divf %3, %181 : vector<1x8xf32>
    %cst_82 = arith.constant dense<0.000000e+00> : vector<1x128xf32>
    %183 = tpu.matmul %182, %150, %cst_82 {dimension_numbers = #tpu.dot_dimension_numbers<[1], [0], [0], [1], [0, 0, 1, 1], [], []>} : vector<1x8xf32>, vector<8x128xf32>, vector<1x128xf32> -> vector<1x128xf32>
    %cst_83 = arith.constant 1.000000e-30 : f32
    %184 = vector.broadcast %cst_83 : f32 to vector<1x128xf32>
    %185 = arith.maximumf %183, %184 : vector<1x128xf32>
    %186 = arith.divf %4, %185 : vector<1x128xf32>
    %cst_84 = arith.constant dense<0.000000e+00> : vector<8x1xf32>
    %187 = tpu.matmul %150, %186, %cst_84 {dimension_numbers = #tpu.dot_dimension_numbers<[1], [1], [0], [0], [0, 0, 1, 0], [], []>} : vector<8x128xf32>, vector<1x128xf32>, vector<8x1xf32> -> vector<8x1xf32>
    %cst_85 = arith.constant 1.000000e-30 : f32
    %188 = vector.broadcast %cst_85 : f32 to vector<8x1xf32>
    %189 = arith.maximumf %187, %188 : vector<8x1xf32>
    %190 = arith.divf %2, %189 : vector<8x1xf32>
    %191 = vector.broadcast %186 : vector<1x128xf32> to vector<8x128xf32>
    %192 = arith.mulf %150, %191 : vector<8x128xf32>
    %193 = vector.broadcast %190 : vector<8x1xf32> to vector<8x128xf32>
    %194 = arith.mulf %192, %193 : vector<8x128xf32>
    %cst_86 = arith.constant dense<0.000000e+00> : vector<1x128xf32>
    %195 = tpu.matmul %37, %194, %cst_86 {dimension_numbers = #tpu.dot_dimension_numbers<[1], [0], [0], [1], [0, 0, 1, 1], [], []>} : vector<1x8xf32>, vector<8x128xf32>, vector<1x128xf32> -> vector<1x128xf32>
    %cst_87 = arith.constant 1.000000e-30 : f32
    %196 = vector.broadcast %cst_87 : f32 to vector<1x128xf32>
    %197 = arith.maximumf %195, %196 : vector<1x128xf32>
    %198 = arith.divf %4, %197 : vector<1x128xf32>
    %cst_88 = arith.constant dense<0.000000e+00> : vector<1x8xf32>
    %199 = tpu.matmul %198, %194, %cst_88 {dimension_numbers = #tpu.dot_dimension_numbers<[1], [1], [0], [0], [0, 0, 1, 0], [], []>} : vector<1x128xf32>, vector<8x128xf32>, vector<1x8xf32> -> vector<1x8xf32>
    %cst_89 = arith.constant 1.000000e-30 : f32
    %200 = vector.broadcast %cst_89 : f32 to vector<1x8xf32>
    %201 = arith.maximumf %199, %200 : vector<1x8xf32>
    %202 = arith.divf %3, %201 : vector<1x8xf32>
    %cst_90 = arith.constant dense<0.000000e+00> : vector<1x128xf32>
    %203 = tpu.matmul %202, %194, %cst_90 {dimension_numbers = #tpu.dot_dimension_numbers<[1], [0], [0], [1], [0, 0, 1, 1], [], []>} : vector<1x8xf32>, vector<8x128xf32>, vector<1x128xf32> -> vector<1x128xf32>
    %cst_91 = arith.constant 1.000000e-30 : f32
    %204 = vector.broadcast %cst_91 : f32 to vector<1x128xf32>
    %205 = arith.maximumf %203, %204 : vector<1x128xf32>
    %206 = arith.divf %4, %205 : vector<1x128xf32>
    %cst_92 = arith.constant dense<0.000000e+00> : vector<1x8xf32>
    %207 = tpu.matmul %206, %194, %cst_92 {dimension_numbers = #tpu.dot_dimension_numbers<[1], [1], [0], [0], [0, 0, 1, 0], [], []>} : vector<1x128xf32>, vector<8x128xf32>, vector<1x8xf32> -> vector<1x8xf32>
    %cst_93 = arith.constant 1.000000e-30 : f32
    %208 = vector.broadcast %cst_93 : f32 to vector<1x8xf32>
    %209 = arith.maximumf %207, %208 : vector<1x8xf32>
    %210 = arith.divf %3, %209 : vector<1x8xf32>
    %cst_94 = arith.constant dense<0.000000e+00> : vector<1x128xf32>
    %211 = tpu.matmul %210, %194, %cst_94 {dimension_numbers = #tpu.dot_dimension_numbers<[1], [0], [0], [1], [0, 0, 1, 1], [], []>} : vector<1x8xf32>, vector<8x128xf32>, vector<1x128xf32> -> vector<1x128xf32>
    %cst_95 = arith.constant 1.000000e-30 : f32
    %212 = vector.broadcast %cst_95 : f32 to vector<1x128xf32>
    %213 = arith.maximumf %211, %212 : vector<1x128xf32>
    %214 = arith.divf %4, %213 : vector<1x128xf32>
    %cst_96 = arith.constant dense<0.000000e+00> : vector<1x8xf32>
    %215 = tpu.matmul %214, %194, %cst_96 {dimension_numbers = #tpu.dot_dimension_numbers<[1], [1], [0], [0], [0, 0, 1, 0], [], []>} : vector<1x128xf32>, vector<8x128xf32>, vector<1x8xf32> -> vector<1x8xf32>
    %cst_97 = arith.constant 1.000000e-30 : f32
    %216 = vector.broadcast %cst_97 : f32 to vector<1x8xf32>
    %217 = arith.maximumf %215, %216 : vector<1x8xf32>
    %218 = arith.divf %3, %217 : vector<1x8xf32>
    %cst_98 = arith.constant dense<0.000000e+00> : vector<1x128xf32>
    %219 = tpu.matmul %218, %194, %cst_98 {dimension_numbers = #tpu.dot_dimension_numbers<[1], [0], [0], [1], [0, 0, 1, 1], [], []>} : vector<1x8xf32>, vector<8x128xf32>, vector<1x128xf32> -> vector<1x128xf32>
    %cst_99 = arith.constant 1.000000e-30 : f32
    %220 = vector.broadcast %cst_99 : f32 to vector<1x128xf32>
    %221 = arith.maximumf %219, %220 : vector<1x128xf32>
    %222 = arith.divf %4, %221 : vector<1x128xf32>
    %cst_100 = arith.constant dense<0.000000e+00> : vector<1x8xf32>
    %223 = tpu.matmul %222, %194, %cst_100 {dimension_numbers = #tpu.dot_dimension_numbers<[1], [1], [0], [0], [0, 0, 1, 0], [], []>} : vector<1x128xf32>, vector<8x128xf32>, vector<1x8xf32> -> vector<1x8xf32>
    %cst_101 = arith.constant 1.000000e-30 : f32
    %224 = vector.broadcast %cst_101 : f32 to vector<1x8xf32>
    %225 = arith.maximumf %223, %224 : vector<1x8xf32>
    %226 = arith.divf %3, %225 : vector<1x8xf32>
    %cst_102 = arith.constant dense<0.000000e+00> : vector<1x128xf32>
    %227 = tpu.matmul %226, %194, %cst_102 {dimension_numbers = #tpu.dot_dimension_numbers<[1], [0], [0], [1], [0, 0, 1, 1], [], []>} : vector<1x8xf32>, vector<8x128xf32>, vector<1x128xf32> -> vector<1x128xf32>
    %cst_103 = arith.constant 1.000000e-30 : f32
    %228 = vector.broadcast %cst_103 : f32 to vector<1x128xf32>
    %229 = arith.maximumf %227, %228 : vector<1x128xf32>
    %230 = arith.divf %4, %229 : vector<1x128xf32>
    %cst_104 = arith.constant dense<0.000000e+00> : vector<8x1xf32>
    %231 = tpu.matmul %194, %230, %cst_104 {dimension_numbers = #tpu.dot_dimension_numbers<[1], [1], [0], [0], [0, 0, 1, 0], [], []>} : vector<8x128xf32>, vector<1x128xf32>, vector<8x1xf32> -> vector<8x1xf32>
    %cst_105 = arith.constant 1.000000e-30 : f32
    %232 = vector.broadcast %cst_105 : f32 to vector<8x1xf32>
    %233 = arith.maximumf %231, %232 : vector<8x1xf32>
    %234 = arith.divf %2, %233 : vector<8x1xf32>
    %235 = vector.broadcast %230 : vector<1x128xf32> to vector<8x128xf32>
    %236 = arith.mulf %194, %235 : vector<8x128xf32>
    %237 = vector.broadcast %234 : vector<8x1xf32> to vector<8x128xf32>
    %238 = arith.mulf %236, %237 : vector<8x128xf32>
    %cst_106 = arith.constant dense<0.000000e+00> : vector<1x128xf32>
    %239 = tpu.matmul %37, %238, %cst_106 {dimension_numbers = #tpu.dot_dimension_numbers<[1], [0], [0], [1], [0, 0, 1, 1], [], []>} : vector<1x8xf32>, vector<8x128xf32>, vector<1x128xf32> -> vector<1x128xf32>
    %cst_107 = arith.constant 1.000000e-30 : f32
    %240 = vector.broadcast %cst_107 : f32 to vector<1x128xf32>
    %241 = arith.maximumf %239, %240 : vector<1x128xf32>
    %242 = arith.divf %4, %241 : vector<1x128xf32>
    %cst_108 = arith.constant dense<0.000000e+00> : vector<1x8xf32>
    %243 = tpu.matmul %242, %238, %cst_108 {dimension_numbers = #tpu.dot_dimension_numbers<[1], [1], [0], [0], [0, 0, 1, 0], [], []>} : vector<1x128xf32>, vector<8x128xf32>, vector<1x8xf32> -> vector<1x8xf32>
    %cst_109 = arith.constant 1.000000e-30 : f32
    %244 = vector.broadcast %cst_109 : f32 to vector<1x8xf32>
    %245 = arith.maximumf %243, %244 : vector<1x8xf32>
    %246 = arith.divf %3, %245 : vector<1x8xf32>
    %cst_110 = arith.constant dense<0.000000e+00> : vector<1x128xf32>
    %247 = tpu.matmul %246, %238, %cst_110 {dimension_numbers = #tpu.dot_dimension_numbers<[1], [0], [0], [1], [0, 0, 1, 1], [], []>} : vector<1x8xf32>, vector<8x128xf32>, vector<1x128xf32> -> vector<1x128xf32>
    %cst_111 = arith.constant 1.000000e-30 : f32
    %248 = vector.broadcast %cst_111 : f32 to vector<1x128xf32>
    %249 = arith.maximumf %247, %248 : vector<1x128xf32>
    %250 = arith.divf %4, %249 : vector<1x128xf32>
    %cst_112 = arith.constant dense<0.000000e+00> : vector<1x8xf32>
    %251 = tpu.matmul %250, %238, %cst_112 {dimension_numbers = #tpu.dot_dimension_numbers<[1], [1], [0], [0], [0, 0, 1, 0], [], []>} : vector<1x128xf32>, vector<8x128xf32>, vector<1x8xf32> -> vector<1x8xf32>
    %cst_113 = arith.constant 1.000000e-30 : f32
    %252 = vector.broadcast %cst_113 : f32 to vector<1x8xf32>
    %253 = arith.maximumf %251, %252 : vector<1x8xf32>
    %254 = arith.divf %3, %253 : vector<1x8xf32>
    %cst_114 = arith.constant dense<0.000000e+00> : vector<1x128xf32>
    %255 = tpu.matmul %254, %238, %cst_114 {dimension_numbers = #tpu.dot_dimension_numbers<[1], [0], [0], [1], [0, 0, 1, 1], [], []>} : vector<1x8xf32>, vector<8x128xf32>, vector<1x128xf32> -> vector<1x128xf32>
    %cst_115 = arith.constant 1.000000e-30 : f32
    %256 = vector.broadcast %cst_115 : f32 to vector<1x128xf32>
    %257 = arith.maximumf %255, %256 : vector<1x128xf32>
    %258 = arith.divf %4, %257 : vector<1x128xf32>
    %cst_116 = arith.constant dense<0.000000e+00> : vector<1x8xf32>
    %259 = tpu.matmul %258, %238, %cst_116 {dimension_numbers = #tpu.dot_dimension_numbers<[1], [1], [0], [0], [0, 0, 1, 0], [], []>} : vector<1x128xf32>, vector<8x128xf32>, vector<1x8xf32> -> vector<1x8xf32>
    %cst_117 = arith.constant 1.000000e-30 : f32
    %260 = vector.broadcast %cst_117 : f32 to vector<1x8xf32>
    %261 = arith.maximumf %259, %260 : vector<1x8xf32>
    %262 = arith.divf %3, %261 : vector<1x8xf32>
    %cst_118 = arith.constant dense<0.000000e+00> : vector<1x128xf32>
    %263 = tpu.matmul %262, %238, %cst_118 {dimension_numbers = #tpu.dot_dimension_numbers<[1], [0], [0], [1], [0, 0, 1, 1], [], []>} : vector<1x8xf32>, vector<8x128xf32>, vector<1x128xf32> -> vector<1x128xf32>
    %cst_119 = arith.constant 1.000000e-30 : f32
    %264 = vector.broadcast %cst_119 : f32 to vector<1x128xf32>
    %265 = arith.maximumf %263, %264 : vector<1x128xf32>
    %266 = arith.divf %4, %265 : vector<1x128xf32>
    %cst_120 = arith.constant dense<0.000000e+00> : vector<1x8xf32>
    %267 = tpu.matmul %266, %238, %cst_120 {dimension_numbers = #tpu.dot_dimension_numbers<[1], [1], [0], [0], [0, 0, 1, 0], [], []>} : vector<1x128xf32>, vector<8x128xf32>, vector<1x8xf32> -> vector<1x8xf32>
    %cst_121 = arith.constant 1.000000e-30 : f32
    %268 = vector.broadcast %cst_121 : f32 to vector<1x8xf32>
    %269 = arith.maximumf %267, %268 : vector<1x8xf32>
    %270 = arith.divf %3, %269 : vector<1x8xf32>
    %cst_122 = arith.constant dense<0.000000e+00> : vector<1x128xf32>
    %271 = tpu.matmul %270, %238, %cst_122 {dimension_numbers = #tpu.dot_dimension_numbers<[1], [0], [0], [1], [0, 0, 1, 1], [], []>} : vector<1x8xf32>, vector<8x128xf32>, vector<1x128xf32> -> vector<1x128xf32>
    %cst_123 = arith.constant 1.000000e-30 : f32
    %272 = vector.broadcast %cst_123 : f32 to vector<1x128xf32>
    %273 = arith.maximumf %271, %272 : vector<1x128xf32>
    %274 = arith.divf %4, %273 : vector<1x128xf32>
    %cst_124 = arith.constant dense<0.000000e+00> : vector<8x1xf32>
    %275 = tpu.matmul %238, %274, %cst_124 {dimension_numbers = #tpu.dot_dimension_numbers<[1], [1], [0], [0], [0, 0, 1, 0], [], []>} : vector<8x128xf32>, vector<1x128xf32>, vector<8x1xf32> -> vector<8x1xf32>
    %cst_125 = arith.constant 1.000000e-30 : f32
    %276 = vector.broadcast %cst_125 : f32 to vector<8x1xf32>
    %277 = arith.maximumf %275, %276 : vector<8x1xf32>
    %278 = arith.divf %2, %277 : vector<8x1xf32>
    %279 = vector.broadcast %274 : vector<1x128xf32> to vector<8x128xf32>
    %280 = arith.mulf %238, %279 : vector<8x128xf32>
    %281 = vector.broadcast %278 : vector<8x1xf32> to vector<8x128xf32>
    %282 = arith.mulf %280, %281 : vector<8x128xf32>
    %cst_126 = arith.constant dense<0.000000e+00> : vector<1x128xf32>
    %283 = tpu.matmul %37, %282, %cst_126 {dimension_numbers = #tpu.dot_dimension_numbers<[1], [0], [0], [1], [0, 0, 1, 1], [], []>} : vector<1x8xf32>, vector<8x128xf32>, vector<1x128xf32> -> vector<1x128xf32>
    %cst_127 = arith.constant 1.000000e-30 : f32
    %284 = vector.broadcast %cst_127 : f32 to vector<1x128xf32>
    %285 = arith.maximumf %283, %284 : vector<1x128xf32>
    %286 = arith.divf %4, %285 : vector<1x128xf32>
    %cst_128 = arith.constant dense<0.000000e+00> : vector<1x8xf32>
    %287 = tpu.matmul %286, %282, %cst_128 {dimension_numbers = #tpu.dot_dimension_numbers<[1], [1], [0], [0], [0, 0, 1, 0], [], []>} : vector<1x128xf32>, vector<8x128xf32>, vector<1x8xf32> -> vector<1x8xf32>
    %cst_129 = arith.constant 1.000000e-30 : f32
    %288 = vector.broadcast %cst_129 : f32 to vector<1x8xf32>
    %289 = arith.maximumf %287, %288 : vector<1x8xf32>
    %290 = arith.divf %3, %289 : vector<1x8xf32>
    %cst_130 = arith.constant dense<0.000000e+00> : vector<1x128xf32>
    %291 = tpu.matmul %290, %282, %cst_130 {dimension_numbers = #tpu.dot_dimension_numbers<[1], [0], [0], [1], [0, 0, 1, 1], [], []>} : vector<1x8xf32>, vector<8x128xf32>, vector<1x128xf32> -> vector<1x128xf32>
    %cst_131 = arith.constant 1.000000e-30 : f32
    %292 = vector.broadcast %cst_131 : f32 to vector<1x128xf32>
    %293 = arith.maximumf %291, %292 : vector<1x128xf32>
    %294 = arith.divf %4, %293 : vector<1x128xf32>
    %cst_132 = arith.constant dense<0.000000e+00> : vector<1x8xf32>
    %295 = tpu.matmul %294, %282, %cst_132 {dimension_numbers = #tpu.dot_dimension_numbers<[1], [1], [0], [0], [0, 0, 1, 0], [], []>} : vector<1x128xf32>, vector<8x128xf32>, vector<1x8xf32> -> vector<1x8xf32>
    %cst_133 = arith.constant 1.000000e-30 : f32
    %296 = vector.broadcast %cst_133 : f32 to vector<1x8xf32>
    %297 = arith.maximumf %295, %296 : vector<1x8xf32>
    %298 = arith.divf %3, %297 : vector<1x8xf32>
    %cst_134 = arith.constant dense<0.000000e+00> : vector<1x128xf32>
    %299 = tpu.matmul %298, %282, %cst_134 {dimension_numbers = #tpu.dot_dimension_numbers<[1], [0], [0], [1], [0, 0, 1, 1], [], []>} : vector<1x8xf32>, vector<8x128xf32>, vector<1x128xf32> -> vector<1x128xf32>
    %cst_135 = arith.constant 1.000000e-30 : f32
    %300 = vector.broadcast %cst_135 : f32 to vector<1x128xf32>
    %301 = arith.maximumf %299, %300 : vector<1x128xf32>
    %302 = arith.divf %4, %301 : vector<1x128xf32>
    %cst_136 = arith.constant dense<0.000000e+00> : vector<1x8xf32>
    %303 = tpu.matmul %302, %282, %cst_136 {dimension_numbers = #tpu.dot_dimension_numbers<[1], [1], [0], [0], [0, 0, 1, 0], [], []>} : vector<1x128xf32>, vector<8x128xf32>, vector<1x8xf32> -> vector<1x8xf32>
    %cst_137 = arith.constant 1.000000e-30 : f32
    %304 = vector.broadcast %cst_137 : f32 to vector<1x8xf32>
    %305 = arith.maximumf %303, %304 : vector<1x8xf32>
    %306 = arith.divf %3, %305 : vector<1x8xf32>
    %cst_138 = arith.constant dense<0.000000e+00> : vector<1x128xf32>
    %307 = tpu.matmul %306, %282, %cst_138 {dimension_numbers = #tpu.dot_dimension_numbers<[1], [0], [0], [1], [0, 0, 1, 1], [], []>} : vector<1x8xf32>, vector<8x128xf32>, vector<1x128xf32> -> vector<1x128xf32>
    %cst_139 = arith.constant 1.000000e-30 : f32
    %308 = vector.broadcast %cst_139 : f32 to vector<1x128xf32>
    %309 = arith.maximumf %307, %308 : vector<1x128xf32>
    %310 = arith.divf %4, %309 : vector<1x128xf32>
    %cst_140 = arith.constant dense<0.000000e+00> : vector<1x8xf32>
    %311 = tpu.matmul %310, %282, %cst_140 {dimension_numbers = #tpu.dot_dimension_numbers<[1], [1], [0], [0], [0, 0, 1, 0], [], []>} : vector<1x128xf32>, vector<8x128xf32>, vector<1x8xf32> -> vector<1x8xf32>
    %cst_141 = arith.constant 1.000000e-30 : f32
    %312 = vector.broadcast %cst_141 : f32 to vector<1x8xf32>
    %313 = arith.maximumf %311, %312 : vector<1x8xf32>
    %314 = arith.divf %3, %313 : vector<1x8xf32>
    %cst_142 = arith.constant dense<0.000000e+00> : vector<1x128xf32>
    %315 = tpu.matmul %314, %282, %cst_142 {dimension_numbers = #tpu.dot_dimension_numbers<[1], [0], [0], [1], [0, 0, 1, 1], [], []>} : vector<1x8xf32>, vector<8x128xf32>, vector<1x128xf32> -> vector<1x128xf32>
    %cst_143 = arith.constant 1.000000e-30 : f32
    %316 = vector.broadcast %cst_143 : f32 to vector<1x128xf32>
    %317 = arith.maximumf %315, %316 : vector<1x128xf32>
    %318 = arith.divf %4, %317 : vector<1x128xf32>
    %cst_144 = arith.constant dense<0.000000e+00> : vector<8x1xf32>
    %319 = tpu.matmul %282, %318, %cst_144 {dimension_numbers = #tpu.dot_dimension_numbers<[1], [1], [0], [0], [0, 0, 1, 0], [], []>} : vector<8x128xf32>, vector<1x128xf32>, vector<8x1xf32> -> vector<8x1xf32>
    %cst_145 = arith.constant 1.000000e-30 : f32
    %320 = vector.broadcast %cst_145 : f32 to vector<8x1xf32>
    %321 = arith.maximumf %319, %320 : vector<8x1xf32>
    %322 = arith.divf %2, %321 : vector<8x1xf32>
    %323 = vector.broadcast %318 : vector<1x128xf32> to vector<8x128xf32>
    %324 = arith.mulf %282, %323 : vector<8x128xf32>
    %325 = vector.broadcast %322 : vector<8x1xf32> to vector<8x128xf32>
    %326 = arith.mulf %324, %325 : vector<8x128xf32>
    %cst_146 = arith.constant dense<0.000000e+00> : vector<1x128xf32>
    %327 = tpu.matmul %37, %326, %cst_146 {dimension_numbers = #tpu.dot_dimension_numbers<[1], [0], [0], [1], [0, 0, 1, 1], [], []>} : vector<1x8xf32>, vector<8x128xf32>, vector<1x128xf32> -> vector<1x128xf32>
    %cst_147 = arith.constant 1.000000e-30 : f32
    %328 = vector.broadcast %cst_147 : f32 to vector<1x128xf32>
    %329 = arith.maximumf %327, %328 : vector<1x128xf32>
    %330 = arith.divf %4, %329 : vector<1x128xf32>
    %cst_148 = arith.constant dense<0.000000e+00> : vector<1x8xf32>
    %331 = tpu.matmul %330, %326, %cst_148 {dimension_numbers = #tpu.dot_dimension_numbers<[1], [1], [0], [0], [0, 0, 1, 0], [], []>} : vector<1x128xf32>, vector<8x128xf32>, vector<1x8xf32> -> vector<1x8xf32>
    %cst_149 = arith.constant 1.000000e-30 : f32
    %332 = vector.broadcast %cst_149 : f32 to vector<1x8xf32>
    %333 = arith.maximumf %331, %332 : vector<1x8xf32>
    %334 = arith.divf %3, %333 : vector<1x8xf32>
    %cst_150 = arith.constant dense<0.000000e+00> : vector<1x128xf32>
    %335 = tpu.matmul %334, %326, %cst_150 {dimension_numbers = #tpu.dot_dimension_numbers<[1], [0], [0], [1], [0, 0, 1, 1], [], []>} : vector<1x8xf32>, vector<8x128xf32>, vector<1x128xf32> -> vector<1x128xf32>
    %cst_151 = arith.constant 1.000000e-30 : f32
    %336 = vector.broadcast %cst_151 : f32 to vector<1x128xf32>
    %337 = arith.maximumf %335, %336 : vector<1x128xf32>
    %338 = arith.divf %4, %337 : vector<1x128xf32>
    %cst_152 = arith.constant dense<0.000000e+00> : vector<1x8xf32>
    %339 = tpu.matmul %338, %326, %cst_152 {dimension_numbers = #tpu.dot_dimension_numbers<[1], [1], [0], [0], [0, 0, 1, 0], [], []>} : vector<1x128xf32>, vector<8x128xf32>, vector<1x8xf32> -> vector<1x8xf32>
    %cst_153 = arith.constant 1.000000e-30 : f32
    %340 = vector.broadcast %cst_153 : f32 to vector<1x8xf32>
    %341 = arith.maximumf %339, %340 : vector<1x8xf32>
    %342 = arith.divf %3, %341 : vector<1x8xf32>
    %cst_154 = arith.constant dense<0.000000e+00> : vector<1x128xf32>
    %343 = tpu.matmul %342, %326, %cst_154 {dimension_numbers = #tpu.dot_dimension_numbers<[1], [0], [0], [1], [0, 0, 1, 1], [], []>} : vector<1x8xf32>, vector<8x128xf32>, vector<1x128xf32> -> vector<1x128xf32>
    %cst_155 = arith.constant 1.000000e-30 : f32
    %344 = vector.broadcast %cst_155 : f32 to vector<1x128xf32>
    %345 = arith.maximumf %343, %344 : vector<1x128xf32>
    %346 = arith.divf %4, %345 : vector<1x128xf32>
    %cst_156 = arith.constant dense<0.000000e+00> : vector<1x8xf32>
    %347 = tpu.matmul %346, %326, %cst_156 {dimension_numbers = #tpu.dot_dimension_numbers<[1], [1], [0], [0], [0, 0, 1, 0], [], []>} : vector<1x128xf32>, vector<8x128xf32>, vector<1x8xf32> -> vector<1x8xf32>
    %cst_157 = arith.constant 1.000000e-30 : f32
    %348 = vector.broadcast %cst_157 : f32 to vector<1x8xf32>
    %349 = arith.maximumf %347, %348 : vector<1x8xf32>
    %350 = arith.divf %3, %349 : vector<1x8xf32>
    %cst_158 = arith.constant dense<0.000000e+00> : vector<1x128xf32>
    %351 = tpu.matmul %350, %326, %cst_158 {dimension_numbers = #tpu.dot_dimension_numbers<[1], [0], [0], [1], [0, 0, 1, 1], [], []>} : vector<1x8xf32>, vector<8x128xf32>, vector<1x128xf32> -> vector<1x128xf32>
    %cst_159 = arith.constant 1.000000e-30 : f32
    %352 = vector.broadcast %cst_159 : f32 to vector<1x128xf32>
    %353 = arith.maximumf %351, %352 : vector<1x128xf32>
    %354 = arith.divf %4, %353 : vector<1x128xf32>
    %cst_160 = arith.constant dense<0.000000e+00> : vector<1x8xf32>
    %355 = tpu.matmul %354, %326, %cst_160 {dimension_numbers = #tpu.dot_dimension_numbers<[1], [1], [0], [0], [0, 0, 1, 0], [], []>} : vector<1x128xf32>, vector<8x128xf32>, vector<1x8xf32> -> vector<1x8xf32>
    %cst_161 = arith.constant 1.000000e-30 : f32
    %356 = vector.broadcast %cst_161 : f32 to vector<1x8xf32>
    %357 = arith.maximumf %355, %356 : vector<1x8xf32>
    %358 = arith.divf %3, %357 : vector<1x8xf32>
    %cst_162 = arith.constant dense<0.000000e+00> : vector<1x128xf32>
    %359 = tpu.matmul %358, %326, %cst_162 {dimension_numbers = #tpu.dot_dimension_numbers<[1], [0], [0], [1], [0, 0, 1, 1], [], []>} : vector<1x8xf32>, vector<8x128xf32>, vector<1x128xf32> -> vector<1x128xf32>
    %cst_163 = arith.constant 1.000000e-30 : f32
    %360 = vector.broadcast %cst_163 : f32 to vector<1x128xf32>
    %361 = arith.maximumf %359, %360 : vector<1x128xf32>
    %362 = arith.divf %4, %361 : vector<1x128xf32>
    %cst_164 = arith.constant dense<0.000000e+00> : vector<8x1xf32>
    %363 = tpu.matmul %326, %362, %cst_164 {dimension_numbers = #tpu.dot_dimension_numbers<[1], [1], [0], [0], [0, 0, 1, 0], [], []>} : vector<8x128xf32>, vector<1x128xf32>, vector<8x1xf32> -> vector<8x1xf32>
    %cst_165 = arith.constant 1.000000e-30 : f32
    %364 = vector.broadcast %cst_165 : f32 to vector<8x1xf32>
    %365 = arith.maximumf %363, %364 : vector<8x1xf32>
    %366 = arith.divf %2, %365 : vector<8x1xf32>
    %367 = vector.broadcast %362 : vector<1x128xf32> to vector<8x128xf32>
    %368 = arith.mulf %326, %367 : vector<8x128xf32>
    %369 = vector.broadcast %366 : vector<8x1xf32> to vector<8x128xf32>
    %370 = arith.mulf %368, %369 : vector<8x128xf32>
    %cst_166 = arith.constant dense<0.000000e+00> : vector<1x128xf32>
    %371 = tpu.matmul %37, %370, %cst_166 {dimension_numbers = #tpu.dot_dimension_numbers<[1], [0], [0], [1], [0, 0, 1, 1], [], []>} : vector<1x8xf32>, vector<8x128xf32>, vector<1x128xf32> -> vector<1x128xf32>
    %cst_167 = arith.constant 1.000000e-30 : f32
    %372 = vector.broadcast %cst_167 : f32 to vector<1x128xf32>
    %373 = arith.maximumf %371, %372 : vector<1x128xf32>
    %374 = arith.divf %4, %373 : vector<1x128xf32>
    %cst_168 = arith.constant dense<0.000000e+00> : vector<1x8xf32>
    %375 = tpu.matmul %374, %370, %cst_168 {dimension_numbers = #tpu.dot_dimension_numbers<[1], [1], [0], [0], [0, 0, 1, 0], [], []>} : vector<1x128xf32>, vector<8x128xf32>, vector<1x8xf32> -> vector<1x8xf32>
    %cst_169 = arith.constant 1.000000e-30 : f32
    %376 = vector.broadcast %cst_169 : f32 to vector<1x8xf32>
    %377 = arith.maximumf %375, %376 : vector<1x8xf32>
    %378 = arith.divf %3, %377 : vector<1x8xf32>
    %cst_170 = arith.constant dense<0.000000e+00> : vector<1x128xf32>
    %379 = tpu.matmul %378, %370, %cst_170 {dimension_numbers = #tpu.dot_dimension_numbers<[1], [0], [0], [1], [0, 0, 1, 1], [], []>} : vector<1x8xf32>, vector<8x128xf32>, vector<1x128xf32> -> vector<1x128xf32>
    %cst_171 = arith.constant 1.000000e-30 : f32
    %380 = vector.broadcast %cst_171 : f32 to vector<1x128xf32>
    %381 = arith.maximumf %379, %380 : vector<1x128xf32>
    %382 = arith.divf %4, %381 : vector<1x128xf32>
    %cst_172 = arith.constant dense<0.000000e+00> : vector<1x8xf32>
    %383 = tpu.matmul %382, %370, %cst_172 {dimension_numbers = #tpu.dot_dimension_numbers<[1], [1], [0], [0], [0, 0, 1, 0], [], []>} : vector<1x128xf32>, vector<8x128xf32>, vector<1x8xf32> -> vector<1x8xf32>
    %cst_173 = arith.constant 1.000000e-30 : f32
    %384 = vector.broadcast %cst_173 : f32 to vector<1x8xf32>
    %385 = arith.maximumf %383, %384 : vector<1x8xf32>
    %386 = arith.divf %3, %385 : vector<1x8xf32>
    %cst_174 = arith.constant dense<0.000000e+00> : vector<1x128xf32>
    %387 = tpu.matmul %386, %370, %cst_174 {dimension_numbers = #tpu.dot_dimension_numbers<[1], [0], [0], [1], [0, 0, 1, 1], [], []>} : vector<1x8xf32>, vector<8x128xf32>, vector<1x128xf32> -> vector<1x128xf32>
    %cst_175 = arith.constant 1.000000e-30 : f32
    %388 = vector.broadcast %cst_175 : f32 to vector<1x128xf32>
    %389 = arith.maximumf %387, %388 : vector<1x128xf32>
    %390 = arith.divf %4, %389 : vector<1x128xf32>
    %cst_176 = arith.constant dense<0.000000e+00> : vector<1x8xf32>
    %391 = tpu.matmul %390, %370, %cst_176 {dimension_numbers = #tpu.dot_dimension_numbers<[1], [1], [0], [0], [0, 0, 1, 0], [], []>} : vector<1x128xf32>, vector<8x128xf32>, vector<1x8xf32> -> vector<1x8xf32>
    %cst_177 = arith.constant 1.000000e-30 : f32
    %392 = vector.broadcast %cst_177 : f32 to vector<1x8xf32>
    %393 = arith.maximumf %391, %392 : vector<1x8xf32>
    %394 = arith.divf %3, %393 : vector<1x8xf32>
    %cst_178 = arith.constant dense<0.000000e+00> : vector<1x128xf32>
    %395 = tpu.matmul %394, %370, %cst_178 {dimension_numbers = #tpu.dot_dimension_numbers<[1], [0], [0], [1], [0, 0, 1, 1], [], []>} : vector<1x8xf32>, vector<8x128xf32>, vector<1x128xf32> -> vector<1x128xf32>
    %cst_179 = arith.constant 1.000000e-30 : f32
    %396 = vector.broadcast %cst_179 : f32 to vector<1x128xf32>
    %397 = arith.maximumf %395, %396 : vector<1x128xf32>
    %398 = arith.divf %4, %397 : vector<1x128xf32>
    %cst_180 = arith.constant dense<0.000000e+00> : vector<1x8xf32>
    %399 = tpu.matmul %398, %370, %cst_180 {dimension_numbers = #tpu.dot_dimension_numbers<[1], [1], [0], [0], [0, 0, 1, 0], [], []>} : vector<1x128xf32>, vector<8x128xf32>, vector<1x8xf32> -> vector<1x8xf32>
    %cst_181 = arith.constant 1.000000e-30 : f32
    %400 = vector.broadcast %cst_181 : f32 to vector<1x8xf32>
    %401 = arith.maximumf %399, %400 : vector<1x8xf32>
    %402 = arith.divf %3, %401 : vector<1x8xf32>
    %cst_182 = arith.constant dense<0.000000e+00> : vector<1x128xf32>
    %403 = tpu.matmul %402, %370, %cst_182 {dimension_numbers = #tpu.dot_dimension_numbers<[1], [0], [0], [1], [0, 0, 1, 1], [], []>} : vector<1x8xf32>, vector<8x128xf32>, vector<1x128xf32> -> vector<1x128xf32>
    %cst_183 = arith.constant 1.000000e-30 : f32
    %404 = vector.broadcast %cst_183 : f32 to vector<1x128xf32>
    %405 = arith.maximumf %403, %404 : vector<1x128xf32>
    %406 = arith.divf %4, %405 : vector<1x128xf32>
    %cst_184 = arith.constant dense<0.000000e+00> : vector<8x1xf32>
    %407 = tpu.matmul %370, %406, %cst_184 {dimension_numbers = #tpu.dot_dimension_numbers<[1], [1], [0], [0], [0, 0, 1, 0], [], []>} : vector<8x128xf32>, vector<1x128xf32>, vector<8x1xf32> -> vector<8x1xf32>
    %cst_185 = arith.constant 1.000000e-30 : f32
    %408 = vector.broadcast %cst_185 : f32 to vector<8x1xf32>
    %409 = arith.maximumf %407, %408 : vector<8x1xf32>
    %410 = arith.divf %2, %409 : vector<8x1xf32>
    %411 = vector.broadcast %406 : vector<1x128xf32> to vector<8x128xf32>
    %412 = arith.mulf %370, %411 : vector<8x128xf32>
    %413 = vector.broadcast %410 : vector<8x1xf32> to vector<8x128xf32>
    %414 = arith.mulf %412, %413 : vector<8x128xf32>
    %cst_186 = arith.constant dense<0.000000e+00> : vector<1x128xf32>
    %415 = tpu.matmul %37, %414, %cst_186 {dimension_numbers = #tpu.dot_dimension_numbers<[1], [0], [0], [1], [0, 0, 1, 1], [], []>} : vector<1x8xf32>, vector<8x128xf32>, vector<1x128xf32> -> vector<1x128xf32>
    %cst_187 = arith.constant 1.000000e-30 : f32
    %416 = vector.broadcast %cst_187 : f32 to vector<1x128xf32>
    %417 = arith.maximumf %415, %416 : vector<1x128xf32>
    %418 = arith.divf %4, %417 : vector<1x128xf32>
    %cst_188 = arith.constant dense<0.000000e+00> : vector<1x8xf32>
    %419 = tpu.matmul %418, %414, %cst_188 {dimension_numbers = #tpu.dot_dimension_numbers<[1], [1], [0], [0], [0, 0, 1, 0], [], []>} : vector<1x128xf32>, vector<8x128xf32>, vector<1x8xf32> -> vector<1x8xf32>
    %cst_189 = arith.constant 1.000000e-30 : f32
    %420 = vector.broadcast %cst_189 : f32 to vector<1x8xf32>
    %421 = arith.maximumf %419, %420 : vector<1x8xf32>
    %422 = arith.divf %3, %421 : vector<1x8xf32>
    %cst_190 = arith.constant dense<0.000000e+00> : vector<1x128xf32>
    %423 = tpu.matmul %422, %414, %cst_190 {dimension_numbers = #tpu.dot_dimension_numbers<[1], [0], [0], [1], [0, 0, 1, 1], [], []>} : vector<1x8xf32>, vector<8x128xf32>, vector<1x128xf32> -> vector<1x128xf32>
    %cst_191 = arith.constant 1.000000e-30 : f32
    %424 = vector.broadcast %cst_191 : f32 to vector<1x128xf32>
    %425 = arith.maximumf %423, %424 : vector<1x128xf32>
    %426 = arith.divf %4, %425 : vector<1x128xf32>
    %cst_192 = arith.constant dense<0.000000e+00> : vector<1x8xf32>
    %427 = tpu.matmul %426, %414, %cst_192 {dimension_numbers = #tpu.dot_dimension_numbers<[1], [1], [0], [0], [0, 0, 1, 0], [], []>} : vector<1x128xf32>, vector<8x128xf32>, vector<1x8xf32> -> vector<1x8xf32>
    %cst_193 = arith.constant 1.000000e-30 : f32
    %428 = vector.broadcast %cst_193 : f32 to vector<1x8xf32>
    %429 = arith.maximumf %427, %428 : vector<1x8xf32>
    %430 = arith.divf %3, %429 : vector<1x8xf32>
    %cst_194 = arith.constant dense<0.000000e+00> : vector<1x128xf32>
    %431 = tpu.matmul %430, %414, %cst_194 {dimension_numbers = #tpu.dot_dimension_numbers<[1], [0], [0], [1], [0, 0, 1, 1], [], []>} : vector<1x8xf32>, vector<8x128xf32>, vector<1x128xf32> -> vector<1x128xf32>
    %cst_195 = arith.constant 1.000000e-30 : f32
    %432 = vector.broadcast %cst_195 : f32 to vector<1x128xf32>
    %433 = arith.maximumf %431, %432 : vector<1x128xf32>
    %434 = arith.divf %4, %433 : vector<1x128xf32>
    %cst_196 = arith.constant dense<0.000000e+00> : vector<1x8xf32>
    %435 = tpu.matmul %434, %414, %cst_196 {dimension_numbers = #tpu.dot_dimension_numbers<[1], [1], [0], [0], [0, 0, 1, 0], [], []>} : vector<1x128xf32>, vector<8x128xf32>, vector<1x8xf32> -> vector<1x8xf32>
    %cst_197 = arith.constant 1.000000e-30 : f32
    %436 = vector.broadcast %cst_197 : f32 to vector<1x8xf32>
    %437 = arith.maximumf %435, %436 : vector<1x8xf32>
    %438 = arith.divf %3, %437 : vector<1x8xf32>
    %cst_198 = arith.constant dense<0.000000e+00> : vector<1x128xf32>
    %439 = tpu.matmul %438, %414, %cst_198 {dimension_numbers = #tpu.dot_dimension_numbers<[1], [0], [0], [1], [0, 0, 1, 1], [], []>} : vector<1x8xf32>, vector<8x128xf32>, vector<1x128xf32> -> vector<1x128xf32>
    %cst_199 = arith.constant 1.000000e-30 : f32
    %440 = vector.broadcast %cst_199 : f32 to vector<1x128xf32>
    %441 = arith.maximumf %439, %440 : vector<1x128xf32>
    %442 = arith.divf %4, %441 : vector<1x128xf32>
    %cst_200 = arith.constant dense<0.000000e+00> : vector<1x8xf32>
    %443 = tpu.matmul %442, %414, %cst_200 {dimension_numbers = #tpu.dot_dimension_numbers<[1], [1], [0], [0], [0, 0, 1, 0], [], []>} : vector<1x128xf32>, vector<8x128xf32>, vector<1x8xf32> -> vector<1x8xf32>
    %cst_201 = arith.constant 1.000000e-30 : f32
    %444 = vector.broadcast %cst_201 : f32 to vector<1x8xf32>
    %445 = arith.maximumf %443, %444 : vector<1x8xf32>
    %446 = arith.divf %3, %445 : vector<1x8xf32>
    %cst_202 = arith.constant dense<0.000000e+00> : vector<1x128xf32>
    %447 = tpu.matmul %446, %414, %cst_202 {dimension_numbers = #tpu.dot_dimension_numbers<[1], [0], [0], [1], [0, 0, 1, 1], [], []>} : vector<1x8xf32>, vector<8x128xf32>, vector<1x128xf32> -> vector<1x128xf32>
    %cst_203 = arith.constant 1.000000e-30 : f32
    %448 = vector.broadcast %cst_203 : f32 to vector<1x128xf32>
    %449 = arith.maximumf %447, %448 : vector<1x128xf32>
    %450 = arith.divf %4, %449 : vector<1x128xf32>
    %cst_204 = arith.constant dense<0.000000e+00> : vector<8x1xf32>
    %451 = tpu.matmul %414, %450, %cst_204 {dimension_numbers = #tpu.dot_dimension_numbers<[1], [1], [0], [0], [0, 0, 1, 0], [], []>} : vector<8x128xf32>, vector<1x128xf32>, vector<8x1xf32> -> vector<8x1xf32>
    %cst_205 = arith.constant 1.000000e-30 : f32
    %452 = vector.broadcast %cst_205 : f32 to vector<8x1xf32>
    %453 = arith.maximumf %451, %452 : vector<8x1xf32>
    %454 = arith.divf %2, %453 : vector<8x1xf32>
    %455 = vector.broadcast %450 : vector<1x128xf32> to vector<8x128xf32>
    %456 = arith.mulf %414, %455 : vector<8x128xf32>
    %457 = vector.broadcast %454 : vector<8x1xf32> to vector<8x128xf32>
    %458 = arith.mulf %456, %457 : vector<8x128xf32>
    %cst_206 = arith.constant dense<0.000000e+00> : vector<1x128xf32>
    %459 = tpu.matmul %37, %458, %cst_206 {dimension_numbers = #tpu.dot_dimension_numbers<[1], [0], [0], [1], [0, 0, 1, 1], [], []>} : vector<1x8xf32>, vector<8x128xf32>, vector<1x128xf32> -> vector<1x128xf32>
    %cst_207 = arith.constant 1.000000e-30 : f32
    %460 = vector.broadcast %cst_207 : f32 to vector<1x128xf32>
    %461 = arith.maximumf %459, %460 : vector<1x128xf32>
    %462 = arith.divf %4, %461 : vector<1x128xf32>
    %cst_208 = arith.constant dense<0.000000e+00> : vector<1x8xf32>
    %463 = tpu.matmul %462, %458, %cst_208 {dimension_numbers = #tpu.dot_dimension_numbers<[1], [1], [0], [0], [0, 0, 1, 0], [], []>} : vector<1x128xf32>, vector<8x128xf32>, vector<1x8xf32> -> vector<1x8xf32>
    %cst_209 = arith.constant 1.000000e-30 : f32
    %464 = vector.broadcast %cst_209 : f32 to vector<1x8xf32>
    %465 = arith.maximumf %463, %464 : vector<1x8xf32>
    %466 = arith.divf %3, %465 : vector<1x8xf32>
    %cst_210 = arith.constant dense<0.000000e+00> : vector<1x128xf32>
    %467 = tpu.matmul %466, %458, %cst_210 {dimension_numbers = #tpu.dot_dimension_numbers<[1], [0], [0], [1], [0, 0, 1, 1], [], []>} : vector<1x8xf32>, vector<8x128xf32>, vector<1x128xf32> -> vector<1x128xf32>
    %cst_211 = arith.constant 1.000000e-30 : f32
    %468 = vector.broadcast %cst_211 : f32 to vector<1x128xf32>
    %469 = arith.maximumf %467, %468 : vector<1x128xf32>
    %470 = arith.divf %4, %469 : vector<1x128xf32>
    %cst_212 = arith.constant dense<0.000000e+00> : vector<1x8xf32>
    %471 = tpu.matmul %470, %458, %cst_212 {dimension_numbers = #tpu.dot_dimension_numbers<[1], [1], [0], [0], [0, 0, 1, 0], [], []>} : vector<1x128xf32>, vector<8x128xf32>, vector<1x8xf32> -> vector<1x8xf32>
    %cst_213 = arith.constant 1.000000e-30 : f32
    %472 = vector.broadcast %cst_213 : f32 to vector<1x8xf32>
    %473 = arith.maximumf %471, %472 : vector<1x8xf32>
    %474 = arith.divf %3, %473 : vector<1x8xf32>
    %cst_214 = arith.constant dense<0.000000e+00> : vector<1x128xf32>
    %475 = tpu.matmul %474, %458, %cst_214 {dimension_numbers = #tpu.dot_dimension_numbers<[1], [0], [0], [1], [0, 0, 1, 1], [], []>} : vector<1x8xf32>, vector<8x128xf32>, vector<1x128xf32> -> vector<1x128xf32>
    %cst_215 = arith.constant 1.000000e-30 : f32
    %476 = vector.broadcast %cst_215 : f32 to vector<1x128xf32>
    %477 = arith.maximumf %475, %476 : vector<1x128xf32>
    %478 = arith.divf %4, %477 : vector<1x128xf32>
    %cst_216 = arith.constant dense<0.000000e+00> : vector<1x8xf32>
    %479 = tpu.matmul %478, %458, %cst_216 {dimension_numbers = #tpu.dot_dimension_numbers<[1], [1], [0], [0], [0, 0, 1, 0], [], []>} : vector<1x128xf32>, vector<8x128xf32>, vector<1x8xf32> -> vector<1x8xf32>
    %cst_217 = arith.constant 1.000000e-30 : f32
    %480 = vector.broadcast %cst_217 : f32 to vector<1x8xf32>
    %481 = arith.maximumf %479, %480 : vector<1x8xf32>
    %482 = arith.divf %3, %481 : vector<1x8xf32>
    %cst_218 = arith.constant dense<0.000000e+00> : vector<1x128xf32>
    %483 = tpu.matmul %482, %458, %cst_218 {dimension_numbers = #tpu.dot_dimension_numbers<[1], [0], [0], [1], [0, 0, 1, 1], [], []>} : vector<1x8xf32>, vector<8x128xf32>, vector<1x128xf32> -> vector<1x128xf32>
    %cst_219 = arith.constant 1.000000e-30 : f32
    %484 = vector.broadcast %cst_219 : f32 to vector<1x128xf32>
    %485 = arith.maximumf %483, %484 : vector<1x128xf32>
    %486 = arith.divf %4, %485 : vector<1x128xf32>
    %cst_220 = arith.constant dense<0.000000e+00> : vector<8x1xf32>
    %487 = tpu.matmul %458, %486, %cst_220 {dimension_numbers = #tpu.dot_dimension_numbers<[1], [1], [0], [0], [0, 0, 1, 0], [], []>} : vector<8x128xf32>, vector<1x128xf32>, vector<8x1xf32> -> vector<8x1xf32>
    %cst_221 = arith.constant 1.000000e-30 : f32
    %488 = vector.broadcast %cst_221 : f32 to vector<8x1xf32>
    %489 = arith.maximumf %487, %488 : vector<8x1xf32>
    %490 = arith.divf %2, %489 : vector<8x1xf32>
    %491 = vector.broadcast %486 : vector<1x128xf32> to vector<8x128xf32>
    %492 = arith.mulf %458, %491 : vector<8x128xf32>
    %493 = vector.broadcast %490 : vector<8x1xf32> to vector<8x128xf32>
    %494 = arith.mulf %492, %493 : vector<8x128xf32>
    %c0_222 = arith.constant 0 : index
    %c0_223 = arith.constant 0 : index
    %495 = vector.load %arg8[%c0_222, %c0_223] : memref<8x128xf32, #tpu.memory_space<vmem>>, vector<8x128xf32>
    tpu.vector_store %arg8[%c0_222, %c0_223], %494 {strides = array<i32>} : memref<8x128xf32, #tpu.memory_space<vmem>>, vector<8x128xf32>,
    %cst_224 = arith.constant 1.000000e-30 : f32
    %496 = vector.broadcast %cst_224 : f32 to vector<8x1xf32>
    %497 = arith.maximumf %2, %496 : vector<8x1xf32>
    %cst_225 = arith.constant 1.000000e+00 : f32
    %498 = vector.broadcast %cst_225 : f32 to vector<8x1xf32>
    %499 = arith.divf %498, %497 : vector<8x1xf32>
    %500 = vector.broadcast %499 : vector<8x1xf32> to vector<8x128xf32>
    %501 = arith.mulf %494, %500 : vector<8x128xf32>
    %cst_226 = arith.constant dense<0.000000e+00> : vector<8x128xf32>
    %502 = tpu.matmul %501, %1, %cst_226 {dimension_numbers = #tpu.dot_dimension_numbers<[1], [0], [0], [1], [0, 0, 1, 1], [], []>} : vector<8x128xf32>, vector<128x128xf32>, vector<8x128xf32> -> vector<8x128xf32>
    %c0_227 = arith.constant 0 : index
    %c0_228 = arith.constant 0 : index
    %503 = vector.load %arg7[%c0_227, %c0_228] : memref<8x128xf32, #tpu.memory_space<vmem>>, vector<8x128xf32>
    tpu.vector_store %arg7[%c0_227, %c0_228], %502 {strides = array<i32>} : memref<8x128xf32, #tpu.memory_space<vmem>>, vector<8x128xf32>,
    return
  }
}

</mosaic_0001>

<bundles_post_ra>
// kernel: tpu_custom_call.1
= control target key start
LH: loop header
LB: loop body
LE: loop exit
PB: predicated region body
PF: predicated region fallthrough
CT: control target
= control target key end

     0   :  { %14 = vsyncpa [#allocation3], 0  ;;  %s9177_s0 = inlined_call_operand.vmem [shape: f32[8,128], index: 0, kind: input, shape index: {}]   ;;  %s9178_s1 = inlined_call_operand.hbm [shape: f32[128,128], index: 1, kind: input, shape index: {}]   ;;  %s9179_s2 = inlined_call_operand.vmem [shape: f32[8,1], index: 2, kind: input, shape index: {}]   ;;  %s9180_s3 = inlined_call_operand.vmem [shape: f32[1,8], index: 3, kind: input, shape index: {}]   ;;  %s9181_s4 = inlined_call_operand.vmem [shape: f32[1,128], index: 4, kind: input, shape index: {}]   ;;  %s9182_s5 = inlined_call_operand.vmem [shape: f32[8,1], index: 5, kind: input, shape index: {}]   ;;  %s9183_s6 = inlined_call_operand.vmem [shape: f32[1,128], index: 6, kind: input, shape index: {}]   ;;  %s9184_s7 = inlined_call_operand.hbm [shape: f32[8,128], index: 7, kind: output, shape index: {0}]   ;;  %s9185_s8 = inlined_call_operand.hbm [shape: f32[8,128], index: 8, kind: output, shape index: {1}]  }
   0x1   :  { %15 = vsyncpa [#allocation4], 0 }
   0x2   :  { %16 = vsyncpa [#allocation7], 0  ;;  %s8400_s27 = smov [#allocation2]  }
   0x3   :  { %s24_s28 = sshll.u32 %s8400_s27, 4  ;;  %s25_s28 = int_to_ptr.vmem [resolvable:$true] %s24_s28 }
   0x4   :  { %s8342_s29 = scalar_lea.vmem %s25_s28, 2048  ;;  %p8347_p1 = scmp.lt.s32.totalorder %s25_s28, %s25_s28 }
   0x5   :  { %p8343_p0 = scmp.ne.s32.totalorder %s25_s28, %s8342_s29  ;;  %p8348_p2 = scmp.lt.s32.totalorder %s8342_s29, %s8342_s29 }
   0x7   :  { %p8349_p3 = por %p8348_p2, %p8347_p1 }
   0x9   :  { %p8350_p4 = pnand %p8349_p3, %p8343_p0 }
   0xb   :  { %8353 = shalt.err (!%p8350_p4)
}
   0xc   :  { %s8401_s30 = smov 128   ;;  %s8402_s9 = smov 8  }
   0xd   :  { %30 = dma.hbm_to_vmem [thread:$0]  %s9178_s1, 2048, %s25_s28, [#allocation3], %s8401_s30, %s8401_s30, %s8402_s9  }
   0xe   :  { %8394 = dma.done.wait [#allocation3], 2048  }
   0xf   :  { %8395 = vsyncadd [#allocation3], 4294965248  ;;  %v8403_v0 = vmov 0.0   ;;  %vm8404_vm0 = vmmov 0   ;;  %v8463_v1 = vld [vmem:[#allocation2] sm:$0xff]  ;;  %v8465_v2 = vld [vmem:[#allocation2 + $0x8] sm:$0xff]  ;;  %v219_v53 = vlaneseq }
  0x10   :  { %7540 = vmatprep.subr.mxu0 %v8403_v0  ;;  %7572 = vmatprep.mubr.msk.f32.mxu0 %vm8404_vm0, %v8403_v0  ;;  %v60_v3 = vld [vmem:[#allocation2 + $0x78] sm:$0xff]  ;;  %v69_v4 = vmul.f32 %v8463_v1, %v8463_v1  ;;  %v8469_v5 = vld [vmem:[#allocation2 + $0x10] sm:$0xff]  ;;  %v70_v9 = vmul.f32 %v8465_v2, %v8465_v2  ;;  %v49_v11 = vld [vmem:[#allocation2 + $0x20] sm:$0xff]  ;;  %v8405_v29 = vmov 0   ;;  %vm258_vm1 = vcmask 64512  }
  0x11   :  { %7575 = vmatprep.subr.mxu1 %v8403_v0  ;;  %7577 = vmatprep.mubr.msk.f32.mxu1 %vm8404_vm0, %v8403_v0  ;;  %v8471_v6 = vld [vmem:[#allocation2 + $0x18] sm:$0xff]  ;;  %v71_v7 = vmul.f32 %v8469_v5, %v8469_v5  ;;  %v59_v8 = vld [vmem:[#allocation2 + $0x70] sm:$0xff]  ;;  %v50_v12 = vld [vmem:[#allocation2 + $0x28] sm:$0xff]  ;;  %v73_v14 = vmul.f32 %v49_v11, %v49_v11  ;;  %v84_v33 = vmul.f32 %v60_v3, %v60_v3  ;;  %v220_v55 = vshrl.u32 %v219_v53, 7 }
  0x12   :  { %7541 = vmatpush3.xpose.msra.mxu0 %v60_v3  ;;  %85 = vadd.xlane.f32.xlu0 %v69_v4  ;;  %v72_v10 = vmul.f32 %v8471_v6, %v8471_v6  ;;  %v58_v13 = vld [vmem:[#allocation2 + $0x68] sm:$0xff]  ;;  %v74_v15 = vmul.f32 %v50_v12, %v50_v12  ;;  %v51_v16 = vld [vmem:[#allocation2 + $0x30] sm:$0xff]  ;;  %v52_v17 = vld [vmem:[#allocation2 + $0x38] sm:$0xff]  ;;  %v83_v32 = vmul.f32 %v59_v8, %v59_v8 }
  0x13   :  { %7542 = vmatprep.subr.mxu0 %v8403_v0  ;;  %89 = vadd.xlane.f32.xlu1 %v71_v7  ;;  %v57_v18 = vld [vmem:[#allocation2 + $0x60] sm:$0xff]  ;;  %v75_v19 = vmul.f32 %v51_v16, %v51_v16  ;;  %v76_v20 = vmul.f32 %v52_v17, %v52_v17  ;;  %v56_v22 = vld [vmem:[#allocation2 + $0x58] sm:$0xff]  ;;  %v54_v23 = vld [vmem:[#allocation2 + $0x48] sm:$0xff]  ;;  %v82_v31 = vmul.f32 %v58_v13, %v58_v13  ;;  %v8512_v58 = vsub.s32 0, %v220_v55 }
  0x14   :  { %v53_v21 = vld [vmem:[#allocation2 + $0x40] sm:$0xff]  ;;  %v78_v25 = vmul.f32 %v54_v23, %v54_v23  ;;  %v55_v26 = vld [vmem:[#allocation2 + $0x50] sm:$0xff]  ;;  %v80_v28 = vmul.f32 %v56_v22, %v56_v22  ;;  %8099 = vset.pattern.permute.xlu1 %v8405_v29  ;;  %v81_v30 = vmul.f32 %v57_v18, %v57_v18 }
  0x15   :  { %v77_v24 = vmul.f32 %v53_v21, %v53_v21  ;;  %v79_v27 = vmul.f32 %v55_v26, %v55_v26  ;;  %v44_v34 = vld [vmem:[%s9177_s0] sm:$0xff] }
  0x16   :  { %7543 = vmatpush3.xpose.msra.mxu0 %v59_v8  ;;  %87 = vadd.xlane.f32.xlu0 %v70_v9  ;;  %v66_v35 = vmul.f32 %v44_v34, %v44_v34  ;;  %v8498_v36 = vld [vmem:[%s9182_s5] sm:$0xff] }
  0x17   :  { %7544 = vmatprep.subr.mxu0 %v8403_v0  ;;  %91 = vadd.xlane.f32.xlu1 %v72_v10 }
  0x1a   :  { %7545 = vmatpush3.xpose.msra.mxu0 %v58_v13  ;;  %93 = vadd.xlane.f32.xlu0 %v73_v14 }
  0x1b   :  { %7546 = vmatprep.subr.mxu0 %v8403_v0  ;;  %95 = vadd.xlane.f32.xlu1 %v74_v15 }
  0x1e   :  { %7547 = vmatpush3.xpose.msra.mxu0 %v57_v18  ;;  %97 = vadd.xlane.f32.xlu0 %v75_v19  ;;  %v8567_v18 = vld [vmem:[%s9181_s4] sm:$0x1] }
  0x1f   :  { %7548 = vmatprep.subr.mxu0 %v8403_v0  ;;  %99 = vadd.xlane.f32.xlu1 %v76_v20  ;;  %v245_v19 = vmax.f32 %v8567_v18, 1e-30 }
  0x22   :  { %7549 = vmatpush3.xpose.msra.mxu0 %v56_v22  ;;  %101 = vadd.xlane.f32.xlu0 %v77_v24 }
  0x23   :  { %7550 = vmatprep.subr.mxu0 %v8403_v0  ;;  %103 = vadd.xlane.f32.xlu1 %v78_v25 }
  0x26   :  { %7551 = vmatpush3.xpose.msra.mxu0 %v55_v26  ;;  %105 = vadd.xlane.f32.xlu0 %v79_v27 }
  0x27   :  { %7552 = vmatprep.subr.mxu0 %v8403_v0  ;;  %107 = vadd.xlane.f32.xlu1 %v80_v28 }
  0x2a   :  { %7553 = vmatpush3.xpose.msra.mxu0 %v54_v23  ;;  %109 = vadd.xlane.f32.xlu0 %v81_v30 }
  0x2b   :  { %7554 = vmatprep.subr.mxu0 %v8403_v0  ;;  %111 = vadd.xlane.f32.xlu1 %v82_v31 }
  0x2e   :  { %7555 = vmatpush3.xpose.msra.mxu0 %v53_v21  ;;  %113 = vadd.xlane.f32.xlu0 %v83_v32 }
  0x2f   :  { %7556 = vmatprep.subr.mxu0 %v8403_v0  ;;  %115 = vadd.xlane.f32.xlu1 %v84_v33 }
  0x32   :  { %7557 = vmatpush3.xpose.msra.mxu0 %v52_v17  ;;  %67 = vadd.xlane.f32.xlu0 %v66_v35  ;;  %v8406_v17 = vmov 1.0   ;;  %v8578_v35 = vld [vmem:[%s9179_s2] sm:$0xff] }
  0x33   :  { %7558 = vmatprep.subr.mxu0 %v8403_v0 }
  0x36   :  { %7559 = vmatpush3.xpose.msra.mxu0 %v51_v16 }
  0x37   :  { %7560 = vmatprep.subr.mxu0 %v8403_v0 }
  0x3a   :  { %7561 = vmatpush3.xpose.msra.mxu0 %v50_v12 }
  0x3b   :  { %7562 = vmatprep.subr.mxu0 %v8403_v0 }
  0x3e   :  { %7563 = vmatpush3.xpose.msra.mxu0 %v49_v11 }
  0x3f   :  { %7564 = vmatprep.subr.mxu0 %v8403_v0 }
  0x40   :  { %230 = vperm.xlu1 %8099, %v8498_v36  }
  0x42   :  { %7565 = vmatpush3.xpose.msra.mxu0 %v8471_v6 }
  0x43   :  { %7566 = vmatprep.subr.mxu0 %v8403_v0 }
  0x46   :  { %7567 = vmatpush3.xpose.msra.mxu0 %v8469_v5 }
  0x47   :  { %7568 = vmatprep.subr.mxu0 %v8403_v0 }
  0x4a   :  { %7569 = vmatpush3.xpose.msra.mxu0 %v8465_v2 }
  0x4b   :  { %7570 = vmatprep.subr.mxu0 %v8403_v0 }
  0x4e   :  { %7571 = vmatpush3.xpose.msra.mxu0 %v8463_v1  ;;  %v8518_v1 = vld [vmem:[%s9183_s6] sm:$0x1] }
  0x4f   :  { %7695 = vmatprep.subr.mxu0 %v8403_v0  ;;  %v238_v4 = vrot.slane %v8518_v1, %v8512_v58 }
  0x51   :  { %7573 = vmatmul.mubr.f32.vlgmr.msra.gmra.mxu0 %v44_v34 }
  0x52   :  { %7697 = vmatprep.mubr.msk.f32.mxu0 %vm8404_vm0, %v8403_v0 }
  0x9b   :  { %v86_v37 = vpop.xlane.xlu0 %85 }
  0x9c   :  { %187 = vxpose.xlu0.b32.start [1/16] (narrow) %v86_v37, 8  ;;  %v90_v39 = vpop.xlane.xlu1 %89  ;;  %v241_v37 = vmax.f32 %v8578_v35, 1e-30 }
  0x9f   :  { %v88_v38 = vpop.xlane.xlu0 %87 }
  0xa0   :  { %188 = vxpose.xlu0.b32.cont [2/16] (narrow) %v88_v38, 8  ;;  %v92_v40 = vpop.xlane.xlu1 %91 }
  0xa3   :  { %v94_v41 = vpop.xlane.xlu0 %93 }
  0xa4   :  { %189 = vxpose.xlu0.b32.cont [3/16] (narrow) %v90_v39, 8  ;;  %v96_v42 = vpop.xlane.xlu1 %95 }
  0xa7   :  { %v98_v43 = vpop.xlane.xlu0 %97 }
  0xa8   :  { %190 = vxpose.xlu0.b32.cont [4/16] (narrow) %v92_v40, 8  ;;  %v100_v44 = vpop.xlane.xlu1 %99 }
  0xab   :  { %v102_v45 = vpop.xlane.xlu0 %101 }
  0xac   :  { %191 = vxpose.xlu0.b32.cont [5/16] (narrow) %v94_v41, 8  ;;  %v104_v46 = vpop.xlane.xlu1 %103 }
  0xaf   :  { %v106_v47 = vpop.xlane.xlu0 %105 }
  0xb0   :  { %192 = vxpose.xlu0.b32.cont [6/16] (narrow) %v96_v42, 8  ;;  %v108_v48 = vpop.xlane.xlu1 %107 }
  0xb3   :  { %v110_v49 = vpop.xlane.xlu0 %109 }
  0xb4   :  { %193 = vxpose.xlu0.b32.cont [7/16] (narrow) %v98_v43, 8  ;;  %v112_v50 = vpop.xlane.xlu1 %111 }
  0xb7   :  { %v114_v51 = vpop.xlane.xlu0 %113 }
  0xb8   :  { %194 = vxpose.xlu0.b32.cont [8/16] (narrow) %v100_v44, 8  ;;  %v116_v52 = vpop.xlane.xlu1 %115 }
  0xbb   :  { %v68_v57 = vpop.xlane.xlu0 %67 }
  0xbc   :  { %195 = vxpose.xlu0.b32.cont [9/16] (narrow) %v102_v45, 8  ;;  %v231_v3 = vpop.permute.xlu1 %230 }
  0xc0   :  { %196 = vxpose.xlu0.b32.cont [10/16] (narrow) %v104_v46, 8 }
  0xc4   :  { %197 = vxpose.xlu0.b32.cont [11/16] (narrow) %v106_v47, 8 }
  0xc8   :  { %198 = vxpose.xlu0.b32.cont [12/16] (narrow) %v108_v48, 8 }
  0xcc   :  { %199 = vxpose.xlu0.b32.cont [13/16] (narrow) %v110_v49, 8 }
  0xd0   :  { %200 = vxpose.xlu0.b32.cont [14/16] (narrow) %v112_v50, 8 }
  0xd4   :  { %201 = vxpose.xlu0.b32.cont [15/16] (narrow) %v114_v51, 8 }
  0xd8   :  { %202 = vxpose.xlu0.b32.end [16/16] (narrow) %v116_v52, 8 }
 0x101   :  { %8100 = vset.pattern.permute.xlu0 %v8405_v29 }
 0x111   :  { %v183_v54 = vpop.f32.mrf.mxu0 }
 0x112   :  { %v224_v60 = vmul.f32 2.0, %v183_v54 }
 0x113   :  { %v7574_v56 = vpop.f32.mrf.mxu0 }
 0x118   :  { %v203_v59 = vpop.trf.xlu0 }
 0x119   :  { %v222_v61 = vrot.slane %v203_v59, %v8512_v58 }
 0x11b   :  { %v223_v62 = vadd.f32 %v222_v61, %v68_v57 }
 0x11d   :  { %v225_v63 = vsub.f32 %v223_v62, %v224_v60  ;;  %v8602_v60 = vld [vmem:[%s9180_s3] sm:$0x1] }
 0x11f   :  { %v226_v2 = vmax.f32 %v225_v63, 0.0 }
 0x121   :  { %v227_v5 = vmul.f32 -20.0, %v226_v2 }
 0x123   :  { %v233_v6 = vadd.f32 %v231_v3, %v227_v5 }
 0x125   :  { %v8522_v7 = vadd.f32 %v238_v4, %v233_v6 }
 0x127   :  { %v249_v8 = vrot.slane %v8522_v7, 4 }
 0x129   :  { %v250_v9 = vmax.f32 %v8522_v7, %v249_v8 }
 0x12b   :  { %v251_v10 = vrot.slane %v250_v9, 2 }
 0x12d   :  { %v252_v11 = vmax.f32 %v250_v9, %v251_v10 }
 0x12f   :  { %v253_v12 = vrot.slane %v252_v11, 1 }
 0x131   :  { %v254_v13 = vmax.f32 %v252_v11, %v253_v12 }
 0x133   :  { %v255_v14 = vsub.f32 %v8522_v7, %v254_v13 }
 0x135   :  { %v256_v15 = vmul.f32 1.442695, %v255_v14 }
 0x137   :  { %8101 = vpow2.f32 %v256_v15 }
 0x138   :  { %8103 = vlog2.f32 %v245_v19 }
 0x144   :  { %v8102_v16 = vpop.eup %8101 }
 0x145   :  { %7576 = vmatpush3.msra.mxu1 %v8102_v16  ;;  %v8104_v22 = vpop.eup %8103 }
 0x146   :  { %7578 = vmatmul.mubr.msk.f32.vlgmr.msra.gmra.mxu1 %vm258_vm1, %v8406_v17  ;;  %7580 = vmatprep.subr.mxu1 %v8403_v0  ;;  %v247_v23 = vmul.f32 0.6931472, %v8104_v22 }
 0x147   :  { %7581 = vmatpush3.msra.mxu1 %v8406_v17  ;;  %7612 = vmatprep.mubr.msk.f32.mxu1 %vm8404_vm0, %v8403_v0 }
 0x148   :  { %7582 = vmatprep.subr.mxu1 %v8403_v0  ;;  %v248_v25 = vadd.f32 %v247_v23, %v8518_v1 }
 0x149   :  { %7583 = vmatpush3.msra.mxu1 %v8406_v17 }
 0x14a   :  { %7584 = vmatprep.subr.mxu1 %v8403_v0 }
 0x14b   :  { %7585 = vmatpush3.msra.mxu1 %v8406_v17 }
 0x14c   :  { %7586 = vmatprep.subr.mxu1 %v8403_v0 }
 0x14d   :  { %7587 = vmatpush3.msra.mxu1 %v8406_v17 }
 0x14e   :  { %7588 = vmatprep.subr.mxu1 %v8403_v0 }
 0x14f   :  { %7589 = vmatpush3.msra.mxu1 %v8406_v17 }
 0x150   :  { %7590 = vmatprep.subr.mxu1 %v8403_v0 }
 0x151   :  { %7591 = vmatpush3.msra.mxu1 %v8406_v17 }
 0x152   :  { %7592 = vmatprep.subr.mxu1 %v8403_v0 }
 0x153   :  { %7593 = vmatpush3.msra.mxu1 %v8406_v17 }
 0x154   :  { %7594 = vmatprep.subr.mxu1 %v8403_v0 }
 0x155   :  { %7595 = vmatpush3.msra.mxu1 %v8406_v17 }
 0x156   :  { %7596 = vmatprep.subr.mxu1 %v8403_v0 }
 0x157   :  { %7597 = vmatpush3.msra.mxu1 %v8406_v17 }
 0x158   :  { %7598 = vmatprep.subr.mxu1 %v8403_v0 }
 0x159   :  { %7599 = vmatpush3.msra.mxu1 %v8406_v17 }
 0x15a   :  { %7600 = vmatprep.subr.mxu1 %v8403_v0 }
 0x15b   :  { %7601 = vmatpush3.msra.mxu1 %v8406_v17 }
 0x15c   :  { %7602 = vmatprep.subr.mxu1 %v8403_v0 }
 0x15d   :  { %7603 = vmatpush3.msra.mxu1 %v8406_v17 }
 0x15e   :  { %7604 = vmatprep.subr.mxu1 %v8403_v0 }
 0x15f   :  { %7605 = vmatpush3.msra.mxu1 %v8406_v17 }
 0x160   :  { %7606 = vmatprep.subr.mxu1 %v8403_v0 }
 0x161   :  { %7607 = vmatpush3.msra.mxu1 %v8406_v17 }
 0x162   :  { %7608 = vmatprep.subr.mxu1 %v8403_v0 }
 0x163   :  { %7609 = vmatpush3.msra.mxu1 %v8406_v17 }
 0x164   :  { %7610 = vmatprep.subr.mxu1 %v8403_v0 }
 0x165   :  { %7611 = vmatpush3.msra.mxu1 %v8406_v17 }
 0x166   :  { %7615 = vmatprep.subr.mxu1 %v8403_v0 }
 0x206   :  { %v328_v20 = vpop.f32.mrf.mxu1 }
 0x207   :  { %8105 = vlog2.f32 %v328_v20 }
 0x208   :  { %v7579_v21 = vpop.f32.mrf.mxu1 }
 0x214   :  { %v8106_v24 = vpop.eup %8105 }
 0x215   :  { %v333_v26 = vmul.f32 0.6931472, %v8106_v24 }
 0x217   :  { %v334_v27 = vadd.f32 %v333_v26, %v254_v13 }
 0x219   :  { %v335_v28 = vsub.f32 %v248_v25, %v334_v27 }
 0x21b   :  { %v340_v29 = vrot.slane %v335_v28, %v8512_v58 }
 0x21d   :  { %v342_v30 = vadd.f32 %v340_v29, %v8522_v7 }
 0x21f   :  { %343 = vmax.xlane.f32.xlu1 %v342_v30 }
 0x2a8   :  { %v344_v31 = vpop.xlane.xlu1 %343 }
 0x2a9   :  { %v345_v32 = vsub.f32 %v342_v30, %v344_v31 }
 0x2ab   :  { %v346_v33 = vmul.f32 1.442695, %v345_v32 }
 0x2ad   :  { %8107 = vpow2.f32 %v346_v33 }
 0x2ae   :  { %8109 = vlog2.f32 %v241_v37 }
 0x2ba   :  { %v8108_v34 = vpop.eup %8107 }
 0x2bb   :  { %7613 = vmatmul.mubr.f32.vlgmr.msra.gmra.mxu1 %v8108_v34  ;;  %v8110_v40 = vpop.eup %8109 }
 0x2bc   :  { %7617 = vmatprep.mubr.msk.f32.mxu1 %vm8404_vm0, %v8403_v0  ;;  %v243_v41 = vmul.f32 0.6931472, %v8110_v40 }
 0x2be   :  { %v244_v43 = vadd.f32 %v243_v41, %v8498_v36 }
 0x37b   :  { %v414_v38 = vpop.f32.mrf.mxu1 }
 0x37c   :  { %8111 = vlog2.f32 %v414_v38 }
 0x37d   :  { %v7614_v39 = vpop.f32.mrf.mxu1 }
 0x389   :  { %v8112_v42 = vpop.eup %8111 }
 0x38a   :  { %v419_v44 = vmul.f32 0.6931472, %v8112_v42 }
 0x38c   :  { %v420_v45 = vadd.f32 %v419_v44, %v344_v31 }
 0x38e   :  { %v421_v46 = vsub.f32 %v244_v43, %v420_v45 }
 0x390   :  { %v422_v47 = vadd.f32 %v421_v46, %v344_v31 }
 0x392   :  { %v423_v48 = vmul.f32 1.442695, %v422_v47 }
 0x394   :  { %8113 = vpow2.f32 %v423_v48 }
 0x3a1   :  { %v8114_v49 = vpop.eup %8113 }
 0x3a2   :  { %427 = vperm.xlu1 %8099, %v8114_v49  }
 0x41d   :  { %v428_v50 = vpop.permute.xlu1 %427 }
 0x41e   :  { %v8584_v51 = vmul.f32 %v8108_v34, %v428_v50 }
 0x420   :  { %7616 = vmatpush3.msra.mxu1 %v8584_v51 }
 0x421   :  { %7618 = vmatmul.mubr.msk.f32.vlgmr.msra.gmra.mxu1 %vm258_vm1, %v8406_v17  ;;  %7620 = vmatprep.subr.mxu1 %v8403_v0 }
 0x422   :  { %7621 = vmatpush3.xpose.msra.mxu1 %v8584_v51  ;;  %7622 = vmatprep.mubr.msk.f32.mxu1 %vm8404_vm0, %v8403_v0 }
 0x423   :  { %7625 = vmatprep.subr.mxu1 %v8403_v0 }
 0x4e1   :  { %v497_v36 = vpop.f32.mrf.mxu1 }
 0x4e2   :  { %v501_v52 = vmax.f32 %v497_v36, 1e-30 }
 0x4e3   :  { %v7619_v53 = vpop.f32.mrf.mxu1 }
 0x4e4   :  { %8115 = vrcp.f32 %v501_v52 }
 0x4f1   :  { %v8116_v54 = vpop.eup %8115 }
 0x4f2   :  { %v503_v55 = vmul.f32 %v8116_v54, %v8567_v18 }
 0x4f4   :  { %7623 = vmatmul.mubr.f32.vlgmr.msra.gmra.mxu1 %v503_v55 }
 0x4f5   :  { %7626 = vmatpush3.msra.mxu1 %v8584_v51  ;;  %7627 = vmatprep.mubr.msk.f32.mxu1 %vm8404_vm0, %v8403_v0 }
 0x4f6   :  { %7630 = vmatprep.subr.mxu1 %v8403_v0 }
 0x5b4   :  { %v570_v56 = vpop.f32.mrf.mxu1 }
 0x5b5   :  { %v574_v57 = vmax.f32 %v570_v56, 1e-30 }
 0x5b6   :  { %v7624_v59 = vpop.f32.mrf.mxu1 }
 0x5b7   :  { %8117 = vrcp.f32 %v574_v57 }
 0x5c4   :  { %v8118_v61 = vpop.eup %8117 }
 0x5c5   :  { %v576_v62 = vmul.f32 %v8118_v61, %v8602_v60 }
 0x5c7   :  { %7628 = vmatmul.mubr.msk.f32.vlgmr.msra.gmra.mxu1 %vm258_vm1, %v576_v62 }
 0x5c8   :  { %7631 = vmatpush3.xpose.msra.mxu1 %v8584_v51  ;;  %7632 = vmatprep.mubr.msk.f32.mxu1 %vm8404_vm0, %v8403_v0 }
 0x5c9   :  { %7635 = vmatprep.subr.mxu1 %v8403_v0 }
 0x687   :  { %v646_v63 = vpop.f32.mrf.mxu1 }
 0x688   :  { %v650_v1 = vmax.f32 %v646_v63, 1e-30 }
 0x689   :  { %v7629_v2 = vpop.f32.mrf.mxu1 }
 0x68a   :  { %8119 = vrcp.f32 %v650_v1 }
 0x697   :  { %v8120_v3 = vpop.eup %8119 }
 0x698   :  { %v652_v4 = vmul.f32 %v8120_v3, %v8567_v18 }
 0x69a   :  { %7633 = vmatmul.mubr.f32.vlgmr.msra.gmra.mxu1 %v652_v4 }
 0x69b   :  { %7636 = vmatpush3.msra.mxu1 %v8584_v51  ;;  %7637 = vmatprep.mubr.msk.f32.mxu1 %vm8404_vm0, %v8403_v0 }
 0x69c   :  { %7640 = vmatprep.subr.mxu1 %v8403_v0 }
 0x75a   :  { %v719_v5 = vpop.f32.mrf.mxu1 }
 0x75b   :  { %v723_v6 = vmax.f32 %v719_v5, 1e-30 }
 0x75c   :  { %v7634_v7 = vpop.f32.mrf.mxu1 }
 0x75d   :  { %8121 = vrcp.f32 %v723_v6 }
 0x76a   :  { %v8122_v8 = vpop.eup %8121 }
 0x76b   :  { %v725_v9 = vmul.f32 %v8122_v8, %v8602_v60 }
 0x76d   :  { %7638 = vmatmul.mubr.msk.f32.vlgmr.msra.gmra.mxu1 %vm258_vm1, %v725_v9 }
 0x76e   :  { %7641 = vmatpush3.xpose.msra.mxu1 %v8584_v51  ;;  %7642 = vmatprep.mubr.msk.f32.mxu1 %vm8404_vm0, %v8403_v0 }
 0x76f   :  { %7645 = vmatprep.subr.mxu1 %v8403_v0 }
 0x82d   :  { %v795_v10 = vpop.f32.mrf.mxu1 }
 0x82e   :  { %v799_v11 = vmax.f32 %v795_v10, 1e-30 }
 0x82f   :  { %v7639_v12 = vpop.f32.mrf.mxu1 }
 0x830   :  { %8123 = vrcp.f32 %v799_v11 }
 0x83d   :  { %v8124_v13 = vpop.eup %8123 }
 0x83e   :  { %v801_v14 = vmul.f32 %v8124_v13, %v8567_v18 }
 0x840   :  { %7643 = vmatmul.mubr.f32.vlgmr.msra.gmra.mxu1 %v801_v14 }
 0x841   :  { %7646 = vmatpush3.msra.mxu1 %v8584_v51  ;;  %7647 = vmatprep.mubr.msk.f32.mxu1 %vm8404_vm0, %v8403_v0 }
 0x842   :  { %7650 = vmatprep.subr.mxu1 %v8403_v0 }
 0x900   :  { %v868_v15 = vpop.f32.mrf.mxu1 }
 0x901   :  { %v872_v16 = vmax.f32 %v868_v15, 1e-30 }
 0x902   :  { %v7644_v19 = vpop.f32.mrf.mxu1 }
 0x903   :  { %8125 = vrcp.f32 %v872_v16 }
 0x910   :  { %v8126_v20 = vpop.eup %8125 }
 0x911   :  { %v874_v21 = vmul.f32 %v8126_v20, %v8602_v60 }
 0x913   :  { %7648 = vmatmul.mubr.msk.f32.vlgmr.msra.gmra.mxu1 %vm258_vm1, %v874_v21 }
 0x914   :  { %7651 = vmatpush3.xpose.msra.mxu1 %v8584_v51  ;;  %7652 = vmatprep.mubr.msk.f32.mxu1 %vm8404_vm0, %v8403_v0 }
 0x915   :  { %7655 = vmatprep.subr.mxu1 %v8403_v0 }
 0x9d3   :  { %v944_v22 = vpop.f32.mrf.mxu1 }
 0x9d4   :  { %v948_v23 = vmax.f32 %v944_v22, 1e-30 }
 0x9d5   :  { %v7649_v24 = vpop.f32.mrf.mxu1 }
 0x9d6   :  { %8127 = vrcp.f32 %v948_v23 }
 0x9e3   :  { %v8128_v25 = vpop.eup %8127 }
 0x9e4   :  { %v950_v26 = vmul.f32 %v8128_v25, %v8567_v18 }
 0x9e6   :  { %7653 = vmatmul.mubr.f32.vlgmr.msra.gmra.mxu1 %v950_v26 }
 0x9e7   :  { %7656 = vmatpush3.msra.mxu1 %v8584_v51  ;;  %7657 = vmatprep.mubr.msk.f32.mxu1 %vm8404_vm0, %v8403_v0 }
 0x9e8   :  { %7660 = vmatprep.subr.mxu1 %v8403_v0 }
 0xaa6   :  { %v1017_v27 = vpop.f32.mrf.mxu1 }
 0xaa7   :  { %v1021_v28 = vmax.f32 %v1017_v27, 1e-30 }
 0xaa8   :  { %v7654_v29 = vpop.f32.mrf.mxu1 }
 0xaa9   :  { %8129 = vrcp.f32 %v1021_v28 }
 0xab6   :  { %v8130_v30 = vpop.eup %8129 }
 0xab7   :  { %v1023_v31 = vmul.f32 %v8130_v30, %v8602_v60 }
 0xab9   :  { %7658 = vmatmul.mubr.msk.f32.vlgmr.msra.gmra.mxu1 %vm258_vm1, %v1023_v31 }
 0xaba   :  { %7662 = vmatprep.mubr.msk.f32.mxu1 %vm8404_vm0, %v8403_v0 }
 0xb79   :  { %v1093_v32 = vpop.f32.mrf.mxu1 }
 0xb7a   :  { %v1097_v33 = vmax.f32 %v1093_v32, 1e-30 }
 0xb7b   :  { %v7659_v34 = vpop.f32.mrf.mxu1 }
 0xb7c   :  { %8131 = vrcp.f32 %v1097_v33 }
 0xb89   :  { %v8132_v38 = vpop.eup %8131 }
 0xb8a   :  { %v1099_v39 = vmul.f32 %v8132_v38, %v8567_v18 }
 0xb8c   :  { %v1104_v40 = vrot.slane %v1099_v39, %v8512_v58 }
 0xb8e   :  { %v1106_v41 = vmul.f32 %v1104_v40, %v8584_v51 }
 0xb90   :  { %1107 = vadd.xlane.f32.xlu1 %v1106_v41 }
 0xc19   :  { %v1108_v42 = vpop.xlane.xlu1 %1107 }
 0xc1a   :  { %v1109_v43 = vmax.f32 %v1108_v42, 1e-30 }
 0xc1c   :  { %8133 = vrcp.f32 %v1109_v43 }
 0xc29   :  { %v8134_v44 = vpop.eup %8133 }
 0xc2a   :  { %v1111_v45 = vmul.f32 %v8134_v44, %v8578_v35 }
 0xc2c   :  { %1114 = vperm.xlu1 %8099, %v1111_v45  }
 0xca7   :  { %v1115_v46 = vpop.permute.xlu1 %1114 }
 0xca8   :  { %v8645_v47 = vmul.f32 %v1115_v46, %v1106_v41 }
 0xcaa   :  { %7661 = vmatpush3.msra.mxu1 %v8645_v47  ;;  %7696 = vmatpush3.xpose.msra.mxu0 %v8645_v47 }
 0xcab   :  { %7663 = vmatmul.mubr.msk.f32.vlgmr.msra.gmra.mxu1 %vm258_vm1, %v8406_v17  ;;  %7665 = vmatprep.subr.mxu1 %v8403_v0 }
 0xcac   :  { %7666 = vmatpush3.xpose.msra.mxu1 %v8645_v47  ;;  %7667 = vmatprep.mubr.msk.f32.mxu1 %vm8404_vm0, %v8403_v0 }
 0xcad   :  { %7670 = vmatprep.subr.mxu1 %v8403_v0  ;;  %7705 = vmatprep.subr.mxu0 %v8403_v0 }
 0xd6b   :  { %v1184_v48 = vpop.f32.mrf.mxu1 }
 0xd6c   :  { %v1188_v49 = vmax.f32 %v1184_v48, 1e-30 }
 0xd6d   :  { %v7664_v50 = vpop.f32.mrf.mxu1 }
 0xd6e   :  { %8135 = vrcp.f32 %v1188_v49 }
 0xd7b   :  { %v8136_v51 = vpop.eup %8135 }
 0xd7c   :  { %v1190_v36 = vmul.f32 %v8136_v51, %v8567_v18 }
 0xd7e   :  { %7668 = vmatmul.mubr.f32.vlgmr.msra.gmra.mxu1 %v1190_v36 }
 0xd7f   :  { %7671 = vmatpush3.msra.mxu1 %v8645_v47  ;;  %7672 = vmatprep.mubr.msk.f32.mxu1 %vm8404_vm0, %v8403_v0 }
 0xd80   :  { %7675 = vmatprep.subr.mxu1 %v8403_v0 }
 0xe3e   :  { %v1257_v52 = vpop.f32.mrf.mxu1 }
 0xe3f   :  { %v1261_v53 = vmax.f32 %v1257_v52, 1e-30 }
 0xe40   :  { %v7669_v54 = vpop.f32.mrf.mxu1 }
 0xe41   :  { %8137 = vrcp.f32 %v1261_v53 }
 0xe4e   :  { %v8138_v55 = vpop.eup %8137 }
 0xe4f   :  { %v1263_v56 = vmul.f32 %v8138_v55, %v8602_v60 }
 0xe51   :  { %7673 = vmatmul.mubr.msk.f32.vlgmr.msra.gmra.mxu1 %vm258_vm1, %v1263_v56 }
 0xe52   :  { %7676 = vmatpush3.xpose.msra.mxu1 %v8645_v47  ;;  %7677 = vmatprep.mubr.msk.f32.mxu1 %vm8404_vm0, %v8403_v0 }
 0xe53   :  { %7680 = vmatprep.subr.mxu1 %v8403_v0 }
 0xf11   :  { %v1333_v57 = vpop.f32.mrf.mxu1 }
 0xf12   :  { %v1337_v59 = vmax.f32 %v1333_v57, 1e-30 }
 0xf13   :  { %v7674_v61 = vpop.f32.mrf.mxu1 }
 0xf14   :  { %8139 = vrcp.f32 %v1337_v59 }
 0xf21   :  { %v8140_v62 = vpop.eup %8139 }
 0xf22   :  { %v1339_v63 = vmul.f32 %v8140_v62, %v8567_v18 }
 0xf24   :  { %7678 = vmatmul.mubr.f32.vlgmr.msra.gmra.mxu1 %v1339_v63 }
 0xf25   :  { %7681 = vmatpush3.msra.mxu1 %v8645_v47  ;;  %7682 = vmatprep.mubr.msk.f32.mxu1 %vm8404_vm0, %v8403_v0 }
 0xf26   :  { %7685 = vmatprep.subr.mxu1 %v8403_v0 }
 0xfe4   :  { %v1406_v1 = vpop.f32.mrf.mxu1 }
 0xfe5   :  { %v1410_v2 = vmax.f32 %v1406_v1, 1e-30 }
 0xfe6   :  { %v7679_v3 = vpop.f32.mrf.mxu1 }
 0xfe7   :  { %8141 = vrcp.f32 %v1410_v2 }
 0xff4   :  { %v8142_v4 = vpop.eup %8141 }
 0xff5   :  { %v1412_v5 = vmul.f32 %v8142_v4, %v8602_v60 }
 0xff7   :  { %7683 = vmatmul.mubr.msk.f32.vlgmr.msra.gmra.mxu1 %vm258_vm1, %v1412_v5 }
 0xff8   :  { %7686 = vmatpush3.xpose.msra.mxu1 %v8645_v47  ;;  %7687 = vmatprep.mubr.msk.f32.mxu1 %vm8404_vm0, %v8403_v0 }
 0xff9   :  { %7690 = vmatprep.subr.mxu1 %v8403_v0 }
0x10b7   :  { %v1482_v6 = vpop.f32.mrf.mxu1 }
0x10b8   :  { %v1486_v7 = vmax.f32 %v1482_v6, 1e-30 }
0x10b9   :  { %v7684_v8 = vpop.f32.mrf.mxu1 }
0x10ba   :  { %8143 = vrcp.f32 %v1486_v7 }
0x10c7   :  { %v8144_v9 = vpop.eup %8143 }
0x10c8   :  { %v1488_v10 = vmul.f32 %v8144_v9, %v8567_v18 }
0x10ca   :  { %7688 = vmatmul.mubr.f32.vlgmr.msra.gmra.mxu1 %v1488_v10 }
0x10cb   :  { %7691 = vmatpush3.msra.mxu1 %v8645_v47  ;;  %7692 = vmatprep.mubr.msk.f32.mxu1 %vm8404_vm0, %v8403_v0 }
0x10cc   :  { %7700 = vmatprep.subr.mxu1 %v8403_v0 }
0x118a   :  { %v1555_v11 = vpop.f32.mrf.mxu1 }
0x118b   :  { %v1559_v12 = vmax.f32 %v1555_v11, 1e-30 }
0x118c   :  { %v7689_v13 = vpop.f32.mrf.mxu1 }
0x118d   :  { %8145 = vrcp.f32 %v1559_v12 }
0x119a   :  { %v8146_v14 = vpop.eup %8145 }
0x119b   :  { %v1561_v15 = vmul.f32 %v8146_v14, %v8602_v60 }
0x119d   :  { %7693 = vmatmul.mubr.msk.f32.vlgmr.msra.gmra.mxu1 %vm258_vm1, %v1561_v15 }
0x119e   :  { %7701 = vmatpush3.msra.mxu1 %v8645_v47  ;;  %7702 = vmatprep.mubr.msk.f32.mxu1 %vm8404_vm0, %v8403_v0 }
0x119f   :  { %7710 = vmatprep.subr.mxu1 %v8403_v0 }
0x125d   :  { %v1631_v16 = vpop.f32.mrf.mxu1 }
0x125e   :  { %v1635_v19 = vmax.f32 %v1631_v16, 1e-30 }
0x125f   :  { %v7694_v20 = vpop.f32.mrf.mxu1 }
0x1260   :  { %8147 = vrcp.f32 %v1635_v19 }
0x126d   :  { %v8148_v21 = vpop.eup %8147 }
0x126e   :  { %v1637_v22 = vmul.f32 %v8148_v21, %v8567_v18 }
0x1270   :  { %7698 = vmatmul.mubr.f32.vlgmr.msra.gmra.mxu0 %v1637_v22 }
0x1271   :  { %7707 = vmatprep.mubr.msk.f32.mxu0 %vm8404_vm0, %v8403_v0 }
0x1330   :  { %v1704_v23 = vpop.f32.mrf.mxu0 }
0x1331   :  { %v1708_v24 = vmax.f32 %v1704_v23, 1e-30 }
0x1332   :  { %v7699_v25 = vpop.f32.mrf.mxu0 }
0x1333   :  { %8149 = vrcp.f32 %v1708_v24 }
0x1340   :  { %v8150_v26 = vpop.eup %8149 }
0x1341   :  { %v1710_v27 = vmul.f32 %v8150_v26, %v8602_v60 }
0x1343   :  { %7703 = vmatmul.mubr.msk.f32.vlgmr.msra.gmra.mxu1 %vm258_vm1, %v1710_v27 }
0x1344   :  { %7712 = vmatprep.mubr.msk.f32.mxu1 %vm8404_vm0, %v8403_v0 }
0x1403   :  { %v1780_v28 = vpop.f32.mrf.mxu1 }
0x1404   :  { %v1784_v29 = vmax.f32 %v1780_v28, 1e-30 }
0x1405   :  { %v7704_v30 = vpop.f32.mrf.mxu1 }
0x1406   :  { %8151 = vrcp.f32 %v1784_v29 }
0x1413   :  { %v8152_v31 = vpop.eup %8151 }
0x1414   :  { %v1786_v32 = vmul.f32 %v8152_v31, %v8567_v18 }
0x1416   :  { %v1791_v33 = vrot.slane %v1786_v32, %v8512_v58 }
0x1418   :  { %v1793_v34 = vmul.f32 %v1791_v33, %v8645_v47 }
0x141a   :  { %1794 = vadd.xlane.f32.xlu0 %v1793_v34 }
0x14a3   :  { %v1795_v38 = vpop.xlane.xlu0 %1794 }
0x14a4   :  { %v1796_v39 = vmax.f32 %v1795_v38, 1e-30 }
0x14a6   :  { %8153 = vrcp.f32 %v1796_v39 }
0x14b3   :  { %v8154_v40 = vpop.eup %8153 }
0x14b4   :  { %v1798_v41 = vmul.f32 %v8154_v40, %v8578_v35 }
0x14b6   :  { %1801 = vperm.xlu1 %8099, %v1798_v41  }
0x1531   :  { %v1802_v42 = vpop.permute.xlu1 %1801 }
0x1532   :  { %v8701_v43 = vmul.f32 %v1802_v42, %v1793_v34 }
0x1534   :  { %7706 = vmatpush3.msra.mxu0 %v8701_v43  ;;  %7711 = vmatpush3.xpose.msra.mxu1 %v8701_v43 }
0x1535   :  { %7708 = vmatmul.mubr.msk.f32.vlgmr.msra.gmra.mxu0 %vm258_vm1, %v8406_v17  ;;  %7715 = vmatprep.subr.mxu0 %v8403_v0 }
0x1536   :  { %7716 = vmatpush3.msra.mxu0 %v8701_v43  ;;  %7720 = vmatprep.subr.mxu1 %v8403_v0 }
0x1537   :  { %7717 = vmatprep.mubr.msk.f32.mxu0 %vm8404_vm0, %v8403_v0  ;;  %7725 = vmatprep.subr.mxu0 %v8403_v0 }
0x15f5   :  { %v1871_v44 = vpop.f32.mrf.mxu0 }
0x15f6   :  { %v1875_v45 = vmax.f32 %v1871_v44, 1e-30 }
0x15f7   :  { %v7709_v46 = vpop.f32.mrf.mxu0 }
0x15f8   :  { %8155 = vrcp.f32 %v1875_v45 }
0x1605   :  { %v8156_v47 = vpop.eup %8155 }
0x1606   :  { %v1877_v48 = vmul.f32 %v8156_v47, %v8567_v18 }
0x1608   :  { %7713 = vmatmul.mubr.f32.vlgmr.msra.gmra.mxu1 %v1877_v48 }
0x1609   :  { %7721 = vmatpush3.xpose.msra.mxu1 %v8701_v43  ;;  %7722 = vmatprep.mubr.msk.f32.mxu1 %vm8404_vm0, %v8403_v0 }
0x160a   :  { %7730 = vmatprep.subr.mxu1 %v8403_v0 }
0x16c8   :  { %v1944_v49 = vpop.f32.mrf.mxu1 }
0x16c9   :  { %v1948_v50 = vmax.f32 %v1944_v49, 1e-30 }
0x16ca   :  { %v7714_v51 = vpop.f32.mrf.mxu1 }
0x16cb   :  { %8157 = vrcp.f32 %v1948_v50 }
0x16d8   :  { %v8158_v36 = vpop.eup %8157 }
0x16d9   :  { %v1950_v52 = vmul.f32 %v8158_v36, %v8602_v60 }
0x16db   :  { %7718 = vmatmul.mubr.msk.f32.vlgmr.msra.gmra.mxu0 %vm258_vm1, %v1950_v52 }
0x16dc   :  { %7726 = vmatpush3.msra.mxu0 %v8701_v43  ;;  %7727 = vmatprep.mubr.msk.f32.mxu0 %vm8404_vm0, %v8403_v0 }
0x16dd   :  { %7735 = vmatprep.subr.mxu0 %v8403_v0 }
0x179b   :  { %v2020_v53 = vpop.f32.mrf.mxu0 }
0x179c   :  { %v2024_v54 = vmax.f32 %v2020_v53, 1e-30 }
0x179d   :  { %v7719_v55 = vpop.f32.mrf.mxu0 }
0x179e   :  { %8159 = vrcp.f32 %v2024_v54 }
0x17ab   :  { %v8160_v56 = vpop.eup %8159 }
0x17ac   :  { %v2026_v57 = vmul.f32 %v8160_v56, %v8567_v18 }
0x17ae   :  { %7723 = vmatmul.mubr.f32.vlgmr.msra.gmra.mxu1 %v2026_v57 }
0x17af   :  { %7731 = vmatpush3.xpose.msra.mxu1 %v8701_v43  ;;  %7732 = vmatprep.mubr.msk.f32.mxu1 %vm8404_vm0, %v8403_v0 }
0x17b0   :  { %7740 = vmatprep.subr.mxu1 %v8403_v0 }
0x186e   :  { %v2093_v59 = vpop.f32.mrf.mxu1 }
0x186f   :  { %v2097_v61 = vmax.f32 %v2093_v59, 1e-30 }
0x1870   :  { %v7724_v62 = vpop.f32.mrf.mxu1 }
0x1871   :  { %8161 = vrcp.f32 %v2097_v61 }
0x187e   :  { %v8162_v63 = vpop.eup %8161 }
0x187f   :  { %v2099_v1 = vmul.f32 %v8162_v63, %v8602_v60 }
0x1881   :  { %7728 = vmatmul.mubr.msk.f32.vlgmr.msra.gmra.mxu0 %vm258_vm1, %v2099_v1 }
0x1882   :  { %7736 = vmatpush3.msra.mxu0 %v8701_v43  ;;  %7737 = vmatprep.mubr.msk.f32.mxu0 %vm8404_vm0, %v8403_v0 }
0x1883   :  { %7745 = vmatprep.subr.mxu0 %v8403_v0 }
0x1941   :  { %v2169_v2 = vpop.f32.mrf.mxu0 }
0x1942   :  { %v2173_v3 = vmax.f32 %v2169_v2, 1e-30 }
0x1943   :  { %v7729_v4 = vpop.f32.mrf.mxu0 }
0x1944   :  { %8163 = vrcp.f32 %v2173_v3 }
0x1951   :  { %v8164_v5 = vpop.eup %8163 }
0x1952   :  { %v2175_v6 = vmul.f32 %v8164_v5, %v8567_v18 }
0x1954   :  { %7733 = vmatmul.mubr.f32.vlgmr.msra.gmra.mxu1 %v2175_v6 }
0x1955   :  { %7741 = vmatpush3.xpose.msra.mxu1 %v8701_v43  ;;  %7742 = vmatprep.mubr.msk.f32.mxu1 %vm8404_vm0, %v8403_v0 }
0x1956   :  { %7750 = vmatprep.subr.mxu1 %v8403_v0 }
0x1a14   :  { %v2242_v7 = vpop.f32.mrf.mxu1 }
0x1a15   :  { %v2246_v8 = vmax.f32 %v2242_v7, 1e-30 }
0x1a16   :  { %v7734_v9 = vpop.f32.mrf.mxu1 }
0x1a17   :  { %8165 = vrcp.f32 %v2246_v8 }
0x1a24   :  { %v8166_v10 = vpop.eup %8165 }
0x1a25   :  { %v2248_v11 = vmul.f32 %v8166_v10, %v8602_v60 }
0x1a27   :  { %7738 = vmatmul.mubr.msk.f32.vlgmr.msra.gmra.mxu0 %vm258_vm1, %v2248_v11 }
0x1a28   :  { %7746 = vmatpush3.msra.mxu0 %v8701_v43  ;;  %7747 = vmatprep.mubr.msk.f32.mxu0 %vm8404_vm0, %v8403_v0 }
0x1a29   :  { %7755 = vmatprep.subr.mxu0 %v8403_v0 }
0x1ae7   :  { %v2318_v12 = vpop.f32.mrf.mxu0 }
0x1ae8   :  { %v2322_v13 = vmax.f32 %v2318_v12, 1e-30 }
0x1ae9   :  { %v7739_v14 = vpop.f32.mrf.mxu0 }
0x1aea   :  { %8167 = vrcp.f32 %v2322_v13 }
0x1af7   :  { %v8168_v15 = vpop.eup %8167 }
0x1af8   :  { %v2324_v16 = vmul.f32 %v8168_v15, %v8567_v18 }
0x1afa   :  { %7743 = vmatmul.mubr.f32.vlgmr.msra.gmra.mxu1 %v2324_v16 }
0x1afb   :  { %7752 = vmatprep.mubr.msk.f32.mxu1 %vm8404_vm0, %v8403_v0 }
0x1bba   :  { %v2391_v19 = vpop.f32.mrf.mxu1 }
0x1bbb   :  { %v2395_v20 = vmax.f32 %v2391_v19, 1e-30 }
0x1bbc   :  { %v7744_v21 = vpop.f32.mrf.mxu1 }
0x1bbd   :  { %8169 = vrcp.f32 %v2395_v20 }
0x1bca   :  { %v8170_v22 = vpop.eup %8169 }
0x1bcb   :  { %v2397_v23 = vmul.f32 %v8170_v22, %v8602_v60 }
0x1bcd   :  { %7748 = vmatmul.mubr.msk.f32.vlgmr.msra.gmra.mxu0 %vm258_vm1, %v2397_v23 }
0x1bce   :  { %7757 = vmatprep.mubr.msk.f32.mxu0 %vm8404_vm0, %v8403_v0 }
0x1c8d   :  { %v2467_v24 = vpop.f32.mrf.mxu0 }
0x1c8e   :  { %v2471_v25 = vmax.f32 %v2467_v24, 1e-30 }
0x1c8f   :  { %v7749_v26 = vpop.f32.mrf.mxu0 }
0x1c90   :  { %8171 = vrcp.f32 %v2471_v25 }
0x1c9d   :  { %v8172_v27 = vpop.eup %8171 }
0x1c9e   :  { %v2473_v28 = vmul.f32 %v8172_v27, %v8567_v18 }
0x1ca0   :  { %v2478_v29 = vrot.slane %v2473_v28, %v8512_v58 }
0x1ca2   :  { %v2480_v30 = vmul.f32 %v2478_v29, %v8701_v43 }
0x1ca4   :  { %2481 = vadd.xlane.f32.xlu1 %v2480_v30 }
0x1d2d   :  { %v2482_v31 = vpop.xlane.xlu1 %2481 }
0x1d2e   :  { %v2483_v32 = vmax.f32 %v2482_v31, 1e-30 }
0x1d30   :  { %8173 = vrcp.f32 %v2483_v32 }
0x1d3d   :  { %v8174_v33 = vpop.eup %8173 }
0x1d3e   :  { %v2485_v34 = vmul.f32 %v8174_v33, %v8578_v35 }
0x1d40   :  { %2488 = vperm.xlu0 %8100, %v2485_v34  }
0x1dbb   :  { %v2489_v38 = vpop.permute.xlu0 %2488 }
0x1dbc   :  { %v8757_v39 = vmul.f32 %v2489_v38, %v2480_v30 }
0x1dbe   :  { %7751 = vmatpush3.msra.mxu1 %v8757_v39  ;;  %7756 = vmatpush3.xpose.msra.mxu0 %v8757_v39 }
0x1dbf   :  { %7753 = vmatmul.mubr.msk.f32.vlgmr.msra.gmra.mxu1 %vm258_vm1, %v8406_v17  ;;  %7760 = vmatprep.subr.mxu1 %v8403_v0 }
0x1dc0   :  { %7761 = vmatpush3.msra.mxu1 %v8757_v39  ;;  %7765 = vmatprep.subr.mxu0 %v8403_v0 }
0x1dc1   :  { %7762 = vmatprep.mubr.msk.f32.mxu1 %vm8404_vm0, %v8403_v0  ;;  %7770 = vmatprep.subr.mxu1 %v8403_v0 }
0x1e7f   :  { %v2558_v40 = vpop.f32.mrf.mxu1 }
0x1e80   :  { %v2562_v41 = vmax.f32 %v2558_v40, 1e-30 }
0x1e81   :  { %v7754_v42 = vpop.f32.mrf.mxu1 }
0x1e82   :  { %8175 = vrcp.f32 %v2562_v41 }
0x1e8f   :  { %v8176_v43 = vpop.eup %8175 }
0x1e90   :  { %v2564_v44 = vmul.f32 %v8176_v43, %v8567_v18 }
0x1e92   :  { %7758 = vmatmul.mubr.f32.vlgmr.msra.gmra.mxu0 %v2564_v44 }
0x1e93   :  { %7766 = vmatpush3.xpose.msra.mxu0 %v8757_v39  ;;  %7767 = vmatprep.mubr.msk.f32.mxu0 %vm8404_vm0, %v8403_v0 }
0x1e94   :  { %7775 = vmatprep.subr.mxu0 %v8403_v0 }
0x1f52   :  { %v2631_v45 = vpop.f32.mrf.mxu0 }
0x1f53   :  { %v2635_v46 = vmax.f32 %v2631_v45, 1e-30 }
0x1f54   :  { %v7759_v47 = vpop.f32.mrf.mxu0 }
0x1f55   :  { %8177 = vrcp.f32 %v2635_v46 }
0x1f62   :  { %v8178_v48 = vpop.eup %8177 }
0x1f63   :  { %v2637_v49 = vmul.f32 %v8178_v48, %v8602_v60 }
0x1f65   :  { %7763 = vmatmul.mubr.msk.f32.vlgmr.msra.gmra.mxu1 %vm258_vm1, %v2637_v49 }
0x1f66   :  { %7771 = vmatpush3.msra.mxu1 %v8757_v39  ;;  %7772 = vmatprep.mubr.msk.f32.mxu1 %vm8404_vm0, %v8403_v0 }
0x1f67   :  { %7780 = vmatprep.subr.mxu1 %v8403_v0 }
0x2025   :  { %v2707_v50 = vpop.f32.mrf.mxu1 }
0x2026   :  { %v2711_v51 = vmax.f32 %v2707_v50, 1e-30 }
0x2027   :  { %v7764_v36 = vpop.f32.mrf.mxu1 }
0x2028   :  { %8179 = vrcp.f32 %v2711_v51 }
0x2035   :  { %v8180_v52 = vpop.eup %8179 }
0x2036   :  { %v2713_v53 = vmul.f32 %v8180_v52, %v8567_v18 }
0x2038   :  { %7768 = vmatmul.mubr.f32.vlgmr.msra.gmra.mxu0 %v2713_v53 }
0x2039   :  { %7776 = vmatpush3.xpose.msra.mxu0 %v8757_v39  ;;  %7777 = vmatprep.mubr.msk.f32.mxu0 %vm8404_vm0, %v8403_v0 }
0x203a   :  { %7785 = vmatprep.subr.mxu0 %v8403_v0 }
0x20f8   :  { %v2780_v54 = vpop.f32.mrf.mxu0 }
0x20f9   :  { %v2784_v55 = vmax.f32 %v2780_v54, 1e-30 }
0x20fa   :  { %v7769_v56 = vpop.f32.mrf.mxu0 }
0x20fb   :  { %8181 = vrcp.f32 %v2784_v55 }
0x2108   :  { %v8182_v57 = vpop.eup %8181 }
0x2109   :  { %v2786_v59 = vmul.f32 %v8182_v57, %v8602_v60 }
0x210b   :  { %7773 = vmatmul.mubr.msk.f32.vlgmr.msra.gmra.mxu1 %vm258_vm1, %v2786_v59 }
0x210c   :  { %7781 = vmatpush3.msra.mxu1 %v8757_v39  ;;  %7782 = vmatprep.mubr.msk.f32.mxu1 %vm8404_vm0, %v8403_v0 }
0x210d   :  { %7790 = vmatprep.subr.mxu1 %v8403_v0 }
0x21cb   :  { %v2856_v61 = vpop.f32.mrf.mxu1 }
0x21cc   :  { %v2860_v62 = vmax.f32 %v2856_v61, 1e-30 }
0x21cd   :  { %v7774_v63 = vpop.f32.mrf.mxu1 }
0x21ce   :  { %8183 = vrcp.f32 %v2860_v62 }
0x21db   :  { %v8184_v1 = vpop.eup %8183 }
0x21dc   :  { %v2862_v2 = vmul.f32 %v8184_v1, %v8567_v18 }
0x21de   :  { %7778 = vmatmul.mubr.f32.vlgmr.msra.gmra.mxu0 %v2862_v2 }
0x21df   :  { %7786 = vmatpush3.xpose.msra.mxu0 %v8757_v39  ;;  %7787 = vmatprep.mubr.msk.f32.mxu0 %vm8404_vm0, %v8403_v0 }
0x21e0   :  { %7795 = vmatprep.subr.mxu0 %v8403_v0 }
0x229e   :  { %v2929_v3 = vpop.f32.mrf.mxu0 }
0x229f   :  { %v2933_v4 = vmax.f32 %v2929_v3, 1e-30 }
0x22a0   :  { %v7779_v5 = vpop.f32.mrf.mxu0 }
0x22a1   :  { %8185 = vrcp.f32 %v2933_v4 }
0x22ae   :  { %v8186_v6 = vpop.eup %8185 }
0x22af   :  { %v2935_v7 = vmul.f32 %v8186_v6, %v8602_v60 }
0x22b1   :  { %7783 = vmatmul.mubr.msk.f32.vlgmr.msra.gmra.mxu1 %vm258_vm1, %v2935_v7  ;;  %v8861_v7 = vld [vmem:[%s9181_s4] sm:$0x1] }
0x22b2   :  { %7791 = vmatpush3.msra.mxu1 %v8757_v39  ;;  %7792 = vmatprep.mubr.msk.f32.mxu1 %vm8404_vm0, %v8403_v0 }
0x22b3   :  { %7800 = vmatprep.subr.mxu1 %v8403_v0 }
0x2371   :  { %v3005_v8 = vpop.f32.mrf.mxu1 }
0x2372   :  { %v3009_v9 = vmax.f32 %v3005_v8, 1e-30 }
0x2373   :  { %v7784_v10 = vpop.f32.mrf.mxu1 }
0x2374   :  { %8187 = vrcp.f32 %v3009_v9 }
0x2381   :  { %v8188_v11 = vpop.eup %8187 }
0x2382   :  { %v3011_v12 = vmul.f32 %v8188_v11, %v8567_v18 }
0x2384   :  { %7788 = vmatmul.mubr.f32.vlgmr.msra.gmra.mxu0 %v3011_v12 }
0x2385   :  { %7797 = vmatprep.mubr.msk.f32.mxu0 %vm8404_vm0, %v8403_v0 }
0x2444   :  { %v3078_v13 = vpop.f32.mrf.mxu0 }
0x2445   :  { %v3082_v14 = vmax.f32 %v3078_v13, 1e-30 }
0x2446   :  { %v7789_v15 = vpop.f32.mrf.mxu0 }
0x2447   :  { %8189 = vrcp.f32 %v3082_v14 }
0x2454   :  { %v8190_v16 = vpop.eup %8189 }
0x2455   :  { %v3084_v19 = vmul.f32 %v8190_v16, %v8602_v60 }
0x2457   :  { %7793 = vmatmul.mubr.msk.f32.vlgmr.msra.gmra.mxu1 %vm258_vm1, %v3084_v19 }
0x2458   :  { %7802 = vmatprep.mubr.msk.f32.mxu1 %vm8404_vm0, %v8403_v0 }
0x2517   :  { %v3154_v20 = vpop.f32.mrf.mxu1 }
0x2518   :  { %v3158_v21 = vmax.f32 %v3154_v20, 1e-30 }
0x2519   :  { %v7794_v22 = vpop.f32.mrf.mxu1 }
0x251a   :  { %8191 = vrcp.f32 %v3158_v21 }
0x2527   :  { %v8192_v23 = vpop.eup %8191 }
0x2528   :  { %v3160_v24 = vmul.f32 %v8192_v23, %v8567_v18 }
0x252a   :  { %v3165_v25 = vrot.slane %v3160_v24, %v8512_v58 }
0x252c   :  { %v3167_v26 = vmul.f32 %v3165_v25, %v8757_v39 }
0x252e   :  { %3168 = vadd.xlane.f32.xlu1 %v3167_v26 }
0x25b7   :  { %v3169_v27 = vpop.xlane.xlu1 %3168 }
0x25b8   :  { %v3170_v28 = vmax.f32 %v3169_v27, 1e-30 }
0x25ba   :  { %8193 = vrcp.f32 %v3170_v28 }
0x25c7   :  { %v8194_v29 = vpop.eup %8193 }
0x25c8   :  { %v3172_v30 = vmul.f32 %v8194_v29, %v8578_v35 }
0x25ca   :  { %3175 = vperm.xlu1 %8099, %v3172_v30  }
0x2645   :  { %v3176_v31 = vpop.permute.xlu1 %3175 }
0x2646   :  { %v8813_v32 = vmul.f32 %v3176_v31, %v3167_v26  ;;  %v8876_v26 = vld [vmem:[%s9179_s2] sm:$0xff] }
0x2648   :  { %7796 = vmatpush3.msra.mxu0 %v8813_v32  ;;  %7801 = vmatpush3.xpose.msra.mxu1 %v8813_v32 }
0x2649   :  { %7798 = vmatmul.mubr.msk.f32.vlgmr.msra.gmra.mxu0 %vm258_vm1, %v8406_v17  ;;  %7805 = vmatprep.subr.mxu0 %v8403_v0 }
0x264a   :  { %7806 = vmatpush3.msra.mxu0 %v8813_v32  ;;  %7810 = vmatprep.subr.mxu1 %v8403_v0 }
0x264b   :  { %7807 = vmatprep.mubr.msk.f32.mxu0 %vm8404_vm0, %v8403_v0  ;;  %7815 = vmatprep.subr.mxu0 %v8403_v0 }
0x2709   :  { %v3245_v33 = vpop.f32.mrf.mxu0 }
0x270a   :  { %v3249_v34 = vmax.f32 %v3245_v33, 1e-30 }
0x270b   :  { %v7799_v38 = vpop.f32.mrf.mxu0 }
0x270c   :  { %8195 = vrcp.f32 %v3249_v34 }
0x2719   :  { %v8196_v39 = vpop.eup %8195 }
0x271a   :  { %v3251_v40 = vmul.f32 %v8196_v39, %v8567_v18 }
0x271c   :  { %7803 = vmatmul.mubr.f32.vlgmr.msra.gmra.mxu1 %v3251_v40 }
0x271d   :  { %7811 = vmatpush3.xpose.msra.mxu1 %v8813_v32  ;;  %7812 = vmatprep.mubr.msk.f32.mxu1 %vm8404_vm0, %v8403_v0 }
0x271e   :  { %7820 = vmatprep.subr.mxu1 %v8403_v0 }
0x27dc   :  { %v3318_v41 = vpop.f32.mrf.mxu1 }
0x27dd   :  { %v3322_v42 = vmax.f32 %v3318_v41, 1e-30 }
0x27de   :  { %v7804_v43 = vpop.f32.mrf.mxu1 }
0x27df   :  { %8197 = vrcp.f32 %v3322_v42 }
0x27ec   :  { %v8198_v44 = vpop.eup %8197 }
0x27ed   :  { %v3324_v45 = vmul.f32 %v8198_v44, %v8602_v60 }
0x27ef   :  { %7808 = vmatmul.mubr.msk.f32.vlgmr.msra.gmra.mxu0 %vm258_vm1, %v3324_v45 }
0x27f0   :  { %7816 = vmatpush3.msra.mxu0 %v8813_v32  ;;  %7817 = vmatprep.mubr.msk.f32.mxu0 %vm8404_vm0, %v8403_v0 }
0x27f1   :  { %7825 = vmatprep.subr.mxu0 %v8403_v0 }
0x28af   :  { %v3394_v46 = vpop.f32.mrf.mxu0 }
0x28b0   :  { %v3398_v47 = vmax.f32 %v3394_v46, 1e-30 }
0x28b1   :  { %v7809_v48 = vpop.f32.mrf.mxu0 }
0x28b2   :  { %8199 = vrcp.f32 %v3398_v47 }
0x28bf   :  { %v8200_v49 = vpop.eup %8199 }
0x28c0   :  { %v3400_v50 = vmul.f32 %v8200_v49, %v8567_v18 }
0x28c2   :  { %7813 = vmatmul.mubr.f32.vlgmr.msra.gmra.mxu1 %v3400_v50 }
0x28c3   :  { %7821 = vmatpush3.xpose.msra.mxu1 %v8813_v32  ;;  %7822 = vmatprep.mubr.msk.f32.mxu1 %vm8404_vm0, %v8403_v0 }
0x28c4   :  { %7830 = vmatprep.subr.mxu1 %v8403_v0 }
0x2982   :  { %v3467_v51 = vpop.f32.mrf.mxu1 }
0x2983   :  { %v3471_v36 = vmax.f32 %v3467_v51, 1e-30  ;;  %v8910_v51 = vld [vmem:[%s9180_s3] sm:$0x1] }
0x2984   :  { %v7814_v52 = vpop.f32.mrf.mxu1 }
0x2985   :  { %8201 = vrcp.f32 %v3471_v36 }
0x2992   :  { %v8202_v53 = vpop.eup %8201 }
0x2993   :  { %v3473_v54 = vmul.f32 %v8202_v53, %v8602_v60 }
0x2995   :  { %7818 = vmatmul.mubr.msk.f32.vlgmr.msra.gmra.mxu0 %vm258_vm1, %v3473_v54 }
0x2996   :  { %7826 = vmatpush3.msra.mxu0 %v8813_v32  ;;  %7827 = vmatprep.mubr.msk.f32.mxu0 %vm8404_vm0, %v8403_v0 }
0x2997   :  { %7835 = vmatprep.subr.mxu0 %v8403_v0 }
0x2a55   :  { %v3543_v55 = vpop.f32.mrf.mxu0 }
0x2a56   :  { %v3547_v56 = vmax.f32 %v3543_v55, 1e-30 }
0x2a57   :  { %v7819_v57 = vpop.f32.mrf.mxu0 }
0x2a58   :  { %8203 = vrcp.f32 %v3547_v56 }
0x2a65   :  { %v8204_v59 = vpop.eup %8203 }
0x2a66   :  { %v3549_v61 = vmul.f32 %v8204_v59, %v8567_v18 }
0x2a68   :  { %7823 = vmatmul.mubr.f32.vlgmr.msra.gmra.mxu1 %v3549_v61 }
0x2a69   :  { %7831 = vmatpush3.xpose.msra.mxu1 %v8813_v32  ;;  %7832 = vmatprep.mubr.msk.f32.mxu1 %vm8404_vm0, %v8403_v0 }
0x2a6a   :  { %7840 = vmatprep.subr.mxu1 %v8403_v0 }
0x2b28   :  { %v3616_v62 = vpop.f32.mrf.mxu1 }
0x2b29   :  { %v3620_v63 = vmax.f32 %v3616_v62, 1e-30 }
0x2b2a   :  { %v7824_v1 = vpop.f32.mrf.mxu1 }
0x2b2b   :  { %8205 = vrcp.f32 %v3620_v63 }
0x2b38   :  { %v8206_v2 = vpop.eup %8205 }
0x2b39   :  { %v3622_v3 = vmul.f32 %v8206_v2, %v8602_v60 }
0x2b3b   :  { %7828 = vmatmul.mubr.msk.f32.vlgmr.msra.gmra.mxu0 %vm258_vm1, %v3622_v3 }
0x2b3c   :  { %7836 = vmatpush3.msra.mxu0 %v8813_v32  ;;  %7837 = vmatprep.mubr.msk.f32.mxu0 %vm8404_vm0, %v8403_v0 }
0x2b3d   :  { %7845 = vmatprep.subr.mxu0 %v8403_v0 }
0x2bfb   :  { %v3692_v18 = vpop.f32.mrf.mxu0 }
0x2bfc   :  { %v3696_v4 = vmax.f32 %v3692_v18, 1e-30 }
0x2bfd   :  { %v7829_v5 = vpop.f32.mrf.mxu0 }
0x2bfe   :  { %8207 = vrcp.f32 %v3696_v4 }
0x2c0b   :  { %v8208_v6 = vpop.eup %8207 }
0x2c0c   :  { %v3698_v8 = vmul.f32 %v8861_v7, %v8208_v6 }
0x2c0e   :  { %7833 = vmatmul.mubr.f32.vlgmr.msra.gmra.mxu1 %v3698_v8 }
0x2c0f   :  { %7842 = vmatprep.mubr.msk.f32.mxu1 %vm8404_vm0, %v8403_v0 }
0x2cce   :  { %v3765_v9 = vpop.f32.mrf.mxu1 }
0x2ccf   :  { %v3769_v10 = vmax.f32 %v3765_v9, 1e-30 }
0x2cd0   :  { %v7834_v11 = vpop.f32.mrf.mxu1 }
0x2cd1   :  { %8209 = vrcp.f32 %v3769_v10 }
0x2cde   :  { %v8210_v12 = vpop.eup %8209 }
0x2cdf   :  { %v3771_v13 = vmul.f32 %v8210_v12, %v8602_v60 }
0x2ce1   :  { %7838 = vmatmul.mubr.msk.f32.vlgmr.msra.gmra.mxu0 %vm258_vm1, %v3771_v13 }
0x2ce2   :  { %7847 = vmatprep.mubr.msk.f32.mxu0 %vm8404_vm0, %v8403_v0 }
0x2da1   :  { %v3841_v14 = vpop.f32.mrf.mxu0 }
0x2da2   :  { %v3845_v15 = vmax.f32 %v3841_v14, 1e-30 }
0x2da3   :  { %v7839_v16 = vpop.f32.mrf.mxu0 }
0x2da4   :  { %8211 = vrcp.f32 %v3845_v15 }
0x2db1   :  { %v8212_v19 = vpop.eup %8211 }
0x2db2   :  { %v3847_v20 = vmul.f32 %v8861_v7, %v8212_v19 }
0x2db4   :  { %v3852_v21 = vrot.slane %v3847_v20, %v8512_v58 }
0x2db6   :  { %v3854_v22 = vmul.f32 %v3852_v21, %v8813_v32 }
0x2db8   :  { %3855 = vadd.xlane.f32.xlu1 %v3854_v22 }
0x2e41   :  { %v3856_v23 = vpop.xlane.xlu1 %3855 }
0x2e42   :  { %v3857_v24 = vmax.f32 %v3856_v23, 1e-30 }
0x2e44   :  { %8213 = vrcp.f32 %v3857_v24 }
0x2e51   :  { %v8214_v25 = vpop.eup %8213 }
0x2e52   :  { %v3859_v27 = vmul.f32 %v8876_v26, %v8214_v25 }
0x2e54   :  { %3862 = vperm.xlu0 %8100, %v3859_v27  }
0x2ecf   :  { %v3863_v28 = vpop.permute.xlu0 %3862 }
0x2ed0   :  { %v8879_v29 = vmul.f32 %v3863_v28, %v3854_v22 }
0x2ed2   :  { %7841 = vmatpush3.msra.mxu1 %v8879_v29  ;;  %7846 = vmatpush3.xpose.msra.mxu0 %v8879_v29 }
0x2ed3   :  { %7843 = vmatmul.mubr.msk.f32.vlgmr.msra.gmra.mxu1 %vm258_vm1, %v8406_v17  ;;  %7850 = vmatprep.subr.mxu1 %v8403_v0 }
0x2ed4   :  { %7851 = vmatpush3.msra.mxu1 %v8879_v29  ;;  %7855 = vmatprep.subr.mxu0 %v8403_v0 }
0x2ed5   :  { %7852 = vmatprep.mubr.msk.f32.mxu1 %vm8404_vm0, %v8403_v0  ;;  %7860 = vmatprep.subr.mxu1 %v8403_v0 }
0x2f93   :  { %v3932_v30 = vpop.f32.mrf.mxu1 }
0x2f94   :  { %v3936_v31 = vmax.f32 %v3932_v30, 1e-30 }
0x2f95   :  { %v7844_v32 = vpop.f32.mrf.mxu1 }
0x2f96   :  { %8215 = vrcp.f32 %v3936_v31 }
0x2fa3   :  { %v8216_v33 = vpop.eup %8215 }
0x2fa4   :  { %v3938_v34 = vmul.f32 %v8861_v7, %v8216_v33 }
0x2fa6   :  { %7848 = vmatmul.mubr.f32.vlgmr.msra.gmra.mxu0 %v3938_v34 }
0x2fa7   :  { %7856 = vmatpush3.xpose.msra.mxu0 %v8879_v29  ;;  %7857 = vmatprep.mubr.msk.f32.mxu0 %vm8404_vm0, %v8403_v0 }
0x2fa8   :  { %7865 = vmatprep.subr.mxu0 %v8403_v0 }
0x3066   :  { %v4005_v38 = vpop.f32.mrf.mxu0 }
0x3067   :  { %v4009_v39 = vmax.f32 %v4005_v38, 1e-30 }
0x3068   :  { %v7849_v40 = vpop.f32.mrf.mxu0 }
0x3069   :  { %8217 = vrcp.f32 %v4009_v39 }
0x3076   :  { %v8218_v41 = vpop.eup %8217 }
0x3077   :  { %v4011_v42 = vmul.f32 %v8218_v41, %v8602_v60 }
0x3079   :  { %7853 = vmatmul.mubr.msk.f32.vlgmr.msra.gmra.mxu1 %vm258_vm1, %v4011_v42 }
0x307a   :  { %7861 = vmatpush3.msra.mxu1 %v8879_v29  ;;  %7862 = vmatprep.mubr.msk.f32.mxu1 %vm8404_vm0, %v8403_v0 }
0x307b   :  { %7870 = vmatprep.subr.mxu1 %v8403_v0 }
0x3139   :  { %v4081_v43 = vpop.f32.mrf.mxu1 }
0x313a   :  { %v4085_v44 = vmax.f32 %v4081_v43, 1e-30 }
0x313b   :  { %v7854_v45 = vpop.f32.mrf.mxu1 }
0x313c   :  { %8219 = vrcp.f32 %v4085_v44 }
0x3149   :  { %v8220_v46 = vpop.eup %8219 }
0x314a   :  { %v4087_v47 = vmul.f32 %v8861_v7, %v8220_v46 }
0x314c   :  { %7858 = vmatmul.mubr.f32.vlgmr.msra.gmra.mxu0 %v4087_v47 }
0x314d   :  { %7866 = vmatpush3.xpose.msra.mxu0 %v8879_v29  ;;  %7867 = vmatprep.mubr.msk.f32.mxu0 %vm8404_vm0, %v8403_v0 }
0x314e   :  { %7875 = vmatprep.subr.mxu0 %v8403_v0 }
0x320c   :  { %v4154_v60 = vpop.f32.mrf.mxu0 }
0x320d   :  { %v4158_v48 = vmax.f32 %v4154_v60, 1e-30 }
0x320e   :  { %v7859_v49 = vpop.f32.mrf.mxu0 }
0x320f   :  { %8221 = vrcp.f32 %v4158_v48 }
0x321c   :  { %v8222_v50 = vpop.eup %8221 }
0x321d   :  { %v4160_v36 = vmul.f32 %v8910_v51, %v8222_v50 }
0x321f   :  { %7863 = vmatmul.mubr.msk.f32.vlgmr.msra.gmra.mxu1 %vm258_vm1, %v4160_v36 }
0x3220   :  { %7871 = vmatpush3.msra.mxu1 %v8879_v29  ;;  %7872 = vmatprep.mubr.msk.f32.mxu1 %vm8404_vm0, %v8403_v0 }
0x3221   :  { %7880 = vmatprep.subr.mxu1 %v8403_v0 }
0x32df   :  { %v4230_v52 = vpop.f32.mrf.mxu1 }
0x32e0   :  { %v4234_v53 = vmax.f32 %v4230_v52, 1e-30 }
0x32e1   :  { %v7864_v54 = vpop.f32.mrf.mxu1 }
0x32e2   :  { %8223 = vrcp.f32 %v4234_v53 }
0x32ef   :  { %v8224_v55 = vpop.eup %8223 }
0x32f0   :  { %v4236_v56 = vmul.f32 %v8861_v7, %v8224_v55 }
0x32f2   :  { %7868 = vmatmul.mubr.f32.vlgmr.msra.gmra.mxu0 %v4236_v56 }
0x32f3   :  { %7876 = vmatpush3.xpose.msra.mxu0 %v8879_v29  ;;  %7877 = vmatprep.mubr.msk.f32.mxu0 %vm8404_vm0, %v8403_v0 }
0x32f4   :  { %7885 = vmatprep.subr.mxu0 %v8403_v0 }
0x33b2   :  { %v4303_v57 = vpop.f32.mrf.mxu0 }
0x33b3   :  { %v4307_v59 = vmax.f32 %v4303_v57, 1e-30 }
0x33b4   :  { %v7869_v61 = vpop.f32.mrf.mxu0 }
0x33b5   :  { %8225 = vrcp.f32 %v4307_v59 }
0x33c2   :  { %v8226_v62 = vpop.eup %8225 }
0x33c3   :  { %v4309_v63 = vmul.f32 %v8910_v51, %v8226_v62 }
0x33c5   :  { %7873 = vmatmul.mubr.msk.f32.vlgmr.msra.gmra.mxu1 %vm258_vm1, %v4309_v63 }
0x33c6   :  { %7881 = vmatpush3.msra.mxu1 %v8879_v29  ;;  %7882 = vmatprep.mubr.msk.f32.mxu1 %vm8404_vm0, %v8403_v0 }
0x33c7   :  { %7890 = vmatprep.subr.mxu1 %v8403_v0 }
0x3485   :  { %v4379_v1 = vpop.f32.mrf.mxu1 }
0x3486   :  { %v4383_v2 = vmax.f32 %v4379_v1, 1e-30 }
0x3487   :  { %v7874_v3 = vpop.f32.mrf.mxu1 }
0x3488   :  { %8227 = vrcp.f32 %v4383_v2 }
0x3495   :  { %v8228_v18 = vpop.eup %8227 }
0x3496   :  { %v4385_v4 = vmul.f32 %v8861_v7, %v8228_v18 }
0x3498   :  { %7878 = vmatmul.mubr.f32.vlgmr.msra.gmra.mxu0 %v4385_v4 }
0x3499   :  { %7887 = vmatprep.mubr.msk.f32.mxu0 %vm8404_vm0, %v8403_v0 }
0x3558   :  { %v4452_v5 = vpop.f32.mrf.mxu0 }
0x3559   :  { %v4456_v6 = vmax.f32 %v4452_v5, 1e-30 }
0x355a   :  { %v7879_v8 = vpop.f32.mrf.mxu0 }
0x355b   :  { %8229 = vrcp.f32 %v4456_v6 }
0x3568   :  { %v8230_v9 = vpop.eup %8229 }
0x3569   :  { %v4458_v10 = vmul.f32 %v8910_v51, %v8230_v9 }
0x356b   :  { %7883 = vmatmul.mubr.msk.f32.vlgmr.msra.gmra.mxu1 %vm258_vm1, %v4458_v10 }
0x356c   :  { %7892 = vmatprep.mubr.msk.f32.mxu1 %vm8404_vm0, %v8403_v0 }
0x362b   :  { %v4528_v11 = vpop.f32.mrf.mxu1 }
0x362c   :  { %v4532_v12 = vmax.f32 %v4528_v11, 1e-30 }
0x362d   :  { %v7884_v13 = vpop.f32.mrf.mxu1 }
0x362e   :  { %8231 = vrcp.f32 %v4532_v12 }
0x363b   :  { %v8232_v14 = vpop.eup %8231 }
0x363c   :  { %v4534_v15 = vmul.f32 %v8861_v7, %v8232_v14 }
0x363e   :  { %v4539_v16 = vrot.slane %v4534_v15, %v8512_v58 }
0x3640   :  { %v4541_v19 = vmul.f32 %v4539_v16, %v8879_v29 }
0x3642   :  { %4542 = vadd.xlane.f32.xlu0 %v4541_v19 }
0x36cb   :  { %v4543_v20 = vpop.xlane.xlu0 %4542 }
0x36cc   :  { %v4544_v21 = vmax.f32 %v4543_v20, 1e-30 }
0x36ce   :  { %8233 = vrcp.f32 %v4544_v21 }
0x36db   :  { %v8234_v22 = vpop.eup %8233 }
0x36dc   :  { %v4546_v23 = vmul.f32 %v8876_v26, %v8234_v22 }
0x36de   :  { %4549 = vperm.xlu1 %8099, %v4546_v23  }
0x3759   :  { %v4550_v24 = vpop.permute.xlu1 %4549 }
0x375a   :  { %v8940_v25 = vmul.f32 %v4550_v24, %v4541_v19 }
0x375c   :  { %7886 = vmatpush3.msra.mxu0 %v8940_v25  ;;  %7891 = vmatpush3.xpose.msra.mxu1 %v8940_v25 }
0x375d   :  { %7888 = vmatmul.mubr.msk.f32.vlgmr.msra.gmra.mxu0 %vm258_vm1, %v8406_v17  ;;  %7895 = vmatprep.subr.mxu0 %v8403_v0 }
0x375e   :  { %7896 = vmatpush3.msra.mxu0 %v8940_v25  ;;  %7900 = vmatprep.subr.mxu1 %v8403_v0 }
0x375f   :  { %7897 = vmatprep.mubr.msk.f32.mxu0 %vm8404_vm0, %v8403_v0  ;;  %7905 = vmatprep.subr.mxu0 %v8403_v0 }
0x381d   :  { %v4619_v27 = vpop.f32.mrf.mxu0 }
0x381e   :  { %v4623_v28 = vmax.f32 %v4619_v27, 1e-30 }
0x381f   :  { %v7889_v29 = vpop.f32.mrf.mxu0 }
0x3820   :  { %8235 = vrcp.f32 %v4623_v28 }
0x382d   :  { %v8236_v30 = vpop.eup %8235 }
0x382e   :  { %v4625_v31 = vmul.f32 %v8861_v7, %v8236_v30 }
0x3830   :  { %7893 = vmatmul.mubr.f32.vlgmr.msra.gmra.mxu1 %v4625_v31 }
0x3831   :  { %7901 = vmatpush3.xpose.msra.mxu1 %v8940_v25  ;;  %7902 = vmatprep.mubr.msk.f32.mxu1 %vm8404_vm0, %v8403_v0 }
0x3832   :  { %7910 = vmatprep.subr.mxu1 %v8403_v0 }
0x38f0   :  { %v4692_v32 = vpop.f32.mrf.mxu1 }
0x38f1   :  { %v4696_v33 = vmax.f32 %v4692_v32, 1e-30 }
0x38f2   :  { %v7894_v34 = vpop.f32.mrf.mxu1 }
0x38f3   :  { %8237 = vrcp.f32 %v4696_v33 }
0x3900   :  { %v8238_v38 = vpop.eup %8237 }
0x3901   :  { %v4698_v39 = vmul.f32 %v8910_v51, %v8238_v38 }
0x3903   :  { %7898 = vmatmul.mubr.msk.f32.vlgmr.msra.gmra.mxu0 %vm258_vm1, %v4698_v39 }
0x3904   :  { %7906 = vmatpush3.msra.mxu0 %v8940_v25  ;;  %7907 = vmatprep.mubr.msk.f32.mxu0 %vm8404_vm0, %v8403_v0 }
0x3905   :  { %7915 = vmatprep.subr.mxu0 %v8403_v0 }
0x39c3   :  { %v4768_v40 = vpop.f32.mrf.mxu0 }
0x39c4   :  { %v4772_v41 = vmax.f32 %v4768_v40, 1e-30 }
0x39c5   :  { %v7899_v42 = vpop.f32.mrf.mxu0 }
0x39c6   :  { %8239 = vrcp.f32 %v4772_v41 }
0x39d3   :  { %v8240_v43 = vpop.eup %8239 }
0x39d4   :  { %v4774_v44 = vmul.f32 %v8861_v7, %v8240_v43 }
0x39d6   :  { %7903 = vmatmul.mubr.f32.vlgmr.msra.gmra.mxu1 %v4774_v44 }
0x39d7   :  { %7911 = vmatpush3.xpose.msra.mxu1 %v8940_v25  ;;  %7912 = vmatprep.mubr.msk.f32.mxu1 %vm8404_vm0, %v8403_v0 }
0x39d8   :  { %7920 = vmatprep.subr.mxu1 %v8403_v0 }
0x3a96   :  { %v4841_v45 = vpop.f32.mrf.mxu1 }
0x3a97   :  { %v4845_v46 = vmax.f32 %v4841_v45, 1e-30 }
0x3a98   :  { %v7904_v47 = vpop.f32.mrf.mxu1 }
0x3a99   :  { %8241 = vrcp.f32 %v4845_v46 }
0x3aa6   :  { %v8242_v60 = vpop.eup %8241 }
0x3aa7   :  { %v4847_v48 = vmul.f32 %v8910_v51, %v8242_v60 }
0x3aa9   :  { %7908 = vmatmul.mubr.msk.f32.vlgmr.msra.gmra.mxu0 %vm258_vm1, %v4847_v48 }
0x3aaa   :  { %7916 = vmatpush3.msra.mxu0 %v8940_v25  ;;  %7917 = vmatprep.mubr.msk.f32.mxu0 %vm8404_vm0, %v8403_v0 }
0x3aab   :  { %7925 = vmatprep.subr.mxu0 %v8403_v0 }
0x3b69   :  { %v4917_v49 = vpop.f32.mrf.mxu0 }
0x3b6a   :  { %v4921_v50 = vmax.f32 %v4917_v49, 1e-30 }
0x3b6b   :  { %v7909_v36 = vpop.f32.mrf.mxu0 }
0x3b6c   :  { %8243 = vrcp.f32 %v4921_v50 }
0x3b79   :  { %v8244_v52 = vpop.eup %8243 }
0x3b7a   :  { %v4923_v53 = vmul.f32 %v8861_v7, %v8244_v52 }
0x3b7c   :  { %7913 = vmatmul.mubr.f32.vlgmr.msra.gmra.mxu1 %v4923_v53 }
0x3b7d   :  { %7921 = vmatpush3.xpose.msra.mxu1 %v8940_v25  ;;  %7922 = vmatprep.mubr.msk.f32.mxu1 %vm8404_vm0, %v8403_v0 }
0x3b7e   :  { %7930 = vmatprep.subr.mxu1 %v8403_v0 }
0x3c3c   :  { %v4990_v54 = vpop.f32.mrf.mxu1 }
0x3c3d   :  { %v4994_v55 = vmax.f32 %v4990_v54, 1e-30 }
0x3c3e   :  { %v7914_v56 = vpop.f32.mrf.mxu1 }
0x3c3f   :  { %8245 = vrcp.f32 %v4994_v55 }
0x3c4c   :  { %v8246_v57 = vpop.eup %8245 }
0x3c4d   :  { %v4996_v59 = vmul.f32 %v8910_v51, %v8246_v57 }
0x3c4f   :  { %7918 = vmatmul.mubr.msk.f32.vlgmr.msra.gmra.mxu0 %vm258_vm1, %v4996_v59 }
0x3c50   :  { %7926 = vmatpush3.msra.mxu0 %v8940_v25  ;;  %7927 = vmatprep.mubr.msk.f32.mxu0 %vm8404_vm0, %v8403_v0 }
0x3c51   :  { %7935 = vmatprep.subr.mxu0 %v8403_v0 }
0x3d0f   :  { %v5066_v61 = vpop.f32.mrf.mxu0 }
0x3d10   :  { %v5070_v62 = vmax.f32 %v5066_v61, 1e-30 }
0x3d11   :  { %v7919_v63 = vpop.f32.mrf.mxu0 }
0x3d12   :  { %8247 = vrcp.f32 %v5070_v62 }
0x3d1f   :  { %v8248_v1 = vpop.eup %8247 }
0x3d20   :  { %v5072_v2 = vmul.f32 %v8861_v7, %v8248_v1 }
0x3d22   :  { %7923 = vmatmul.mubr.f32.vlgmr.msra.gmra.mxu1 %v5072_v2 }
0x3d23   :  { %7932 = vmatprep.mubr.msk.f32.mxu1 %vm8404_vm0, %v8403_v0 }
0x3de2   :  { %v5139_v3 = vpop.f32.mrf.mxu1 }
0x3de3   :  { %v5143_v18 = vmax.f32 %v5139_v3, 1e-30 }
0x3de4   :  { %v7924_v4 = vpop.f32.mrf.mxu1 }
0x3de5   :  { %8249 = vrcp.f32 %v5143_v18 }
0x3df2   :  { %v8250_v5 = vpop.eup %8249 }
0x3df3   :  { %v5145_v6 = vmul.f32 %v8910_v51, %v8250_v5 }
0x3df5   :  { %7928 = vmatmul.mubr.msk.f32.vlgmr.msra.gmra.mxu0 %vm258_vm1, %v5145_v6 }
0x3df6   :  { %7937 = vmatprep.mubr.msk.f32.mxu0 %vm8404_vm0, %v8403_v0 }
0x3eb5   :  { %v5215_v8 = vpop.f32.mrf.mxu0 }
0x3eb6   :  { %v5219_v9 = vmax.f32 %v5215_v8, 1e-30 }
0x3eb7   :  { %v7929_v10 = vpop.f32.mrf.mxu0 }
0x3eb8   :  { %8251 = vrcp.f32 %v5219_v9 }
0x3ec5   :  { %v8252_v11 = vpop.eup %8251 }
0x3ec6   :  { %v5221_v12 = vmul.f32 %v8861_v7, %v8252_v11 }
0x3ec8   :  { %v5226_v13 = vrot.slane %v5221_v12, %v8512_v58 }
0x3eca   :  { %v5228_v14 = vmul.f32 %v5226_v13, %v8940_v25 }
0x3ecc   :  { %5229 = vadd.xlane.f32.xlu0 %v5228_v14 }
0x3f55   :  { %v5230_v15 = vpop.xlane.xlu0 %5229 }
0x3f56   :  { %v5231_v16 = vmax.f32 %v5230_v15, 1e-30 }
0x3f58   :  { %8253 = vrcp.f32 %v5231_v16 }
0x3f65   :  { %v8254_v19 = vpop.eup %8253 }
0x3f66   :  { %v5233_v20 = vmul.f32 %v8876_v26, %v8254_v19 }
0x3f68   :  { %5236 = vperm.xlu0 %8100, %v5233_v20  }
0x3fe3   :  { %v5237_v21 = vpop.permute.xlu0 %5236 }
0x3fe4   :  { %v8996_v22 = vmul.f32 %v5237_v21, %v5228_v14 }
0x3fe6   :  { %7931 = vmatpush3.msra.mxu1 %v8996_v22  ;;  %7936 = vmatpush3.xpose.msra.mxu0 %v8996_v22 }
0x3fe7   :  { %7933 = vmatmul.mubr.msk.f32.vlgmr.msra.gmra.mxu1 %vm258_vm1, %v8406_v17  ;;  %7940 = vmatprep.subr.mxu1 %v8403_v0 }
0x3fe8   :  { %7941 = vmatpush3.msra.mxu1 %v8996_v22  ;;  %7945 = vmatprep.subr.mxu0 %v8403_v0 }
0x3fe9   :  { %7942 = vmatprep.mubr.msk.f32.mxu1 %vm8404_vm0, %v8403_v0  ;;  %7950 = vmatprep.subr.mxu1 %v8403_v0 }
0x40a7   :  { %v5306_v23 = vpop.f32.mrf.mxu1 }
0x40a8   :  { %v5310_v24 = vmax.f32 %v5306_v23, 1e-30 }
0x40a9   :  { %v7934_v25 = vpop.f32.mrf.mxu1 }
0x40aa   :  { %8255 = vrcp.f32 %v5310_v24 }
0x40b7   :  { %v8256_v27 = vpop.eup %8255 }
0x40b8   :  { %v5312_v28 = vmul.f32 %v8861_v7, %v8256_v27 }
0x40ba   :  { %7938 = vmatmul.mubr.f32.vlgmr.msra.gmra.mxu0 %v5312_v28 }
0x40bb   :  { %7946 = vmatpush3.xpose.msra.mxu0 %v8996_v22  ;;  %7947 = vmatprep.mubr.msk.f32.mxu0 %vm8404_vm0, %v8403_v0 }
0x40bc   :  { %7955 = vmatprep.subr.mxu0 %v8403_v0 }
0x417a   :  { %v5379_v29 = vpop.f32.mrf.mxu0 }
0x417b   :  { %v5383_v30 = vmax.f32 %v5379_v29, 1e-30 }
0x417c   :  { %v7939_v31 = vpop.f32.mrf.mxu0 }
0x417d   :  { %8257 = vrcp.f32 %v5383_v30 }
0x418a   :  { %v8258_v32 = vpop.eup %8257 }
0x418b   :  { %v5385_v33 = vmul.f32 %v8910_v51, %v8258_v32 }
0x418d   :  { %7943 = vmatmul.mubr.msk.f32.vlgmr.msra.gmra.mxu1 %vm258_vm1, %v5385_v33 }
0x418e   :  { %7951 = vmatpush3.msra.mxu1 %v8996_v22  ;;  %7952 = vmatprep.mubr.msk.f32.mxu1 %vm8404_vm0, %v8403_v0 }
0x418f   :  { %7960 = vmatprep.subr.mxu1 %v8403_v0 }
0x424d   :  { %v5455_v34 = vpop.f32.mrf.mxu1 }
0x424e   :  { %v5459_v38 = vmax.f32 %v5455_v34, 1e-30 }
0x424f   :  { %v7944_v39 = vpop.f32.mrf.mxu1 }
0x4250   :  { %8259 = vrcp.f32 %v5459_v38 }
0x425d   :  { %v8260_v40 = vpop.eup %8259 }
0x425e   :  { %v5461_v41 = vmul.f32 %v8861_v7, %v8260_v40 }
0x4260   :  { %7948 = vmatmul.mubr.f32.vlgmr.msra.gmra.mxu0 %v5461_v41 }
0x4261   :  { %7956 = vmatpush3.xpose.msra.mxu0 %v8996_v22  ;;  %7957 = vmatprep.mubr.msk.f32.mxu0 %vm8404_vm0, %v8403_v0 }
0x4262   :  { %7965 = vmatprep.subr.mxu0 %v8403_v0 }
0x4320   :  { %v5528_v42 = vpop.f32.mrf.mxu0 }
0x4321   :  { %v5532_v43 = vmax.f32 %v5528_v42, 1e-30 }
0x4322   :  { %v7949_v44 = vpop.f32.mrf.mxu0 }
0x4323   :  { %8261 = vrcp.f32 %v5532_v43 }
0x4330   :  { %v8262_v45 = vpop.eup %8261 }
0x4331   :  { %v5534_v46 = vmul.f32 %v8910_v51, %v8262_v45 }
0x4333   :  { %7953 = vmatmul.mubr.msk.f32.vlgmr.msra.gmra.mxu1 %vm258_vm1, %v5534_v46 }
0x4334   :  { %7961 = vmatpush3.msra.mxu1 %v8996_v22  ;;  %7962 = vmatprep.mubr.msk.f32.mxu1 %vm8404_vm0, %v8403_v0 }
0x4335   :  { %7970 = vmatprep.subr.mxu1 %v8403_v0 }
0x43f3   :  { %v5604_v47 = vpop.f32.mrf.mxu1 }
0x43f4   :  { %v5608_v60 = vmax.f32 %v5604_v47, 1e-30 }
0x43f5   :  { %v7954_v48 = vpop.f32.mrf.mxu1 }
0x43f6   :  { %8263 = vrcp.f32 %v5608_v60 }
0x4403   :  { %v8264_v49 = vpop.eup %8263 }
0x4404   :  { %v5610_v50 = vmul.f32 %v8861_v7, %v8264_v49 }
0x4406   :  { %7958 = vmatmul.mubr.f32.vlgmr.msra.gmra.mxu0 %v5610_v50 }
0x4407   :  { %7966 = vmatpush3.xpose.msra.mxu0 %v8996_v22  ;;  %7967 = vmatprep.mubr.msk.f32.mxu0 %vm8404_vm0, %v8403_v0 }
0x4408   :  { %7975 = vmatprep.subr.mxu0 %v8403_v0 }
0x44c6   :  { %v5677_v36 = vpop.f32.mrf.mxu0 }
0x44c7   :  { %v5681_v52 = vmax.f32 %v5677_v36, 1e-30 }
0x44c8   :  { %v7959_v53 = vpop.f32.mrf.mxu0 }
0x44c9   :  { %8265 = vrcp.f32 %v5681_v52 }
0x44d6   :  { %v8266_v54 = vpop.eup %8265 }
0x44d7   :  { %v5683_v55 = vmul.f32 %v8910_v51, %v8266_v54 }
0x44d9   :  { %7963 = vmatmul.mubr.msk.f32.vlgmr.msra.gmra.mxu1 %vm258_vm1, %v5683_v55 }
0x44da   :  { %7971 = vmatpush3.msra.mxu1 %v8996_v22  ;;  %7972 = vmatprep.mubr.msk.f32.mxu1 %vm8404_vm0, %v8403_v0 }
0x44db   :  { %7980 = vmatprep.subr.mxu1 %v8403_v0 }
0x4599   :  { %v5753_v56 = vpop.f32.mrf.mxu1 }
0x459a   :  { %v5757_v57 = vmax.f32 %v5753_v56, 1e-30 }
0x459b   :  { %v7964_v59 = vpop.f32.mrf.mxu1 }
0x459c   :  { %8267 = vrcp.f32 %v5757_v57 }
0x45a9   :  { %v8268_v61 = vpop.eup %8267 }
0x45aa   :  { %v5759_v62 = vmul.f32 %v8861_v7, %v8268_v61 }
0x45ac   :  { %7968 = vmatmul.mubr.f32.vlgmr.msra.gmra.mxu0 %v5759_v62 }
0x45ad   :  { %7977 = vmatprep.mubr.msk.f32.mxu0 %vm8404_vm0, %v8403_v0 }
0x466c   :  { %v5826_v63 = vpop.f32.mrf.mxu0 }
0x466d   :  { %v5830_v1 = vmax.f32 %v5826_v63, 1e-30 }
0x466e   :  { %v7969_v2 = vpop.f32.mrf.mxu0 }
0x466f   :  { %8269 = vrcp.f32 %v5830_v1 }
0x467c   :  { %v8270_v3 = vpop.eup %8269 }
0x467d   :  { %v5832_v18 = vmul.f32 %v8910_v51, %v8270_v3 }
0x467f   :  { %7973 = vmatmul.mubr.msk.f32.vlgmr.msra.gmra.mxu1 %vm258_vm1, %v5832_v18 }
0x4680   :  { %7982 = vmatprep.mubr.msk.f32.mxu1 %vm8404_vm0, %v8403_v0 }
0x473f   :  { %v5902_v4 = vpop.f32.mrf.mxu1 }
0x4740   :  { %v5906_v5 = vmax.f32 %v5902_v4, 1e-30 }
0x4741   :  { %v7974_v6 = vpop.f32.mrf.mxu1 }
0x4742   :  { %8271 = vrcp.f32 %v5906_v5 }
0x474f   :  { %v8272_v8 = vpop.eup %8271 }
0x4750   :  { %v5908_v9 = vmul.f32 %v8861_v7, %v8272_v8 }
0x4752   :  { %v5913_v10 = vrot.slane %v5908_v9, %v8512_v58 }
0x4754   :  { %v5915_v11 = vmul.f32 %v5913_v10, %v8996_v22 }
0x4756   :  { %5916 = vadd.xlane.f32.xlu1 %v5915_v11 }
0x47df   :  { %v5917_v12 = vpop.xlane.xlu1 %5916 }
0x47e0   :  { %v5918_v13 = vmax.f32 %v5917_v12, 1e-30 }
0x47e2   :  { %8273 = vrcp.f32 %v5918_v13 }
0x47ef   :  { %v8274_v14 = vpop.eup %8273 }
0x47f0   :  { %v5920_v15 = vmul.f32 %v8876_v26, %v8274_v14 }
0x47f2   :  { %5923 = vperm.xlu0 %8100, %v5920_v15  }
0x486d   :  { %v5924_v16 = vpop.permute.xlu0 %5923 }
0x486e   :  { %v9052_v19 = vmul.f32 %v5924_v16, %v5915_v11 }
0x4870   :  { %7976 = vmatpush3.msra.mxu0 %v9052_v19  ;;  %7981 = vmatpush3.xpose.msra.mxu1 %v9052_v19 }
0x4871   :  { %7978 = vmatmul.mubr.msk.f32.vlgmr.msra.gmra.mxu0 %vm258_vm1, %v8406_v17  ;;  %7985 = vmatprep.subr.mxu0 %v8403_v0 }
0x4872   :  { %7986 = vmatpush3.msra.mxu0 %v9052_v19  ;;  %7990 = vmatprep.subr.mxu1 %v8403_v0 }
0x4873   :  { %7987 = vmatprep.mubr.msk.f32.mxu0 %vm8404_vm0, %v8403_v0  ;;  %7995 = vmatprep.subr.mxu0 %v8403_v0 }
0x4931   :  { %v5993_v20 = vpop.f32.mrf.mxu0 }
0x4932   :  { %v5997_v21 = vmax.f32 %v5993_v20, 1e-30 }
0x4933   :  { %v7979_v22 = vpop.f32.mrf.mxu0 }
0x4934   :  { %8275 = vrcp.f32 %v5997_v21 }
0x4941   :  { %v8276_v23 = vpop.eup %8275 }
0x4942   :  { %v5999_v24 = vmul.f32 %v8861_v7, %v8276_v23 }
0x4944   :  { %7983 = vmatmul.mubr.f32.vlgmr.msra.gmra.mxu1 %v5999_v24 }
0x4945   :  { %7991 = vmatpush3.xpose.msra.mxu1 %v9052_v19  ;;  %7992 = vmatprep.mubr.msk.f32.mxu1 %vm8404_vm0, %v8403_v0 }
0x4946   :  { %8000 = vmatprep.subr.mxu1 %v8403_v0 }
0x4a04   :  { %v6066_v25 = vpop.f32.mrf.mxu1 }
0x4a05   :  { %v6070_v27 = vmax.f32 %v6066_v25, 1e-30 }
0x4a06   :  { %v7984_v28 = vpop.f32.mrf.mxu1 }
0x4a07   :  { %8277 = vrcp.f32 %v6070_v27 }
0x4a14   :  { %v8278_v29 = vpop.eup %8277 }
0x4a15   :  { %v6072_v30 = vmul.f32 %v8910_v51, %v8278_v29 }
0x4a17   :  { %7988 = vmatmul.mubr.msk.f32.vlgmr.msra.gmra.mxu0 %vm258_vm1, %v6072_v30 }
0x4a18   :  { %7996 = vmatpush3.msra.mxu0 %v9052_v19  ;;  %7997 = vmatprep.mubr.msk.f32.mxu0 %vm8404_vm0, %v8403_v0 }
0x4a19   :  { %8005 = vmatprep.subr.mxu0 %v8403_v0 }
0x4ad7   :  { %v6142_v31 = vpop.f32.mrf.mxu0 }
0x4ad8   :  { %v6146_v32 = vmax.f32 %v6142_v31, 1e-30 }
0x4ad9   :  { %v7989_v33 = vpop.f32.mrf.mxu0 }
0x4ada   :  { %8279 = vrcp.f32 %v6146_v32 }
0x4ae7   :  { %v8280_v34 = vpop.eup %8279 }
0x4ae8   :  { %v6148_v38 = vmul.f32 %v8861_v7, %v8280_v34 }
0x4aea   :  { %7993 = vmatmul.mubr.f32.vlgmr.msra.gmra.mxu1 %v6148_v38 }
0x4aeb   :  { %8001 = vmatpush3.xpose.msra.mxu1 %v9052_v19  ;;  %8002 = vmatprep.mubr.msk.f32.mxu1 %vm8404_vm0, %v8403_v0 }
0x4aec   :  { %8010 = vmatprep.subr.mxu1 %v8403_v0 }
0x4baa   :  { %v6215_v39 = vpop.f32.mrf.mxu1 }
0x4bab   :  { %v6219_v40 = vmax.f32 %v6215_v39, 1e-30 }
0x4bac   :  { %v7994_v41 = vpop.f32.mrf.mxu1 }
0x4bad   :  { %8281 = vrcp.f32 %v6219_v40 }
0x4bba   :  { %v8282_v42 = vpop.eup %8281 }
0x4bbb   :  { %v6221_v43 = vmul.f32 %v8910_v51, %v8282_v42 }
0x4bbd   :  { %7998 = vmatmul.mubr.msk.f32.vlgmr.msra.gmra.mxu0 %vm258_vm1, %v6221_v43 }
0x4bbe   :  { %8006 = vmatpush3.msra.mxu0 %v9052_v19  ;;  %8007 = vmatprep.mubr.msk.f32.mxu0 %vm8404_vm0, %v8403_v0 }
0x4bbf   :  { %8015 = vmatprep.subr.mxu0 %v8403_v0 }
0x4c7d   :  { %v6291_v44 = vpop.f32.mrf.mxu0 }
0x4c7e   :  { %v6295_v45 = vmax.f32 %v6291_v44, 1e-30  ;;  %v8316_v44 = vld [vmem:[#allocation2 + $0x78] sm:$0xff] }
0x4c7f   :  { %v7999_v46 = vpop.f32.mrf.mxu0 }
0x4c80   :  { %8283 = vrcp.f32 %v6295_v45  ;;  %v8317_v45 = vld [vmem:[#allocation2 + $0x70] sm:$0xff]  ;;  %v8318_v46 = vld [vmem:[#allocation2 + $0x68] sm:$0xff] }
0x4c8d   :  { %v8284_v47 = vpop.eup %8283 }
0x4c8e   :  { %v6297_v60 = vmul.f32 %v8861_v7, %v8284_v47  ;;  %v8319_v47 = vld [vmem:[#allocation2 + $0x60] sm:$0xff] }
0x4c90   :  { %8003 = vmatmul.mubr.f32.vlgmr.msra.gmra.mxu1 %v6297_v60  ;;  %v8321_v60 = vld [vmem:[#allocation2 + $0x50] sm:$0xff] }
0x4c91   :  { %8011 = vmatpush3.xpose.msra.mxu1 %v9052_v19  ;;  %8012 = vmatprep.mubr.msk.f32.mxu1 %vm8404_vm0, %v8403_v0 }
0x4c92   :  { %8020 = vmatprep.subr.mxu1 %v8403_v0 }
0x4d50   :  { %v6364_v48 = vpop.f32.mrf.mxu1 }
0x4d51   :  { %v6368_v49 = vmax.f32 %v6364_v48, 1e-30  ;;  %v8322_v48 = vld [vmem:[#allocation2 + $0x48] sm:$0xff] }
0x4d52   :  { %v8004_v50 = vpop.f32.mrf.mxu1 }
0x4d53   :  { %8285 = vrcp.f32 %v6368_v49  ;;  %v8323_v49 = vld [vmem:[#allocation2 + $0x40] sm:$0xff]  ;;  %v8324_v50 = vld [vmem:[#allocation2 + $0x38] sm:$0xff] }
0x4d60   :  { %v8286_v36 = vpop.eup %8285 }
0x4d61   :  { %v6370_v52 = vmul.f32 %v8910_v51, %v8286_v36  ;;  %v8325_v36 = vld [vmem:[#allocation2 + $0x30] sm:$0xff] }
0x4d63   :  { %8008 = vmatmul.mubr.msk.f32.vlgmr.msra.gmra.mxu0 %vm258_vm1, %v6370_v52  ;;  %v8326_v52 = vld [vmem:[#allocation2 + $0x28] sm:$0xff] }
0x4d64   :  { %8016 = vmatpush3.msra.mxu0 %v9052_v19  ;;  %8017 = vmatprep.mubr.msk.f32.mxu0 %vm8404_vm0, %v8403_v0 }
0x4d65   :  { %8025 = vmatprep.subr.mxu0 %v8403_v0 }
0x4e23   :  { %v6440_v53 = vpop.f32.mrf.mxu0 }
0x4e24   :  { %v6444_v54 = vmax.f32 %v6440_v53, 1e-30  ;;  %v8327_v53 = vld [vmem:[#allocation2 + $0x20] sm:$0xff] }
0x4e25   :  { %v8009_v55 = vpop.f32.mrf.mxu0 }
0x4e26   :  { %8287 = vrcp.f32 %v6444_v54  ;;  %v8328_v54 = vld [vmem:[#allocation2 + $0x18] sm:$0xff]  ;;  %v8329_v55 = vld [vmem:[#allocation2 + $0x10] sm:$0xff] }
0x4e33   :  { %v8288_v56 = vpop.eup %8287 }
0x4e34   :  { %v6446_v57 = vmul.f32 %v8861_v7, %v8288_v56  ;;  %v8330_v56 = vld [vmem:[#allocation2 + $0x8] sm:$0xff] }
0x4e36   :  { %8013 = vmatmul.mubr.f32.vlgmr.msra.gmra.mxu1 %v6446_v57  ;;  %v8331_v57 = vld [vmem:[#allocation2] sm:$0xff] }
0x4e37   :  { %8022 = vmatprep.mubr.msk.f32.mxu1 %vm8404_vm0, %v8403_v0 }
0x4ef6   :  { %v6513_v59 = vpop.f32.mrf.mxu1 }
0x4ef7   :  { %v6517_v61 = vmax.f32 %v6513_v59, 1e-30 }
0x4ef8   :  { %v8014_v62 = vpop.f32.mrf.mxu1 }
0x4ef9   :  { %8289 = vrcp.f32 %v6517_v61 }
0x4f06   :  { %v8290_v63 = vpop.eup %8289 }
0x4f07   :  { %v6519_v1 = vmul.f32 %v8910_v51, %v8290_v63 }
0x4f09   :  { %8018 = vmatmul.mubr.msk.f32.vlgmr.msra.gmra.mxu0 %vm258_vm1, %v6519_v1 }
0x4f0a   :  { %8027 = vmatprep.mubr.msk.f32.mxu0 %vm8404_vm0, %v8403_v0 }
0x4fc9   :  { %v6589_v2 = vpop.f32.mrf.mxu0 }
0x4fca   :  { %v6593_v3 = vmax.f32 %v6589_v2, 1e-30 }
0x4fcb   :  { %v8019_v18 = vpop.f32.mrf.mxu0 }
0x4fcc   :  { %8291 = vrcp.f32 %v6593_v3 }
0x4fd9   :  { %v8292_v4 = vpop.eup %8291 }
0x4fda   :  { %v6595_v5 = vmul.f32 %v8861_v7, %v8292_v4 }
0x4fdc   :  { %v6600_v6 = vrot.slane %v6595_v5, %v8512_v58 }
0x4fde   :  { %v6602_v8 = vmul.f32 %v6600_v6, %v9052_v19 }
0x4fe0   :  { %6603 = vadd.xlane.f32.xlu0 %v6602_v8 }
0x5069   :  { %v6604_v9 = vpop.xlane.xlu0 %6603 }
0x506a   :  { %v6605_v10 = vmax.f32 %v6604_v9, 1e-30 }
0x506c   :  { %8293 = vrcp.f32 %v6605_v10 }
0x5079   :  { %v8294_v11 = vpop.eup %8293 }
0x507a   :  { %v6607_v12 = vmul.f32 %v8876_v26, %v8294_v11  ;;  %v8333_v11 = vld [vmem:[%s9179_s2] sm:$0xff] }
0x507c   :  { %6610 = vperm.xlu1 %8099, %v6607_v12  }
0x50f7   :  { %v6611_v13 = vpop.permute.xlu1 %6610 }
0x50f8   :  { %v9108_v14 = vmul.f32 %v6611_v13, %v6602_v8 }
0x50fa   :  { %8021 = vmatpush3.msra.mxu1 %v9108_v14  ;;  %8026 = vmatpush3.xpose.msra.mxu0 %v9108_v14 }
0x50fb   :  { %8023 = vmatmul.mubr.msk.f32.vlgmr.msra.gmra.mxu1 %vm258_vm1, %v8406_v17  ;;  %8030 = vmatprep.subr.mxu1 %v8403_v0 }
0x50fc   :  { %8031 = vmatpush3.msra.mxu1 %v9108_v14  ;;  %8035 = vmatprep.subr.mxu0 %v8403_v0 }
0x50fd   :  { %8032 = vmatprep.mubr.msk.f32.mxu1 %vm8404_vm0, %v8403_v0  ;;  %8040 = vmatprep.subr.mxu1 %v8403_v0 }
0x51bb   :  { %v6680_v26 = vpop.f32.mrf.mxu1 }
0x51bc   :  { %v6684_v15 = vmax.f32 %v6680_v26, 1e-30 }
0x51bd   :  { %v8024_v16 = vpop.f32.mrf.mxu1 }
0x51be   :  { %8295 = vrcp.f32 %v6684_v15 }
0x51cb   :  { %v8296_v19 = vpop.eup %8295 }
0x51cc   :  { %v6686_v20 = vmul.f32 %v8861_v7, %v8296_v19 }
0x51ce   :  { %8028 = vmatmul.mubr.f32.vlgmr.msra.gmra.mxu0 %v6686_v20 }
0x51cf   :  { %8036 = vmatpush3.xpose.msra.mxu0 %v9108_v14  ;;  %8037 = vmatprep.mubr.msk.f32.mxu0 %vm8404_vm0, %v8403_v0 }
0x51d0   :  { %8045 = vmatprep.subr.mxu0 %v8403_v0 }
0x528e   :  { %v6753_v17 = vpop.f32.mrf.mxu0 }
0x528f   :  { %v6757_v21 = vmax.f32 %v6753_v17, 1e-30 }
0x5290   :  { %v8029_v22 = vpop.f32.mrf.mxu0 }
0x5291   :  { %8297 = vrcp.f32 %v6757_v21 }
0x529e   :  { %v8298_v23 = vpop.eup %8297 }
0x529f   :  { %v6759_v24 = vmul.f32 %v8910_v51, %v8298_v23 }
0x52a1   :  { %8033 = vmatmul.mubr.msk.f32.vlgmr.msra.gmra.mxu1 %vm258_vm1, %v6759_v24 }
0x52a2   :  { %8041 = vmatpush3.msra.mxu1 %v9108_v14  ;;  %8042 = vmatprep.mubr.msk.f32.mxu1 %vm8404_vm0, %v8403_v0 }
0x52a3   :  { %8050 = vmatprep.subr.mxu1 %v8403_v0 }
0x5361   :  { %v6829_v25 = vpop.f32.mrf.mxu1 }
0x5362   :  { %v6833_v27 = vmax.f32 %v6829_v25, 1e-30 }
0x5363   :  { %v8034_v28 = vpop.f32.mrf.mxu1 }
0x5364   :  { %8299 = vrcp.f32 %v6833_v27 }
0x5371   :  { %v8300_v29 = vpop.eup %8299 }
0x5372   :  { %v6835_v30 = vmul.f32 %v8861_v7, %v8300_v29 }
0x5374   :  { %8038 = vmatmul.mubr.f32.vlgmr.msra.gmra.mxu0 %v6835_v30 }
0x5375   :  { %8046 = vmatpush3.xpose.msra.mxu0 %v9108_v14  ;;  %8047 = vmatprep.mubr.msk.f32.mxu0 %vm8404_vm0, %v8403_v0 }
0x5376   :  { %8055 = vmatprep.subr.mxu0 %v8403_v0 }
0x5434   :  { %v6902_v31 = vpop.f32.mrf.mxu0 }
0x5435   :  { %v6906_v32 = vmax.f32 %v6902_v31, 1e-30 }
0x5436   :  { %v8039_v33 = vpop.f32.mrf.mxu0 }
0x5437   :  { %8301 = vrcp.f32 %v6906_v32 }
0x5444   :  { %v8302_v34 = vpop.eup %8301 }
0x5445   :  { %v6908_v38 = vmul.f32 %v8910_v51, %v8302_v34 }
0x5447   :  { %8043 = vmatmul.mubr.msk.f32.vlgmr.msra.gmra.mxu1 %vm258_vm1, %v6908_v38 }
0x5448   :  { %8051 = vmatpush3.msra.mxu1 %v9108_v14  ;;  %8052 = vmatprep.mubr.msk.f32.mxu1 %vm8404_vm0, %v8403_v0 }
0x5507   :  { %v6978_v39 = vpop.f32.mrf.mxu1 }
0x5508   :  { %v6982_v40 = vmax.f32 %v6978_v39, 1e-30 }
0x5509   :  { %v8044_v41 = vpop.f32.mrf.mxu1 }
0x550a   :  { %8303 = vrcp.f32 %v6982_v40 }
0x5517   :  { %v8304_v42 = vpop.eup %8303 }
0x5518   :  { %v6984_v43 = vmul.f32 %v8861_v7, %v8304_v42  ;;  %v8320_v7 = vld [vmem:[#allocation2 + $0x58] sm:$0xff] }
0x551a   :  { %8048 = vmatmul.mubr.f32.vlgmr.msra.gmra.mxu0 %v6984_v43 }
0x551b   :  { %8056 = vmatpush3.msra.mxu0 %v8316_v44  ;;  %8087 = vmatprep.mubr.msk.f32.mxu0 %vm8404_vm0, %v8403_v0 }
0x551c   :  { %8057 = vmatprep.subr.mxu0 %v8403_v0 }
0x551d   :  { %8058 = vmatpush3.msra.mxu0 %v8317_v45 }
0x551e   :  { %8059 = vmatprep.subr.mxu0 %v8403_v0 }
0x551f   :  { %8060 = vmatpush3.msra.mxu0 %v8318_v46 }
0x5520   :  { %8061 = vmatprep.subr.mxu0 %v8403_v0 }
0x5521   :  { %8062 = vmatpush3.msra.mxu0 %v8319_v47 }
0x5522   :  { %8063 = vmatprep.subr.mxu0 %v8403_v0 }
0x5523   :  { %8064 = vmatpush3.msra.mxu0 %v8320_v7 }
0x5524   :  { %8065 = vmatprep.subr.mxu0 %v8403_v0 }
0x5525   :  { %8066 = vmatpush3.msra.mxu0 %v8321_v60 }
0x5526   :  { %8067 = vmatprep.subr.mxu0 %v8403_v0 }
0x5527   :  { %8068 = vmatpush3.msra.mxu0 %v8322_v48 }
0x5528   :  { %8069 = vmatprep.subr.mxu0 %v8403_v0 }
0x5529   :  { %8070 = vmatpush3.msra.mxu0 %v8323_v49 }
0x552a   :  { %8071 = vmatprep.subr.mxu0 %v8403_v0 }
0x552b   :  { %8072 = vmatpush3.msra.mxu0 %v8324_v50 }
0x552c   :  { %8073 = vmatprep.subr.mxu0 %v8403_v0 }
0x552d   :  { %8074 = vmatpush3.msra.mxu0 %v8325_v36 }
0x552e   :  { %8075 = vmatprep.subr.mxu0 %v8403_v0 }
0x552f   :  { %8076 = vmatpush3.msra.mxu0 %v8326_v52 }
0x5530   :  { %8077 = vmatprep.subr.mxu0 %v8403_v0 }
0x5531   :  { %8078 = vmatpush3.msra.mxu0 %v8327_v53 }
0x5532   :  { %8079 = vmatprep.subr.mxu0 %v8403_v0 }
0x5533   :  { %8080 = vmatpush3.msra.mxu0 %v8328_v54 }
0x5534   :  { %8081 = vmatprep.subr.mxu0 %v8403_v0 }
0x5535   :  { %8082 = vmatpush3.msra.mxu0 %v8329_v55 }
0x5536   :  { %8083 = vmatprep.subr.mxu0 %v8403_v0 }
0x5537   :  { %8084 = vmatpush3.msra.mxu0 %v8330_v56 }
0x5538   :  { %8085 = vmatprep.subr.mxu0 %v8403_v0  ;;  %v8332_v0 = vld [vmem:[%s9181_s4] sm:$0x1]  ;;  %s8407_s4 = smov [#allocation6]  }
0x5539   :  { %8086 = vmatpush3.msra.mxu0 %v8331_v57  ;;  %s7248_s29 = sshll.u32 %s8407_s4, 4  ;;  %s7249_s29 = int_to_ptr.vmem [resolvable:$true] %s7248_s29 }
0x553a   :  { %s8354_s30 = scalar_lea.vmem %s7249_s29, 128  ;;  %p8359_p6 = scmp.lt.s32.totalorder %s7249_s29, %s7249_s29 }
0x553b   :  { %p8355_p5 = scmp.ne.s32.totalorder %s7249_s29, %s8354_s30  ;;  %p8360_p7 = scmp.lt.s32.totalorder %s8354_s30, %s8354_s30 }
0x553d   :  { %p8361_p8 = por %p8360_p7, %p8359_p6 }
0x553f   :  { %p8362_p9 = pnand %p8361_p8, %p8355_p5 }
0x55da   :  { %v7051_v59 = vpop.f32.mrf.mxu0 }
0x55db   :  { %v7055_v61 = vmax.f32 %v7051_v59, 1e-30 }
0x55dc   :  { %v8049_v62 = vpop.f32.mrf.mxu0 }
0x55dd   :  { %8305 = vrcp.f32 %v7055_v61 }
0x55ea   :  { %v8306_v63 = vpop.eup %8305 }
0x55eb   :  { %v7057_v1 = vmul.f32 %v8910_v51, %v8306_v63 }
0x55ed   :  { %8053 = vmatmul.mubr.msk.f32.vlgmr.msra.gmra.mxu1 %vm258_vm1, %v7057_v1 }
0x56ad   :  { %v7127_v2 = vpop.f32.mrf.mxu1 }
0x56ae   :  { %v7131_v3 = vmax.f32 %v7127_v2, 1e-30 }
0x56af   :  { %v8054_v18 = vpop.f32.mrf.mxu1 }
0x56b0   :  { %8307 = vrcp.f32 %v7131_v3 }
0x56bd   :  { %v8308_v4 = vpop.eup %8307 }
0x56be   :  { %v7133_v5 = vmul.f32 %v8332_v0, %v8308_v4 }
0x56c0   :  { %v7138_v6 = vrot.slane %v7133_v5, %v8512_v58 }
0x56c2   :  { %v7140_v8 = vmul.f32 %v7138_v6, %v9108_v14 }
0x56c4   :  { %7141 = vadd.xlane.f32.xlu1 %v7140_v8 }
0x574d   :  { %v7142_v9 = vpop.xlane.xlu1 %7141 }
0x574e   :  { %v7143_v10 = vmax.f32 %v7142_v9, 1e-30 }
0x5750   :  { %8309 = vrcp.f32 %v7143_v10 }
0x5751   :  { %8311 = vrcp.f32 %v241_v37 }
0x575d   :  { %v8310_v51 = vpop.eup %8309 }
0x575e   :  { %v7145_v12 = vmul.f32 %v8333_v11, %v8310_v51  ;;  %v8312_v13 = vpop.eup %8311 }
0x5760   :  { %7148 = vperm.xlu0 %8100, %v7145_v12  }
0x5764   :  { %7157 = vperm.xlu0 %8100, %v8312_v13  }
0x57db   :  { %v7149_v26 = vpop.permute.xlu0 %7148 }
0x57dc   :  { %v7151_v58 = vmul.f32 %v7149_v26, %v7140_v8 }
0x57de   :  { %7152 = vst [vmem:[#allocation6] sm:$0xff] %v7151_v58 }
0x57df   :  { %v7158_v14 = vpop.permute.xlu0 %7157 }
0x57e0   :  { %v7160_v15 = vmul.f32 %v7158_v14, %v7151_v58 }
0x57e2   :  { %8088 = vmatmul.mubr.f32.vlgmr.msra.gmra.mxu0 %v7160_v15 }
0x57e3   :  { %8365 = shalt.err (!%p8362_p9)
}
0x57e4   :  { %7251 = dma.vmem_to_hbm [thread:$0]  %s7249_s29, 128, %s9185_s8, [#allocation7]  }
0x57e5   :  { %s8408_s10 = smov [#allocation5]  }
0x57e6   :  { %s7238_s11 = sshll.u32 %s8408_s10, 4  ;;  %s7239_s11 = int_to_ptr.vmem [resolvable:$true] %s7238_s11 }
0x57e7   :  { %s8374_s1 = scalar_lea.vmem %s7239_s11, 128  ;;  %p8379_p11 = scmp.lt.s32.totalorder %s7239_s11, %s7239_s11 }
0x57e8   :  { %p8375_p10 = scmp.ne.s32.totalorder %s7239_s11, %s8374_s1  ;;  %p8380_p12 = scmp.lt.s32.totalorder %s8374_s1, %s8374_s1 }
0x57ea   :  { %p8381_p13 = por %p8380_p12, %p8379_p11 }
0x57ec   :  { %p8382_p0 = pnand %p8381_p13, %p8375_p10 }
0x58a2   :  { %v7227_v35 = vpop.f32.mrf.mxu0 }
0x58a3   :  { %7231 = vst [vmem:[#allocation5] sm:$0xff] %v7227_v35 }
0x58a4   :  { %v8089_v37 = vpop.f32.mrf.mxu0 }
0x58a5   :  { %8385 = shalt.err (!%p8382_p0)
}
0x58a6   :  { %7241 = dma.vmem_to_hbm [thread:$0]  %s7239_s11, 128, %s9184_s7, [#allocation4]  }
0x58a7   :  { %8396 = dma.done.wait [#allocation4], 128  }
0x58a8   :  { %8397 = vsyncadd [#allocation4], 4294967168 }
0x58a9   :  { %8398 = dma.done.wait [#allocation7], 128  }
0x58aa   :  { %8399 = vsyncadd [#allocation7], 4294967168 }
0x58ab   :  { %7258 = vsyncpa [#allocation3], 1 }
0x58ac   :  { %7259 = vsyncpa [#allocation4], 1 }
0x58ad   :  { %7260 = vsyncpa [#allocation7], 1 }

</bundles_post_ra>
